<compile_context>
chip_gen: v5e
topology: v5e:2x2
jax: 0.10.0
libtpu: 0.0.40
codegen_flags: <defaults>
</compile_context>

<pallas_src>
import functools

import jax
import jax.numpy as jnp
from jax.experimental import pallas as pl
from jax.experimental.pallas import tpu as pltpu


def _leaky_relu(x, slope=0.2):
    return jnp.where(x > 0, x, slope * x)


def _bn_leaky(x, gamma, beta, eps, slope=0.2):
    """Train-mode BatchNorm1d (biased variance) folded to scale/shift + LeakyReLU."""
    inv_n = 1.0 / x.shape[0]
    mean = jnp.sum(x, axis=0, keepdims=True) * inv_n
    ex2 = jnp.sum(x * x, axis=0, keepdims=True) * inv_n
    var = jnp.maximum(ex2 - mean * mean, 0.0)  # guard single-pass rounding
    scale = gamma * jax.lax.rsqrt(var + eps)
    shift = beta - mean * scale
    y = x * scale + shift
    return jnp.where(y > 0, y, slope * y)


def generator_kernel(
    labels_ref, noise_ref, embp_ref,
    w1_ref, b1_ref,
    w2_ref, g2_ref, be2_ref,
    w3_ref, g3_ref, be3_ref,
    w4_hbm, g4_ref, be4_ref,
    w5_hbm, b5_ref,
    out_ref,
    w4_buf, w5_buf, dma_sems,
):
    eps = 0.8  # BatchNorm1d(out_feat, 0.8) -> second positional arg is eps
    bf16 = jnp.bfloat16

    # Kick off the two big weight fetches immediately so they overlap the
    # layer-1..3 compute instead of serializing before the body runs.
    cp4 = pltpu.make_async_copy(w4_hbm, w4_buf, dma_sems.at[0])
    cp5 = pltpu.make_async_copy(w5_hbm, w5_buf, dma_sems.at[1])
    cp4.start()
    cp5.start()

    noise = noise_ref[...]
    B = noise.shape[0]
    n_classes = embp_ref.shape[0]

    # Embedding lookup folded in as a tiny one-hot matmul:
    #   emb[label] @ w1[:n_classes] == onehot(label) @ (emb @ w1[:n_classes])
    lbl = labels_ref[...]                                        # (B, 1) int32
    iota = jax.lax.broadcasted_iota(jnp.int32, (B, n_classes), 1)
    onehot = (iota == lbl).astype(jnp.float32)                   # (B, n_classes)

    # block(latent + n_classes -> 128, normalize=False)
    h = (jnp.dot(noise.astype(bf16), w1_ref[...],
                 preferred_element_type=jnp.float32)
         + jnp.dot(onehot, embp_ref[...], preferred_element_type=jnp.float32)
         + b1_ref[...])
    h = _leaky_relu(h)

    # block(128 -> 256): pre-BN bias is algebraically cancelled by BN mean.
    h = jnp.dot(h.astype(bf16), w2_ref[...], preferred_element_type=jnp.float32)
    h = _bn_leaky(h, g2_ref[...], be2_ref[...], eps)

    # block(256 -> 512)
    h = jnp.dot(h.astype(bf16), w3_ref[...], preferred_element_type=jnp.float32)
    h = _bn_leaky(h, g3_ref[...], be3_ref[...], eps)

    # block(512 -> 1024): wait on the w4 DMA only when it is actually needed.
    cp4.wait()
    h = jnp.dot(h.astype(bf16), w4_buf[...], preferred_element_type=jnp.float32)
    h = _bn_leaky(h, g4_ref[...], be4_ref[...], eps)

    # Linear(1024 -> out_dim_pad) + Tanh
    cp5.wait()
    h = jnp.dot(h.astype(bf16), w5_buf[...],
                preferred_element_type=jnp.float32) + b5_ref[...]
    out_ref[...] = jnp.tanh(h)


def init_generator_params(key, n_classes, img_shape, latent_dim):
    """Deterministic synthetic parameters. Linear weights stored as (in, out)."""
    out_dim = 1
    for d in img_shape:
        out_dim *= d
    in_dim = latent_dim + n_classes
    dims = [in_dim, 128, 256, 512, 1024, out_dim]

    keys = jax.random.split(key, 16)
    ki = iter(keys)

    params = {"emb": jax.random.normal(next(ki), (n_classes, n_classes), jnp.float32)}

    def linear(kw, d_in, d_out):
        w = jax.random.normal(kw, (d_in, d_out), jnp.float32) * 0.05
        b = jnp.zeros((1, d_out), jnp.float32)
        return w, b

    params["w1"], params["b1"] = linear(next(ki), dims[0], dims[1])
    params["w2"], params["b2"] = linear(next(ki), dims[1], dims[2])
    params["w3"], params["b3"] = linear(next(ki), dims[2], dims[3])
    params["w4"], params["b4"] = linear(next(ki), dims[3], dims[4])
    params["w5"], params["b5"] = linear(next(ki), dims[4], dims[5])

    for name, d in (("2", dims[2]), ("3", dims[3]), ("4", dims[4])):
        params["g" + name] = jnp.ones((1, d), jnp.float32)       # gamma
        params["be" + name] = jnp.zeros((1, d), jnp.float32)     # beta

    return params


@functools.partial(jax.jit, static_argnames=("img_shape",))
def generator_forward(params, noise, labels, img_shape):
    B, latent_dim = noise.shape
    out_dim = 1
    for d in img_shape:
        out_dim *= d
    # Lane-dense output: pad the last linear up to a multiple of 128 lanes.
    out_dim_pad = ((out_dim + 127) // 128) * 128

    bf16 = jnp.bfloat16
    n_classes = params["emb"].shape[0]

    # Fold the embedding lookup into the kernel:
    #   cat(emb[label], noise) @ w1
    #     == onehot(label) @ (emb @ w1[:n_classes]) + noise @ w1[n_classes:]
    emb_proj = params["emb"] @ params["w1"][:n_classes]          # (n_classes, 128) f32
    w1_noise = params["w1"][n_classes:].astype(bf16)             # (latent, 128)

    w5 = params["w5"]
    b5 = params["b5"]
    if out_dim_pad != out_dim:
        w5 = jnp.pad(w5, ((0, 0), (0, out_dim_pad - out_dim)))
        b5 = jnp.pad(b5, ((0, 0), (0, out_dim_pad - out_dim)))
    w5 = w5.astype(bf16)

    labels_i32 = labels.astype(jnp.int32).reshape(B, 1)

    # NOTE: b2/b3/b4 are intentionally not passed — a bias immediately before
    # train-mode BatchNorm is exactly cancelled by the mean subtraction.
    args = (
        labels_i32, noise, emb_proj,
        w1_noise, params["b1"],
        params["w2"].astype(bf16), params["g2"], params["be2"],
        params["w3"].astype(bf16), params["g3"], params["be3"],
        params["w4"].astype(bf16), params["g4"], params["be4"],
        w5, b5,
    )

    vmem_spec = pl.BlockSpec(memory_space=pltpu.MemorySpace.VMEM)
    any_spec = pl.BlockSpec(memory_space=pl.ANY)   # stay in HBM, DMA'd manually
    in_specs = [vmem_spec] * len(args)
    in_specs[11] = any_spec   # w4 (512, 1024)
    in_specs[14] = any_spec   # w5 (1024, out_dim_pad)

    scratch_shapes = [
        pltpu.VMEM(params["w4"].shape, bf16),
        pltpu.VMEM(w5.shape, bf16),
        pltpu.SemaphoreType.DMA((2,)),
    ]

    # Size the VMEM request from the actual footprint (+2x headroom), capped at
    # 32 MiB so it stays within v7x's scoped-VMEM budget.
    arg_bytes = sum(int(a.size) * a.dtype.itemsize for a in args)
    scratch_bytes = (int(params["w4"].size) + int(w5.size)) * 2
    out_bytes = B * out_dim_pad * 4
    footprint = arg_bytes + scratch_bytes + out_bytes
    vmem_limit = int(min(32 << 20, max(8 << 20, 2 * footprint)))

    flops = 2 * B * (latent_dim * 128 + n_classes * 128 + 128 * 256
                     + 256 * 512 + 512 * 1024 + 1024 * out_dim_pad)
    cost = pl.CostEstimate(
        flops=flops,
        transcendentals=B * out_dim_pad,
        bytes_accessed=int(footprint),
    )

    flat = pl.pallas_call(
        generator_kernel,
        out_shape=jax.ShapeDtypeStruct((B, out_dim_pad), jnp.float32),
        in_specs=in_specs,
        out_specs=vmem_spec,
        scratch_shapes=scratch_shapes,
        compiler_params=pltpu.CompilerParams(vmem_limit_bytes=vmem_limit),
        cost_estimate=cost,
    )(*args)

    return flat[:, :out_dim].reshape((B,) + img_shape)  # NCHW


if __name__ == "__main__":
    n_classes = 8
    latent_dim = 32
    img_shape = (1, 16, 16)
    B = 4

    key = jax.random.PRNGKey(0)
    k_params, k_noise, k_labels = jax.random.split(key, 3)

    params = init_generator_params(k_params, n_classes, img_shape, latent_dim)
    noise = jax.random.normal(k_noise, (B, latent_dim), jnp.float32)
    labels = jax.random.randint(k_labels, (B, 1), 0, n_classes, jnp.int32)

    img = generator_forward(params, noise, labels, img_shape)
    jax.block_until_ready(img)

    assert img.shape == (B,) + img_shape, img.shape
    assert img.dtype == jnp.float32
    print("KERNEL_OK")
</pallas_src>

<mosaic_0001>
module attributes {stable_mosaic.version = 11 : i64} {
  func.func @generator_kernel(%arg0: memref<4x1xi32, #tpu.memory_space<vmem>>, %arg1: memref<4x32xf32, #tpu.memory_space<vmem>>, %arg2: memref<8x128xf32, #tpu.memory_space<vmem>>, %arg3: memref<32x128xbf16, #tpu.memory_space<vmem>>, %arg4: memref<1x128xf32, #tpu.memory_space<vmem>>, %arg5: memref<128x256xbf16, #tpu.memory_space<vmem>>, %arg6: memref<1x256xf32, #tpu.memory_space<vmem>>, %arg7: memref<1x256xf32, #tpu.memory_space<vmem>>, %arg8: memref<256x512xbf16, #tpu.memory_space<vmem>>, %arg9: memref<1x512xf32, #tpu.memory_space<vmem>>, %arg10: memref<1x512xf32, #tpu.memory_space<vmem>>, %arg11: memref<512x1024xbf16, #tpu.memory_space<any>>, %arg12: memref<1x1024xf32, #tpu.memory_space<vmem>>, %arg13: memref<1x1024xf32, #tpu.memory_space<vmem>>, %arg14: memref<1024x256xbf16, #tpu.memory_space<any>>, %arg15: memref<1x256xf32, #tpu.memory_space<vmem>>, %arg16: memref<4x256xf32, #tpu.memory_space<vmem>>, %arg17: memref<512x1024xbf16, #tpu.memory_space<vmem>>, %arg18: memref<1024x256xbf16, #tpu.memory_space<vmem>>, %arg19: memref<2x!tpu.dma_semaphore, #tpu.memory_space<semaphore_mem>>) attributes {dimension_semantics = [], scalar_prefetch = 0 : i64, scratch_operands = 3 : i64, tpu.core_type = #tpu.core_type<tc>} {
    %c0_i32 = arith.constant 0 : i32
    %0 = tpu.memref_slice %arg19[%c0_i32] : memref<2x!tpu.dma_semaphore, #tpu.memory_space<semaphore_mem>> -> memref<1x!tpu.dma_semaphore, #tpu.memory_space<semaphore_mem>>
    %1 = tpu.memref_squeeze %0 : memref<1x!tpu.dma_semaphore, #tpu.memory_space<semaphore_mem>> -> memref<!tpu.dma_semaphore, #tpu.memory_space<semaphore_mem>>
    tpu.enqueue_dma source(%arg11 : memref<512x1024xbf16, #tpu.memory_space<any>>) target(%arg17 : memref<512x1024xbf16, #tpu.memory_space<vmem>>) target_semaphore(%1 : memref<!tpu.dma_semaphore, #tpu.memory_space<semaphore_mem>>)
    %c1_i32 = arith.constant 1 : i32
    %2 = tpu.memref_slice %arg19[%c1_i32] : memref<2x!tpu.dma_semaphore, #tpu.memory_space<semaphore_mem>> -> memref<1x!tpu.dma_semaphore, #tpu.memory_space<semaphore_mem>>
    %3 = tpu.memref_squeeze %2 : memref<1x!tpu.dma_semaphore, #tpu.memory_space<semaphore_mem>> -> memref<!tpu.dma_semaphore, #tpu.memory_space<semaphore_mem>>
    tpu.enqueue_dma source(%arg14 : memref<1024x256xbf16, #tpu.memory_space<any>>) target(%arg18 : memref<1024x256xbf16, #tpu.memory_space<vmem>>) target_semaphore(%3 : memref<!tpu.dma_semaphore, #tpu.memory_space<semaphore_mem>>)
    %c0 = arith.constant 0 : index
    %c0_0 = arith.constant 0 : index
    %4 = vector.load %arg1[%c0, %c0_0] : memref<4x32xf32, #tpu.memory_space<vmem>>, vector<4x32xf32>
    %c0_1 = arith.constant 0 : index
    %c0_2 = arith.constant 0 : index
    %5 = vector.load %arg0[%c0_1, %c0_2] : memref<4x1xi32, #tpu.memory_space<vmem>>, vector<4x1xi32>
    %6 = tpu.iota {dimensions = array<i32: 1>} : vector<4x8xi32>
    %7 = vector.broadcast %5 : vector<4x1xi32> to vector<4x8xi32>
    %8 = arith.cmpi eq, %6, %7 : vector<4x8xi32>
    %9 = arith.extui %8 : vector<4x8xi1> to vector<4x8xi32>
    %10 = arith.sitofp %9 : vector<4x8xi32> to vector<4x8xf32>
    %11 = arith.truncf %4 : vector<4x32xf32> to vector<4x32xbf16>
    %c0_3 = arith.constant 0 : index
    %c0_4 = arith.constant 0 : index
    %12 = vector.load %arg3[%c0_3, %c0_4] : memref<32x128xbf16, #tpu.memory_space<vmem>>, vector<32x128xbf16>
    %cst = arith.constant dense<0.000000e+00> : vector<4x128xf32>
    %13 = tpu.matmul %11, %12, %cst {dimension_numbers = #tpu.dot_dimension_numbers<[1], [0], [0], [1], [0, 0, 1, 1], [], []>} : vector<4x32xbf16>, vector<32x128xbf16>, vector<4x128xf32> -> vector<4x128xf32>
    %c0_5 = arith.constant 0 : index
    %c0_6 = arith.constant 0 : index
    %14 = vector.load %arg2[%c0_5, %c0_6] : memref<8x128xf32, #tpu.memory_space<vmem>>, vector<8x128xf32>
    %cst_7 = arith.constant dense<0.000000e+00> : vector<4x128xf32>
    %15 = tpu.matmul %10, %14, %cst_7 {dimension_numbers = #tpu.dot_dimension_numbers<[1], [0], [0], [1], [0, 0, 1, 1], [], []>} : vector<4x8xf32>, vector<8x128xf32>, vector<4x128xf32> -> vector<4x128xf32>
    %16 = arith.addf %13, %15 : vector<4x128xf32>
    %c0_8 = arith.constant 0 : index
    %c0_9 = arith.constant 0 : index
    %17 = vector.load %arg4[%c0_8, %c0_9] : memref<1x128xf32, #tpu.memory_space<vmem>>, vector<1x128xf32>
    %18 = vector.broadcast %17 : vector<1x128xf32> to vector<4x128xf32>
    %19 = arith.addf %16, %18 : vector<4x128xf32>
    %cst_10 = arith.constant 0.000000e+00 : f32
    %20 = vector.broadcast %cst_10 : f32 to vector<4x128xf32>
    %21 = arith.cmpf ogt, %19, %20 : vector<4x128xf32>
    %cst_11 = arith.constant 2.000000e-01 : f32
    %22 = vector.broadcast %cst_11 : f32 to vector<4x128xf32>
    %23 = arith.mulf %22, %19 : vector<4x128xf32>
    %24 = arith.select %21, %19, %23 : vector<4x128xi1>, vector<4x128xf32>
    %25 = arith.truncf %24 : vector<4x128xf32> to vector<4x128xbf16>
    %c0_12 = arith.constant 0 : index
    %c0_13 = arith.constant 0 : index
    %26 = vector.load %arg5[%c0_12, %c0_13] : memref<128x256xbf16, #tpu.memory_space<vmem>>, vector<128x256xbf16>
    %cst_14 = arith.constant dense<0.000000e+00> : vector<4x256xf32>
    %27 = tpu.matmul %25, %26, %cst_14 {dimension_numbers = #tpu.dot_dimension_numbers<[1], [0], [0], [1], [0, 0, 1, 1], [], []>} : vector<4x128xbf16>, vector<128x256xbf16>, vector<4x256xf32> -> vector<4x256xf32>
    %c0_15 = arith.constant 0 : index
    %c0_16 = arith.constant 0 : index
    %28 = vector.load %arg6[%c0_15, %c0_16] : memref<1x256xf32, #tpu.memory_space<vmem>>, vector<1x256xf32>
    %c0_17 = arith.constant 0 : index
    %c0_18 = arith.constant 0 : index
    %29 = vector.load %arg7[%c0_17, %c0_18] : memref<1x256xf32, #tpu.memory_space<vmem>>, vector<1x256xf32>
    %cst_19 = arith.constant dense<0.000000e+00> : vector<256xf32>
    %30 = vector.multi_reduction <add>, %27, %cst_19 [0] : vector<4x256xf32> to vector<256xf32>
    %31 = vector.shape_cast %30 : vector<256xf32> to vector<1x256xf32>
    %cst_20 = arith.constant 2.500000e-01 : f32
    %32 = vector.broadcast %cst_20 : f32 to vector<1x256xf32>
    %33 = arith.mulf %31, %32 : vector<1x256xf32>
    %34 = arith.mulf %27, %27 : vector<4x256xf32>
    %cst_21 = arith.constant dense<0.000000e+00> : vector<256xf32>
    %35 = vector.multi_reduction <add>, %34, %cst_21 [0] : vector<4x256xf32> to vector<256xf32>
    %36 = vector.shape_cast %35 : vector<256xf32> to vector<1x256xf32>
    %cst_22 = arith.constant 2.500000e-01 : f32
    %37 = vector.broadcast %cst_22 : f32 to vector<1x256xf32>
    %38 = arith.mulf %36, %37 : vector<1x256xf32>
    %39 = arith.mulf %33, %33 : vector<1x256xf32>
    %40 = arith.subf %38, %39 : vector<1x256xf32>
    %cst_23 = arith.constant 0.000000e+00 : f32
    %41 = vector.broadcast %cst_23 : f32 to vector<1x256xf32>
    %42 = arith.maximumf %40, %41 : vector<1x256xf32>
    %cst_24 = arith.constant 8.000000e-01 : f32
    %43 = vector.broadcast %cst_24 : f32 to vector<1x256xf32>
    %44 = arith.addf %42, %43 : vector<1x256xf32>
    %45 = math.rsqrt %44 : vector<1x256xf32>
    %46 = arith.mulf %28, %45 : vector<1x256xf32>
    %47 = arith.mulf %33, %46 : vector<1x256xf32>
    %48 = arith.subf %29, %47 : vector<1x256xf32>
    %49 = vector.broadcast %46 : vector<1x256xf32> to vector<4x256xf32>
    %50 = arith.mulf %27, %49 : vector<4x256xf32>
    %51 = vector.broadcast %48 : vector<1x256xf32> to vector<4x256xf32>
    %52 = arith.addf %50, %51 : vector<4x256xf32>
    %cst_25 = arith.constant 0.000000e+00 : f32
    %53 = vector.broadcast %cst_25 : f32 to vector<4x256xf32>
    %54 = arith.cmpf ogt, %52, %53 : vector<4x256xf32>
    %cst_26 = arith.constant 2.000000e-01 : f32
    %55 = vector.broadcast %cst_26 : f32 to vector<4x256xf32>
    %56 = arith.mulf %55, %52 : vector<4x256xf32>
    %57 = arith.select %54, %52, %56 : vector<4x256xi1>, vector<4x256xf32>
    %58 = arith.truncf %57 : vector<4x256xf32> to vector<4x256xbf16>
    %c0_27 = arith.constant 0 : index
    %c0_28 = arith.constant 0 : index
    %59 = vector.load %arg8[%c0_27, %c0_28] : memref<256x512xbf16, #tpu.memory_space<vmem>>, vector<256x512xbf16>
    %cst_29 = arith.constant dense<0.000000e+00> : vector<4x512xf32>
    %60 = tpu.matmul %58, %59, %cst_29 {dimension_numbers = #tpu.dot_dimension_numbers<[1], [0], [0], [1], [0, 0, 1, 1], [], []>} : vector<4x256xbf16>, vector<256x512xbf16>, vector<4x512xf32> -> vector<4x512xf32>
    %c0_30 = arith.constant 0 : index
    %c0_31 = arith.constant 0 : index
    %61 = vector.load %arg9[%c0_30, %c0_31] : memref<1x512xf32, #tpu.memory_space<vmem>>, vector<1x512xf32>
    %c0_32 = arith.constant 0 : index
    %c0_33 = arith.constant 0 : index
    %62 = vector.load %arg10[%c0_32, %c0_33] : memref<1x512xf32, #tpu.memory_space<vmem>>, vector<1x512xf32>
    %cst_34 = arith.constant dense<0.000000e+00> : vector<512xf32>
    %63 = vector.multi_reduction <add>, %60, %cst_34 [0] : vector<4x512xf32> to vector<512xf32>
    %64 = vector.shape_cast %63 : vector<512xf32> to vector<1x512xf32>
    %cst_35 = arith.constant 2.500000e-01 : f32
    %65 = vector.broadcast %cst_35 : f32 to vector<1x512xf32>
    %66 = arith.mulf %64, %65 : vector<1x512xf32>
    %67 = arith.mulf %60, %60 : vector<4x512xf32>
    %cst_36 = arith.constant dense<0.000000e+00> : vector<512xf32>
    %68 = vector.multi_reduction <add>, %67, %cst_36 [0] : vector<4x512xf32> to vector<512xf32>
    %69 = vector.shape_cast %68 : vector<512xf32> to vector<1x512xf32>
    %cst_37 = arith.constant 2.500000e-01 : f32
    %70 = vector.broadcast %cst_37 : f32 to vector<1x512xf32>
    %71 = arith.mulf %69, %70 : vector<1x512xf32>
    %72 = arith.mulf %66, %66 : vector<1x512xf32>
    %73 = arith.subf %71, %72 : vector<1x512xf32>
    %cst_38 = arith.constant 0.000000e+00 : f32
    %74 = vector.broadcast %cst_38 : f32 to vector<1x512xf32>
    %75 = arith.maximumf %73, %74 : vector<1x512xf32>
    %cst_39 = arith.constant 8.000000e-01 : f32
    %76 = vector.broadcast %cst_39 : f32 to vector<1x512xf32>
    %77 = arith.addf %75, %76 : vector<1x512xf32>
    %78 = math.rsqrt %77 : vector<1x512xf32>
    %79 = arith.mulf %61, %78 : vector<1x512xf32>
    %80 = arith.mulf %66, %79 : vector<1x512xf32>
    %81 = arith.subf %62, %80 : vector<1x512xf32>
    %82 = vector.broadcast %79 : vector<1x512xf32> to vector<4x512xf32>
    %83 = arith.mulf %60, %82 : vector<4x512xf32>
    %84 = vector.broadcast %81 : vector<1x512xf32> to vector<4x512xf32>
    %85 = arith.addf %83, %84 : vector<4x512xf32>
    %cst_40 = arith.constant 0.000000e+00 : f32
    %86 = vector.broadcast %cst_40 : f32 to vector<4x512xf32>
    %87 = arith.cmpf ogt, %85, %86 : vector<4x512xf32>
    %cst_41 = arith.constant 2.000000e-01 : f32
    %88 = vector.broadcast %cst_41 : f32 to vector<4x512xf32>
    %89 = arith.mulf %88, %85 : vector<4x512xf32>
    %90 = arith.select %87, %85, %89 : vector<4x512xi1>, vector<4x512xf32>
    %c0_i32_42 = arith.constant 0 : i32
    %91 = tpu.memref_slice %arg19[%c0_i32_42] : memref<2x!tpu.dma_semaphore, #tpu.memory_space<semaphore_mem>> -> memref<1x!tpu.dma_semaphore, #tpu.memory_space<semaphore_mem>>
    %92 = tpu.memref_squeeze %91 : memref<1x!tpu.dma_semaphore, #tpu.memory_space<semaphore_mem>> -> memref<!tpu.dma_semaphore, #tpu.memory_space<semaphore_mem>>
    tpu.wait_dma2 semaphore(%92 : memref<!tpu.dma_semaphore, #tpu.memory_space<semaphore_mem>>) src(%arg11 : memref<512x1024xbf16, #tpu.memory_space<any>>) dst(%arg17 : memref<512x1024xbf16, #tpu.memory_space<vmem>>)
    %93 = arith.truncf %90 : vector<4x512xf32> to vector<4x512xbf16>
    %c0_43 = arith.constant 0 : index
    %c0_44 = arith.constant 0 : index
    %94 = vector.load %arg17[%c0_43, %c0_44] : memref<512x1024xbf16, #tpu.memory_space<vmem>>, vector<512x1024xbf16>
    %cst_45 = arith.constant dense<0.000000e+00> : vector<4x1024xf32>
    %95 = tpu.matmul %93, %94, %cst_45 {dimension_numbers = #tpu.dot_dimension_numbers<[1], [0], [0], [1], [0, 0, 1, 1], [], []>} : vector<4x512xbf16>, vector<512x1024xbf16>, vector<4x1024xf32> -> vector<4x1024xf32>
    %c0_46 = arith.constant 0 : index
    %c0_47 = arith.constant 0 : index
    %96 = vector.load %arg12[%c0_46, %c0_47] : memref<1x1024xf32, #tpu.memory_space<vmem>>, vector<1x1024xf32>
    %c0_48 = arith.constant 0 : index
    %c0_49 = arith.constant 0 : index
    %97 = vector.load %arg13[%c0_48, %c0_49] : memref<1x1024xf32, #tpu.memory_space<vmem>>, vector<1x1024xf32>
    %cst_50 = arith.constant dense<0.000000e+00> : vector<1024xf32>
    %98 = vector.multi_reduction <add>, %95, %cst_50 [0] : vector<4x1024xf32> to vector<1024xf32>
    %99 = vector.shape_cast %98 : vector<1024xf32> to vector<1x1024xf32>
    %cst_51 = arith.constant 2.500000e-01 : f32
    %100 = vector.broadcast %cst_51 : f32 to vector<1x1024xf32>
    %101 = arith.mulf %99, %100 : vector<1x1024xf32>
    %102 = arith.mulf %95, %95 : vector<4x1024xf32>
    %cst_52 = arith.constant dense<0.000000e+00> : vector<1024xf32>
    %103 = vector.multi_reduction <add>, %102, %cst_52 [0] : vector<4x1024xf32> to vector<1024xf32>
    %104 = vector.shape_cast %103 : vector<1024xf32> to vector<1x1024xf32>
    %cst_53 = arith.constant 2.500000e-01 : f32
    %105 = vector.broadcast %cst_53 : f32 to vector<1x1024xf32>
    %106 = arith.mulf %104, %105 : vector<1x1024xf32>
    %107 = arith.mulf %101, %101 : vector<1x1024xf32>
    %108 = arith.subf %106, %107 : vector<1x1024xf32>
    %cst_54 = arith.constant 0.000000e+00 : f32
    %109 = vector.broadcast %cst_54 : f32 to vector<1x1024xf32>
    %110 = arith.maximumf %108, %109 : vector<1x1024xf32>
    %cst_55 = arith.constant 8.000000e-01 : f32
    %111 = vector.broadcast %cst_55 : f32 to vector<1x1024xf32>
    %112 = arith.addf %110, %111 : vector<1x1024xf32>
    %113 = math.rsqrt %112 : vector<1x1024xf32>
    %114 = arith.mulf %96, %113 : vector<1x1024xf32>
    %115 = arith.mulf %101, %114 : vector<1x1024xf32>
    %116 = arith.subf %97, %115 : vector<1x1024xf32>
    %117 = vector.broadcast %114 : vector<1x1024xf32> to vector<4x1024xf32>
    %118 = arith.mulf %95, %117 : vector<4x1024xf32>
    %119 = vector.broadcast %116 : vector<1x1024xf32> to vector<4x1024xf32>
    %120 = arith.addf %118, %119 : vector<4x1024xf32>
    %cst_56 = arith.constant 0.000000e+00 : f32
    %121 = vector.broadcast %cst_56 : f32 to vector<4x1024xf32>
    %122 = arith.cmpf ogt, %120, %121 : vector<4x1024xf32>
    %cst_57 = arith.constant 2.000000e-01 : f32
    %123 = vector.broadcast %cst_57 : f32 to vector<4x1024xf32>
    %124 = arith.mulf %123, %120 : vector<4x1024xf32>
    %125 = arith.select %122, %120, %124 : vector<4x1024xi1>, vector<4x1024xf32>
    %c1_i32_58 = arith.constant 1 : i32
    %126 = tpu.memref_slice %arg19[%c1_i32_58] : memref<2x!tpu.dma_semaphore, #tpu.memory_space<semaphore_mem>> -> memref<1x!tpu.dma_semaphore, #tpu.memory_space<semaphore_mem>>
    %127 = tpu.memref_squeeze %126 : memref<1x!tpu.dma_semaphore, #tpu.memory_space<semaphore_mem>> -> memref<!tpu.dma_semaphore, #tpu.memory_space<semaphore_mem>>
    tpu.wait_dma2 semaphore(%127 : memref<!tpu.dma_semaphore, #tpu.memory_space<semaphore_mem>>) src(%arg14 : memref<1024x256xbf16, #tpu.memory_space<any>>) dst(%arg18 : memref<1024x256xbf16, #tpu.memory_space<vmem>>)
    %128 = arith.truncf %125 : vector<4x1024xf32> to vector<4x1024xbf16>
    %c0_59 = arith.constant 0 : index
    %c0_60 = arith.constant 0 : index
    %129 = vector.load %arg18[%c0_59, %c0_60] : memref<1024x256xbf16, #tpu.memory_space<vmem>>, vector<1024x256xbf16>
    %cst_61 = arith.constant dense<0.000000e+00> : vector<4x256xf32>
    %130 = tpu.matmul %128, %129, %cst_61 {dimension_numbers = #tpu.dot_dimension_numbers<[1], [0], [0], [1], [0, 0, 1, 1], [], []>} : vector<4x1024xbf16>, vector<1024x256xbf16>, vector<4x256xf32> -> vector<4x256xf32>
    %c0_62 = arith.constant 0 : index
    %c0_63 = arith.constant 0 : index
    %131 = vector.load %arg15[%c0_62, %c0_63] : memref<1x256xf32, #tpu.memory_space<vmem>>, vector<1x256xf32>
    %132 = vector.broadcast %131 : vector<1x256xf32> to vector<4x256xf32>
    %133 = arith.addf %130, %132 : vector<4x256xf32>
    %134 = math.tanh %133 : vector<4x256xf32>
    %c0_64 = arith.constant 0 : index
    %c0_65 = arith.constant 0 : index
    %135 = vector.load %arg16[%c0_64, %c0_65] : memref<4x256xf32, #tpu.memory_space<vmem>>, vector<4x256xf32>
    tpu.vector_store %arg16[%c0_64, %c0_65], %134 {strides = array<i32>} : memref<4x256xf32, #tpu.memory_space<vmem>>, vector<4x256xf32>,
    return
  }
}

</mosaic_0001>

<bundles_post_ra>
// kernel: generator_forward.1
= control target key start
LH: loop header
LB: loop body
LE: loop exit
PB: predicated region body
PF: predicated region fallthrough
CT: control target
= control target key end

     0   :  { %s9744_s0 = inlined_call_operand.vmem [shape: s32[4,1], index: 0, kind: input, shape index: {}]   ;;  %s9745_s1 = inlined_call_operand.vmem [shape: f32[4,32], index: 1, kind: input, shape index: {}]   ;;  %s9746_s2 = inlined_call_operand.vmem [shape: f32[8,128], index: 2, kind: input, shape index: {}]   ;;  %s9747_s3 = inlined_call_operand.vmem [shape: bf16[32,128], index: 3, kind: input, shape index: {}]   ;;  %s9748_s4 = inlined_call_operand.vmem [shape: f32[1,128], index: 4, kind: input, shape index: {}]   ;;  %s9749_s5 = inlined_call_operand.vmem [shape: bf16[128,256], index: 5, kind: input, shape index: {}]   ;;  %s9750_s6 = inlined_call_operand.vmem [shape: f32[1,256], index: 6, kind: input, shape index: {}]   ;;  %s9751_s7 = inlined_call_operand.vmem [shape: f32[1,256], index: 7, kind: input, shape index: {}]   ;;  %s9752_s8 = inlined_call_operand.vmem [shape: bf16[256,512], index: 8, kind: input, shape index: {}]   ;;  %s9753_s9 = inlined_call_operand.vmem [shape: f32[1,512], index: 9, kind: input, shape index: {}]   ;;  %s9754_s10 = inlined_call_operand.vmem [shape: f32[1,512], index: 10, kind: input, shape index: {}]   ;;  %s9755_s11 = inlined_call_operand.vmem [shape: bf16[512,1024], index: 11, kind: input, shape index: {}]   ;;  %s9756_s12 = inlined_call_operand.vmem [shape: f32[1,1024], index: 12, kind: input, shape index: {}]   ;;  %s9757_s13 = inlined_call_operand.vmem [shape: f32[1,1024], index: 13, kind: input, shape index: {}]   ;;  %s9758_s14 = inlined_call_operand.vmem [shape: bf16[1024,256], index: 14, kind: input, shape index: {}]   ;;  %s9759_s15 = inlined_call_operand.vmem [shape: f32[1,256], index: 15, kind: input, shape index: {}]   ;;  %s9760_s16 = inlined_call_operand.vmem [shape: f32[4,256], index: 16, kind: output, shape index: {}]  }
   0x1   :  { %9761 = sst [smem:[#allocation9_spill]] %s9744_s0  ;;  %v60_v0 = vld [vmem:[%s9755_s11] sm:$0xff]  ;;  %v62_v1 = vld [vmem:[%s9755_s11 + $0x8] sm:$0xff]  ;;  %v64_v2 = vld [vmem:[%s9755_s11 + $0x10] sm:$0xff] }
   0x2   :  { %61 = vst [vmem:[#allocation2] sm:$0xff] %v60_v0  ;;  %v66_v3 = vld [vmem:[%s9755_s11 + $0x18] sm:$0xff]  ;;  %v68_v4 = vld [vmem:[%s9755_s11 + $0x20] sm:$0xff]  ;;  %v70_v5 = vld [vmem:[%s9755_s11 + $0x28] sm:$0xff] }
   0x3   :  { %63 = vst [vmem:[#allocation2 + $0x8] sm:$0xff] %v62_v1  ;;  %v72_v6 = vld [vmem:[%s9755_s11 + $0x30] sm:$0xff]  ;;  %v74_v7 = vld [vmem:[%s9755_s11 + $0x38] sm:$0xff]  ;;  %v76_v8 = vld [vmem:[%s9755_s11 + $0x40] sm:$0xff] }
   0x4   :  { %65 = vst [vmem:[#allocation2 + $0x10] sm:$0xff] %v64_v2  ;;  %v78_v9 = vld [vmem:[%s9755_s11 + $0x48] sm:$0xff]  ;;  %v80_v10 = vld [vmem:[%s9755_s11 + $0x50] sm:$0xff]  ;;  %v82_v11 = vld [vmem:[%s9755_s11 + $0x58] sm:$0xff] }
   0x5   :  { %67 = vst [vmem:[#allocation2 + $0x18] sm:$0xff] %v66_v3  ;;  %v84_v12 = vld [vmem:[%s9755_s11 + $0x60] sm:$0xff]  ;;  %v86_v13 = vld [vmem:[%s9755_s11 + $0x68] sm:$0xff]  ;;  %v88_v14 = vld [vmem:[%s9755_s11 + $0x70] sm:$0xff] }
   0x6   :  { %69 = vst [vmem:[#allocation2 + $0x20] sm:$0xff] %v68_v4  ;;  %v90_v15 = vld [vmem:[%s9755_s11 + $0x78] sm:$0xff]  ;;  %v92_v16 = vld [vmem:[%s9755_s11 + $0x80] sm:$0xff]  ;;  %v94_v17 = vld [vmem:[%s9755_s11 + $0x88] sm:$0xff] }
   0x7   :  { %71 = vst [vmem:[#allocation2 + $0x28] sm:$0xff] %v70_v5  ;;  %v96_v18 = vld [vmem:[%s9755_s11 + $0x90] sm:$0xff]  ;;  %v98_v19 = vld [vmem:[%s9755_s11 + $0x98] sm:$0xff]  ;;  %v100_v20 = vld [vmem:[%s9755_s11 + $0xa0] sm:$0xff] }
   0x8   :  { %73 = vst [vmem:[#allocation2 + $0x30] sm:$0xff] %v72_v6  ;;  %v102_v21 = vld [vmem:[%s9755_s11 + $0xa8] sm:$0xff]  ;;  %v104_v22 = vld [vmem:[%s9755_s11 + $0xb0] sm:$0xff]  ;;  %v106_v23 = vld [vmem:[%s9755_s11 + $0xb8] sm:$0xff] }
   0x9   :  { %75 = vst [vmem:[#allocation2 + $0x38] sm:$0xff] %v74_v7  ;;  %v108_v24 = vld [vmem:[%s9755_s11 + $0xc0] sm:$0xff]  ;;  %v110_v25 = vld [vmem:[%s9755_s11 + $0xc8] sm:$0xff]  ;;  %v112_v26 = vld [vmem:[%s9755_s11 + $0xd0] sm:$0xff] }
   0xa   :  { %77 = vst [vmem:[#allocation2 + $0x40] sm:$0xff] %v76_v8  ;;  %v114_v27 = vld [vmem:[%s9755_s11 + $0xd8] sm:$0xff]  ;;  %v116_v28 = vld [vmem:[%s9755_s11 + $0xe0] sm:$0xff]  ;;  %v118_v29 = vld [vmem:[%s9755_s11 + $0xe8] sm:$0xff] }
   0xb   :  { %79 = vst [vmem:[#allocation2 + $0x48] sm:$0xff] %v78_v9  ;;  %v120_v30 = vld [vmem:[%s9755_s11 + $0xf0] sm:$0xff]  ;;  %v122_v31 = vld [vmem:[%s9755_s11 + $0xf8] sm:$0xff]  ;;  %v124_v32 = vld [vmem:[%s9755_s11 + $0x100] sm:$0xff] }
   0xc   :  { %81 = vst [vmem:[#allocation2 + $0x50] sm:$0xff] %v80_v10  ;;  %v126_v33 = vld [vmem:[%s9755_s11 + $0x108] sm:$0xff]  ;;  %v128_v34 = vld [vmem:[%s9755_s11 + $0x110] sm:$0xff]  ;;  %v130_v35 = vld [vmem:[%s9755_s11 + $0x118] sm:$0xff] }
   0xd   :  { %83 = vst [vmem:[#allocation2 + $0x58] sm:$0xff] %v82_v11  ;;  %v132_v36 = vld [vmem:[%s9755_s11 + $0x120] sm:$0xff]  ;;  %v134_v37 = vld [vmem:[%s9755_s11 + $0x128] sm:$0xff]  ;;  %v136_v38 = vld [vmem:[%s9755_s11 + $0x130] sm:$0xff] }
   0xe   :  { %85 = vst [vmem:[#allocation2 + $0x60] sm:$0xff] %v84_v12  ;;  %v138_v39 = vld [vmem:[%s9755_s11 + $0x138] sm:$0xff]  ;;  %v140_v40 = vld [vmem:[%s9755_s11 + $0x140] sm:$0xff]  ;;  %v142_v41 = vld [vmem:[%s9755_s11 + $0x148] sm:$0xff] }
   0xf   :  { %87 = vst [vmem:[#allocation2 + $0x68] sm:$0xff] %v86_v13  ;;  %v144_v42 = vld [vmem:[%s9755_s11 + $0x150] sm:$0xff]  ;;  %v146_v43 = vld [vmem:[%s9755_s11 + $0x158] sm:$0xff]  ;;  %v148_v44 = vld [vmem:[%s9755_s11 + $0x160] sm:$0xff] }
  0x10   :  { %89 = vst [vmem:[#allocation2 + $0x70] sm:$0xff] %v88_v14  ;;  %v150_v45 = vld [vmem:[%s9755_s11 + $0x168] sm:$0xff]  ;;  %v152_v46 = vld [vmem:[%s9755_s11 + $0x170] sm:$0xff]  ;;  %v154_v47 = vld [vmem:[%s9755_s11 + $0x178] sm:$0xff] }
  0x11   :  { %91 = vst [vmem:[#allocation2 + $0x78] sm:$0xff] %v90_v15  ;;  %v156_v48 = vld [vmem:[%s9755_s11 + $0x180] sm:$0xff]  ;;  %v158_v49 = vld [vmem:[%s9755_s11 + $0x188] sm:$0xff]  ;;  %v160_v50 = vld [vmem:[%s9755_s11 + $0x190] sm:$0xff] }
  0x12   :  { %93 = vst [vmem:[#allocation2 + $0x80] sm:$0xff] %v92_v16  ;;  %v162_v51 = vld [vmem:[%s9755_s11 + $0x198] sm:$0xff]  ;;  %v164_v52 = vld [vmem:[%s9755_s11 + $0x1a0] sm:$0xff]  ;;  %v166_v53 = vld [vmem:[%s9755_s11 + $0x1a8] sm:$0xff] }
  0x13   :  { %95 = vst [vmem:[#allocation2 + $0x88] sm:$0xff] %v94_v17  ;;  %v168_v54 = vld [vmem:[%s9755_s11 + $0x1b0] sm:$0xff]  ;;  %v170_v55 = vld [vmem:[%s9755_s11 + $0x1b8] sm:$0xff]  ;;  %v172_v56 = vld [vmem:[%s9755_s11 + $0x1c0] sm:$0xff] }
  0x14   :  { %97 = vst [vmem:[#allocation2 + $0x90] sm:$0xff] %v96_v18  ;;  %v174_v57 = vld [vmem:[%s9755_s11 + $0x1c8] sm:$0xff]  ;;  %v176_v58 = vld [vmem:[%s9755_s11 + $0x1d0] sm:$0xff]  ;;  %v178_v59 = vld [vmem:[%s9755_s11 + $0x1d8] sm:$0xff] }
  0x15   :  { %99 = vst [vmem:[#allocation2 + $0x98] sm:$0xff] %v98_v19  ;;  %v180_v60 = vld [vmem:[%s9755_s11 + $0x1e0] sm:$0xff]  ;;  %v182_v61 = vld [vmem:[%s9755_s11 + $0x1e8] sm:$0xff]  ;;  %v184_v62 = vld [vmem:[%s9755_s11 + $0x1f0] sm:$0xff] }
  0x16   :  { %101 = vst [vmem:[#allocation2 + $0xa0] sm:$0xff] %v100_v20  ;;  %v186_v63 = vld [vmem:[%s9755_s11 + $0x1f8] sm:$0xff]  ;;  %v188_v0 = vld [vmem:[%s9755_s11 + $0x200] sm:$0xff]  ;;  %v190_v1 = vld [vmem:[%s9755_s11 + $0x208] sm:$0xff] }
  0x17   :  { %103 = vst [vmem:[#allocation2 + $0xa8] sm:$0xff] %v102_v21  ;;  %v192_v2 = vld [vmem:[%s9755_s11 + $0x210] sm:$0xff]  ;;  %v194_v3 = vld [vmem:[%s9755_s11 + $0x218] sm:$0xff]  ;;  %v196_v4 = vld [vmem:[%s9755_s11 + $0x220] sm:$0xff] }
  0x18   :  { %105 = vst [vmem:[#allocation2 + $0xb0] sm:$0xff] %v104_v22  ;;  %v198_v5 = vld [vmem:[%s9755_s11 + $0x228] sm:$0xff]  ;;  %v200_v6 = vld [vmem:[%s9755_s11 + $0x230] sm:$0xff]  ;;  %v202_v7 = vld [vmem:[%s9755_s11 + $0x238] sm:$0xff] }
  0x19   :  { %107 = vst [vmem:[#allocation2 + $0xb8] sm:$0xff] %v106_v23  ;;  %v204_v8 = vld [vmem:[%s9755_s11 + $0x240] sm:$0xff]  ;;  %v206_v9 = vld [vmem:[%s9755_s11 + $0x248] sm:$0xff]  ;;  %v208_v10 = vld [vmem:[%s9755_s11 + $0x250] sm:$0xff] }
  0x1a   :  { %109 = vst [vmem:[#allocation2 + $0xc0] sm:$0xff] %v108_v24  ;;  %v210_v11 = vld [vmem:[%s9755_s11 + $0x258] sm:$0xff]  ;;  %v212_v12 = vld [vmem:[%s9755_s11 + $0x260] sm:$0xff]  ;;  %v214_v13 = vld [vmem:[%s9755_s11 + $0x268] sm:$0xff] }
  0x1b   :  { %111 = vst [vmem:[#allocation2 + $0xc8] sm:$0xff] %v110_v25  ;;  %v216_v14 = vld [vmem:[%s9755_s11 + $0x270] sm:$0xff]  ;;  %v218_v15 = vld [vmem:[%s9755_s11 + $0x278] sm:$0xff]  ;;  %v220_v16 = vld [vmem:[%s9755_s11 + $0x280] sm:$0xff] }
  0x1c   :  { %113 = vst [vmem:[#allocation2 + $0xd0] sm:$0xff] %v112_v26  ;;  %v222_v17 = vld [vmem:[%s9755_s11 + $0x288] sm:$0xff]  ;;  %v224_v18 = vld [vmem:[%s9755_s11 + $0x290] sm:$0xff]  ;;  %v226_v19 = vld [vmem:[%s9755_s11 + $0x298] sm:$0xff] }
  0x1d   :  { %115 = vst [vmem:[#allocation2 + $0xd8] sm:$0xff] %v114_v27  ;;  %v228_v20 = vld [vmem:[%s9755_s11 + $0x2a0] sm:$0xff]  ;;  %v230_v21 = vld [vmem:[%s9755_s11 + $0x2a8] sm:$0xff]  ;;  %v232_v22 = vld [vmem:[%s9755_s11 + $0x2b0] sm:$0xff] }
  0x1e   :  { %117 = vst [vmem:[#allocation2 + $0xe0] sm:$0xff] %v116_v28  ;;  %v234_v23 = vld [vmem:[%s9755_s11 + $0x2b8] sm:$0xff]  ;;  %v236_v24 = vld [vmem:[%s9755_s11 + $0x2c0] sm:$0xff]  ;;  %v238_v25 = vld [vmem:[%s9755_s11 + $0x2c8] sm:$0xff] }
  0x1f   :  { %119 = vst [vmem:[#allocation2 + $0xe8] sm:$0xff] %v118_v29  ;;  %v240_v26 = vld [vmem:[%s9755_s11 + $0x2d0] sm:$0xff]  ;;  %v242_v27 = vld [vmem:[%s9755_s11 + $0x2d8] sm:$0xff]  ;;  %v244_v28 = vld [vmem:[%s9755_s11 + $0x2e0] sm:$0xff] }
  0x20   :  { %121 = vst [vmem:[#allocation2 + $0xf0] sm:$0xff] %v120_v30  ;;  %v246_v29 = vld [vmem:[%s9755_s11 + $0x2e8] sm:$0xff]  ;;  %v248_v30 = vld [vmem:[%s9755_s11 + $0x2f0] sm:$0xff] }
  0x21   :  { %123 = vst [vmem:[#allocation2 + $0xf8] sm:$0xff] %v122_v31  ;;  %v250_v31 = vld [vmem:[%s9755_s11 + $0x2f8] sm:$0xff] }
  0x22   :  { %125 = vst [vmem:[#allocation2 + $0x100] sm:$0xff] %v124_v32  ;;  %v252_v32 = vld [vmem:[%s9755_s11 + $0x300] sm:$0xff] }
  0x23   :  { %127 = vst [vmem:[#allocation2 + $0x108] sm:$0xff] %v126_v33  ;;  %v254_v33 = vld [vmem:[%s9755_s11 + $0x308] sm:$0xff] }
  0x24   :  { %129 = vst [vmem:[#allocation2 + $0x110] sm:$0xff] %v128_v34  ;;  %v256_v34 = vld [vmem:[%s9755_s11 + $0x310] sm:$0xff] }
  0x25   :  { %131 = vst [vmem:[#allocation2 + $0x118] sm:$0xff] %v130_v35  ;;  %v258_v35 = vld [vmem:[%s9755_s11 + $0x318] sm:$0xff] }
  0x26   :  { %133 = vst [vmem:[#allocation2 + $0x120] sm:$0xff] %v132_v36  ;;  %v260_v36 = vld [vmem:[%s9755_s11 + $0x320] sm:$0xff] }
  0x27   :  { %135 = vst [vmem:[#allocation2 + $0x128] sm:$0xff] %v134_v37  ;;  %v262_v37 = vld [vmem:[%s9755_s11 + $0x328] sm:$0xff] }
  0x28   :  { %137 = vst [vmem:[#allocation2 + $0x130] sm:$0xff] %v136_v38  ;;  %v264_v38 = vld [vmem:[%s9755_s11 + $0x330] sm:$0xff] }
  0x29   :  { %139 = vst [vmem:[#allocation2 + $0x138] sm:$0xff] %v138_v39  ;;  %v266_v39 = vld [vmem:[%s9755_s11 + $0x338] sm:$0xff] }
  0x2a   :  { %141 = vst [vmem:[#allocation2 + $0x140] sm:$0xff] %v140_v40  ;;  %v268_v40 = vld [vmem:[%s9755_s11 + $0x340] sm:$0xff] }
  0x2b   :  { %143 = vst [vmem:[#allocation2 + $0x148] sm:$0xff] %v142_v41  ;;  %v270_v41 = vld [vmem:[%s9755_s11 + $0x348] sm:$0xff] }
  0x2c   :  { %145 = vst [vmem:[#allocation2 + $0x150] sm:$0xff] %v144_v42  ;;  %v272_v42 = vld [vmem:[%s9755_s11 + $0x350] sm:$0xff] }
  0x2d   :  { %147 = vst [vmem:[#allocation2 + $0x158] sm:$0xff] %v146_v43  ;;  %v274_v43 = vld [vmem:[%s9755_s11 + $0x358] sm:$0xff] }
  0x2e   :  { %149 = vst [vmem:[#allocation2 + $0x160] sm:$0xff] %v148_v44  ;;  %v276_v44 = vld [vmem:[%s9755_s11 + $0x360] sm:$0xff] }
  0x2f   :  { %151 = vst [vmem:[#allocation2 + $0x168] sm:$0xff] %v150_v45  ;;  %v278_v45 = vld [vmem:[%s9755_s11 + $0x368] sm:$0xff] }
  0x30   :  { %153 = vst [vmem:[#allocation2 + $0x170] sm:$0xff] %v152_v46  ;;  %v280_v46 = vld [vmem:[%s9755_s11 + $0x370] sm:$0xff] }
  0x31   :  { %155 = vst [vmem:[#allocation2 + $0x178] sm:$0xff] %v154_v47  ;;  %v282_v47 = vld [vmem:[%s9755_s11 + $0x378] sm:$0xff] }
  0x32   :  { %157 = vst [vmem:[#allocation2 + $0x180] sm:$0xff] %v156_v48  ;;  %v284_v48 = vld [vmem:[%s9755_s11 + $0x380] sm:$0xff] }
  0x33   :  { %159 = vst [vmem:[#allocation2 + $0x188] sm:$0xff] %v158_v49  ;;  %v286_v49 = vld [vmem:[%s9755_s11 + $0x388] sm:$0xff] }
  0x34   :  { %161 = vst [vmem:[#allocation2 + $0x190] sm:$0xff] %v160_v50  ;;  %v288_v50 = vld [vmem:[%s9755_s11 + $0x390] sm:$0xff] }
  0x35   :  { %163 = vst [vmem:[#allocation2 + $0x198] sm:$0xff] %v162_v51  ;;  %v290_v51 = vld [vmem:[%s9755_s11 + $0x398] sm:$0xff] }
  0x36   :  { %165 = vst [vmem:[#allocation2 + $0x1a0] sm:$0xff] %v164_v52  ;;  %v292_v52 = vld [vmem:[%s9755_s11 + $0x3a0] sm:$0xff] }
  0x37   :  { %167 = vst [vmem:[#allocation2 + $0x1a8] sm:$0xff] %v166_v53  ;;  %v294_v53 = vld [vmem:[%s9755_s11 + $0x3a8] sm:$0xff] }
  0x38   :  { %169 = vst [vmem:[#allocation2 + $0x1b0] sm:$0xff] %v168_v54  ;;  %v296_v54 = vld [vmem:[%s9755_s11 + $0x3b0] sm:$0xff] }
  0x39   :  { %171 = vst [vmem:[#allocation2 + $0x1b8] sm:$0xff] %v170_v55  ;;  %v298_v55 = vld [vmem:[%s9755_s11 + $0x3b8] sm:$0xff] }
  0x3a   :  { %173 = vst [vmem:[#allocation2 + $0x1c0] sm:$0xff] %v172_v56  ;;  %v300_v56 = vld [vmem:[%s9755_s11 + $0x3c0] sm:$0xff] }
  0x3b   :  { %175 = vst [vmem:[#allocation2 + $0x1c8] sm:$0xff] %v174_v57  ;;  %v302_v57 = vld [vmem:[%s9755_s11 + $0x3c8] sm:$0xff] }
  0x3c   :  { %177 = vst [vmem:[#allocation2 + $0x1d0] sm:$0xff] %v176_v58  ;;  %v304_v58 = vld [vmem:[%s9755_s11 + $0x3d0] sm:$0xff] }
  0x3d   :  { %179 = vst [vmem:[#allocation2 + $0x1d8] sm:$0xff] %v178_v59  ;;  %v306_v59 = vld [vmem:[%s9755_s11 + $0x3d8] sm:$0xff] }
  0x3e   :  { %181 = vst [vmem:[#allocation2 + $0x1e0] sm:$0xff] %v180_v60  ;;  %v308_v60 = vld [vmem:[%s9755_s11 + $0x3e0] sm:$0xff] }
  0x3f   :  { %183 = vst [vmem:[#allocation2 + $0x1e8] sm:$0xff] %v182_v61  ;;  %v310_v61 = vld [vmem:[%s9755_s11 + $0x3e8] sm:$0xff] }
  0x40   :  { %185 = vst [vmem:[#allocation2 + $0x1f0] sm:$0xff] %v184_v62  ;;  %v312_v62 = vld [vmem:[%s9755_s11 + $0x3f0] sm:$0xff] }
  0x41   :  { %187 = vst [vmem:[#allocation2 + $0x1f8] sm:$0xff] %v186_v63  ;;  %v314_v63 = vld [vmem:[%s9755_s11 + $0x3f8] sm:$0xff] }
  0x42   :  { %189 = vst [vmem:[#allocation2 + $0x200] sm:$0xff] %v188_v0  ;;  %v316_v0 = vld [vmem:[%s9755_s11 + $0x400] sm:$0xff] }
  0x43   :  { %191 = vst [vmem:[#allocation2 + $0x208] sm:$0xff] %v190_v1  ;;  %v318_v1 = vld [vmem:[%s9755_s11 + $0x408] sm:$0xff] }
  0x44   :  { %193 = vst [vmem:[#allocation2 + $0x210] sm:$0xff] %v192_v2  ;;  %v320_v2 = vld [vmem:[%s9755_s11 + $0x410] sm:$0xff] }
  0x45   :  { %195 = vst [vmem:[#allocation2 + $0x218] sm:$0xff] %v194_v3  ;;  %v322_v3 = vld [vmem:[%s9755_s11 + $0x418] sm:$0xff] }
  0x46   :  { %197 = vst [vmem:[#allocation2 + $0x220] sm:$0xff] %v196_v4  ;;  %v324_v4 = vld [vmem:[%s9755_s11 + $0x420] sm:$0xff] }
  0x47   :  { %199 = vst [vmem:[#allocation2 + $0x228] sm:$0xff] %v198_v5  ;;  %v326_v5 = vld [vmem:[%s9755_s11 + $0x428] sm:$0xff] }
  0x48   :  { %201 = vst [vmem:[#allocation2 + $0x230] sm:$0xff] %v200_v6  ;;  %v328_v6 = vld [vmem:[%s9755_s11 + $0x430] sm:$0xff] }
  0x49   :  { %203 = vst [vmem:[#allocation2 + $0x238] sm:$0xff] %v202_v7  ;;  %v330_v7 = vld [vmem:[%s9755_s11 + $0x438] sm:$0xff] }
  0x4a   :  { %205 = vst [vmem:[#allocation2 + $0x240] sm:$0xff] %v204_v8  ;;  %v332_v8 = vld [vmem:[%s9755_s11 + $0x440] sm:$0xff] }
  0x4b   :  { %207 = vst [vmem:[#allocation2 + $0x248] sm:$0xff] %v206_v9  ;;  %v334_v9 = vld [vmem:[%s9755_s11 + $0x448] sm:$0xff] }
  0x4c   :  { %209 = vst [vmem:[#allocation2 + $0x250] sm:$0xff] %v208_v10  ;;  %v336_v10 = vld [vmem:[%s9755_s11 + $0x450] sm:$0xff] }
  0x4d   :  { %211 = vst [vmem:[#allocation2 + $0x258] sm:$0xff] %v210_v11  ;;  %v338_v11 = vld [vmem:[%s9755_s11 + $0x458] sm:$0xff] }
  0x4e   :  { %213 = vst [vmem:[#allocation2 + $0x260] sm:$0xff] %v212_v12  ;;  %v340_v12 = vld [vmem:[%s9755_s11 + $0x460] sm:$0xff] }
  0x4f   :  { %215 = vst [vmem:[#allocation2 + $0x268] sm:$0xff] %v214_v13  ;;  %v342_v13 = vld [vmem:[%s9755_s11 + $0x468] sm:$0xff] }
  0x50   :  { %217 = vst [vmem:[#allocation2 + $0x270] sm:$0xff] %v216_v14  ;;  %v344_v14 = vld [vmem:[%s9755_s11 + $0x470] sm:$0xff] }
  0x51   :  { %219 = vst [vmem:[#allocation2 + $0x278] sm:$0xff] %v218_v15  ;;  %v346_v15 = vld [vmem:[%s9755_s11 + $0x478] sm:$0xff] }
  0x52   :  { %221 = vst [vmem:[#allocation2 + $0x280] sm:$0xff] %v220_v16  ;;  %v348_v16 = vld [vmem:[%s9755_s11 + $0x480] sm:$0xff] }
  0x53   :  { %223 = vst [vmem:[#allocation2 + $0x288] sm:$0xff] %v222_v17  ;;  %v350_v17 = vld [vmem:[%s9755_s11 + $0x488] sm:$0xff] }
  0x54   :  { %225 = vst [vmem:[#allocation2 + $0x290] sm:$0xff] %v224_v18  ;;  %v352_v18 = vld [vmem:[%s9755_s11 + $0x490] sm:$0xff] }
  0x55   :  { %227 = vst [vmem:[#allocation2 + $0x298] sm:$0xff] %v226_v19  ;;  %v354_v19 = vld [vmem:[%s9755_s11 + $0x498] sm:$0xff] }
  0x56   :  { %229 = vst [vmem:[#allocation2 + $0x2a0] sm:$0xff] %v228_v20  ;;  %v356_v20 = vld [vmem:[%s9755_s11 + $0x4a0] sm:$0xff] }
  0x57   :  { %231 = vst [vmem:[#allocation2 + $0x2a8] sm:$0xff] %v230_v21  ;;  %v358_v21 = vld [vmem:[%s9755_s11 + $0x4a8] sm:$0xff] }
  0x58   :  { %233 = vst [vmem:[#allocation2 + $0x2b0] sm:$0xff] %v232_v22  ;;  %v360_v22 = vld [vmem:[%s9755_s11 + $0x4b0] sm:$0xff] }
  0x59   :  { %235 = vst [vmem:[#allocation2 + $0x2b8] sm:$0xff] %v234_v23  ;;  %v362_v23 = vld [vmem:[%s9755_s11 + $0x4b8] sm:$0xff] }
  0x5a   :  { %237 = vst [vmem:[#allocation2 + $0x2c0] sm:$0xff] %v236_v24  ;;  %v364_v24 = vld [vmem:[%s9755_s11 + $0x4c0] sm:$0xff] }
  0x5b   :  { %239 = vst [vmem:[#allocation2 + $0x2c8] sm:$0xff] %v238_v25  ;;  %v366_v25 = vld [vmem:[%s9755_s11 + $0x4c8] sm:$0xff] }
  0x5c   :  { %241 = vst [vmem:[#allocation2 + $0x2d0] sm:$0xff] %v240_v26  ;;  %v368_v26 = vld [vmem:[%s9755_s11 + $0x4d0] sm:$0xff] }
  0x5d   :  { %243 = vst [vmem:[#allocation2 + $0x2d8] sm:$0xff] %v242_v27  ;;  %v370_v27 = vld [vmem:[%s9755_s11 + $0x4d8] sm:$0xff] }
  0x5e   :  { %245 = vst [vmem:[#allocation2 + $0x2e0] sm:$0xff] %v244_v28  ;;  %v372_v28 = vld [vmem:[%s9755_s11 + $0x4e0] sm:$0xff] }
  0x5f   :  { %247 = vst [vmem:[#allocation2 + $0x2e8] sm:$0xff] %v246_v29  ;;  %v374_v29 = vld [vmem:[%s9755_s11 + $0x4e8] sm:$0xff] }
  0x60   :  { %249 = vst [vmem:[#allocation2 + $0x2f0] sm:$0xff] %v248_v30  ;;  %v376_v30 = vld [vmem:[%s9755_s11 + $0x4f0] sm:$0xff] }
  0x61   :  { %251 = vst [vmem:[#allocation2 + $0x2f8] sm:$0xff] %v250_v31  ;;  %v378_v31 = vld [vmem:[%s9755_s11 + $0x4f8] sm:$0xff] }
  0x62   :  { %253 = vst [vmem:[#allocation2 + $0x300] sm:$0xff] %v252_v32  ;;  %v380_v32 = vld [vmem:[%s9755_s11 + $0x500] sm:$0xff] }
  0x63   :  { %255 = vst [vmem:[#allocation2 + $0x308] sm:$0xff] %v254_v33  ;;  %v382_v33 = vld [vmem:[%s9755_s11 + $0x508] sm:$0xff] }
  0x64   :  { %257 = vst [vmem:[#allocation2 + $0x310] sm:$0xff] %v256_v34  ;;  %v384_v34 = vld [vmem:[%s9755_s11 + $0x510] sm:$0xff] }
  0x65   :  { %259 = vst [vmem:[#allocation2 + $0x318] sm:$0xff] %v258_v35  ;;  %v386_v35 = vld [vmem:[%s9755_s11 + $0x518] sm:$0xff] }
  0x66   :  { %261 = vst [vmem:[#allocation2 + $0x320] sm:$0xff] %v260_v36  ;;  %v388_v36 = vld [vmem:[%s9755_s11 + $0x520] sm:$0xff] }
  0x67   :  { %263 = vst [vmem:[#allocation2 + $0x328] sm:$0xff] %v262_v37  ;;  %v390_v37 = vld [vmem:[%s9755_s11 + $0x528] sm:$0xff] }
  0x68   :  { %265 = vst [vmem:[#allocation2 + $0x330] sm:$0xff] %v264_v38  ;;  %v392_v38 = vld [vmem:[%s9755_s11 + $0x530] sm:$0xff] }
  0x69   :  { %267 = vst [vmem:[#allocation2 + $0x338] sm:$0xff] %v266_v39  ;;  %v394_v39 = vld [vmem:[%s9755_s11 + $0x538] sm:$0xff] }
  0x6a   :  { %269 = vst [vmem:[#allocation2 + $0x340] sm:$0xff] %v268_v40  ;;  %v396_v40 = vld [vmem:[%s9755_s11 + $0x540] sm:$0xff] }
  0x6b   :  { %271 = vst [vmem:[#allocation2 + $0x348] sm:$0xff] %v270_v41  ;;  %v398_v41 = vld [vmem:[%s9755_s11 + $0x548] sm:$0xff] }
  0x6c   :  { %273 = vst [vmem:[#allocation2 + $0x350] sm:$0xff] %v272_v42  ;;  %v400_v42 = vld [vmem:[%s9755_s11 + $0x550] sm:$0xff] }
  0x6d   :  { %275 = vst [vmem:[#allocation2 + $0x358] sm:$0xff] %v274_v43  ;;  %v402_v43 = vld [vmem:[%s9755_s11 + $0x558] sm:$0xff] }
  0x6e   :  { %277 = vst [vmem:[#allocation2 + $0x360] sm:$0xff] %v276_v44  ;;  %v404_v44 = vld [vmem:[%s9755_s11 + $0x560] sm:$0xff] }
  0x6f   :  { %279 = vst [vmem:[#allocation2 + $0x368] sm:$0xff] %v278_v45  ;;  %v406_v45 = vld [vmem:[%s9755_s11 + $0x568] sm:$0xff] }
  0x70   :  { %281 = vst [vmem:[#allocation2 + $0x370] sm:$0xff] %v280_v46  ;;  %v408_v46 = vld [vmem:[%s9755_s11 + $0x570] sm:$0xff] }
  0x71   :  { %283 = vst [vmem:[#allocation2 + $0x378] sm:$0xff] %v282_v47  ;;  %v410_v47 = vld [vmem:[%s9755_s11 + $0x578] sm:$0xff] }
  0x72   :  { %285 = vst [vmem:[#allocation2 + $0x380] sm:$0xff] %v284_v48  ;;  %v412_v48 = vld [vmem:[%s9755_s11 + $0x580] sm:$0xff] }
  0x73   :  { %287 = vst [vmem:[#allocation2 + $0x388] sm:$0xff] %v286_v49  ;;  %v414_v49 = vld [vmem:[%s9755_s11 + $0x588] sm:$0xff] }
  0x74   :  { %289 = vst [vmem:[#allocation2 + $0x390] sm:$0xff] %v288_v50  ;;  %v416_v50 = vld [vmem:[%s9755_s11 + $0x590] sm:$0xff] }
  0x75   :  { %291 = vst [vmem:[#allocation2 + $0x398] sm:$0xff] %v290_v51  ;;  %v418_v51 = vld [vmem:[%s9755_s11 + $0x598] sm:$0xff] }
  0x76   :  { %293 = vst [vmem:[#allocation2 + $0x3a0] sm:$0xff] %v292_v52  ;;  %v420_v52 = vld [vmem:[%s9755_s11 + $0x5a0] sm:$0xff] }
  0x77   :  { %295 = vst [vmem:[#allocation2 + $0x3a8] sm:$0xff] %v294_v53  ;;  %v422_v53 = vld [vmem:[%s9755_s11 + $0x5a8] sm:$0xff] }
  0x78   :  { %297 = vst [vmem:[#allocation2 + $0x3b0] sm:$0xff] %v296_v54  ;;  %v424_v54 = vld [vmem:[%s9755_s11 + $0x5b0] sm:$0xff] }
  0x79   :  { %299 = vst [vmem:[#allocation2 + $0x3b8] sm:$0xff] %v298_v55  ;;  %v426_v55 = vld [vmem:[%s9755_s11 + $0x5b8] sm:$0xff] }
  0x7a   :  { %301 = vst [vmem:[#allocation2 + $0x3c0] sm:$0xff] %v300_v56  ;;  %v428_v56 = vld [vmem:[%s9755_s11 + $0x5c0] sm:$0xff] }
  0x7b   :  { %303 = vst [vmem:[#allocation2 + $0x3c8] sm:$0xff] %v302_v57  ;;  %v430_v57 = vld [vmem:[%s9755_s11 + $0x5c8] sm:$0xff] }
  0x7c   :  { %305 = vst [vmem:[#allocation2 + $0x3d0] sm:$0xff] %v304_v58  ;;  %v432_v58 = vld [vmem:[%s9755_s11 + $0x5d0] sm:$0xff] }
  0x7d   :  { %307 = vst [vmem:[#allocation2 + $0x3d8] sm:$0xff] %v306_v59  ;;  %v434_v59 = vld [vmem:[%s9755_s11 + $0x5d8] sm:$0xff] }
  0x7e   :  { %309 = vst [vmem:[#allocation2 + $0x3e0] sm:$0xff] %v308_v60  ;;  %v436_v60 = vld [vmem:[%s9755_s11 + $0x5e0] sm:$0xff] }
  0x7f   :  { %311 = vst [vmem:[#allocation2 + $0x3e8] sm:$0xff] %v310_v61  ;;  %v438_v61 = vld [vmem:[%s9755_s11 + $0x5e8] sm:$0xff] }
  0x80   :  { %313 = vst [vmem:[#allocation2 + $0x3f0] sm:$0xff] %v312_v62  ;;  %v440_v62 = vld [vmem:[%s9755_s11 + $0x5f0] sm:$0xff] }
  0x81   :  { %315 = vst [vmem:[#allocation2 + $0x3f8] sm:$0xff] %v314_v63  ;;  %v442_v63 = vld [vmem:[%s9755_s11 + $0x5f8] sm:$0xff] }
  0x82   :  { %317 = vst [vmem:[#allocation2 + $0x400] sm:$0xff] %v316_v0  ;;  %v444_v0 = vld [vmem:[%s9755_s11 + $0x600] sm:$0xff] }
  0x83   :  { %319 = vst [vmem:[#allocation2 + $0x408] sm:$0xff] %v318_v1  ;;  %v446_v1 = vld [vmem:[%s9755_s11 + $0x608] sm:$0xff] }
  0x84   :  { %321 = vst [vmem:[#allocation2 + $0x410] sm:$0xff] %v320_v2  ;;  %v448_v2 = vld [vmem:[%s9755_s11 + $0x610] sm:$0xff] }
  0x85   :  { %323 = vst [vmem:[#allocation2 + $0x418] sm:$0xff] %v322_v3  ;;  %v450_v3 = vld [vmem:[%s9755_s11 + $0x618] sm:$0xff] }
  0x86   :  { %325 = vst [vmem:[#allocation2 + $0x420] sm:$0xff] %v324_v4  ;;  %v452_v4 = vld [vmem:[%s9755_s11 + $0x620] sm:$0xff] }
  0x87   :  { %327 = vst [vmem:[#allocation2 + $0x428] sm:$0xff] %v326_v5  ;;  %v454_v5 = vld [vmem:[%s9755_s11 + $0x628] sm:$0xff] }
  0x88   :  { %329 = vst [vmem:[#allocation2 + $0x430] sm:$0xff] %v328_v6  ;;  %v456_v6 = vld [vmem:[%s9755_s11 + $0x630] sm:$0xff] }
  0x89   :  { %331 = vst [vmem:[#allocation2 + $0x438] sm:$0xff] %v330_v7  ;;  %v458_v7 = vld [vmem:[%s9755_s11 + $0x638] sm:$0xff] }
  0x8a   :  { %333 = vst [vmem:[#allocation2 + $0x440] sm:$0xff] %v332_v8  ;;  %v460_v8 = vld [vmem:[%s9755_s11 + $0x640] sm:$0xff] }
  0x8b   :  { %335 = vst [vmem:[#allocation2 + $0x448] sm:$0xff] %v334_v9  ;;  %v462_v9 = vld [vmem:[%s9755_s11 + $0x648] sm:$0xff] }
  0x8c   :  { %337 = vst [vmem:[#allocation2 + $0x450] sm:$0xff] %v336_v10  ;;  %v464_v10 = vld [vmem:[%s9755_s11 + $0x650] sm:$0xff] }
  0x8d   :  { %339 = vst [vmem:[#allocation2 + $0x458] sm:$0xff] %v338_v11  ;;  %v466_v11 = vld [vmem:[%s9755_s11 + $0x658] sm:$0xff] }
  0x8e   :  { %341 = vst [vmem:[#allocation2 + $0x460] sm:$0xff] %v340_v12  ;;  %v468_v12 = vld [vmem:[%s9755_s11 + $0x660] sm:$0xff] }
  0x8f   :  { %343 = vst [vmem:[#allocation2 + $0x468] sm:$0xff] %v342_v13  ;;  %v470_v13 = vld [vmem:[%s9755_s11 + $0x668] sm:$0xff] }
  0x90   :  { %345 = vst [vmem:[#allocation2 + $0x470] sm:$0xff] %v344_v14  ;;  %v472_v14 = vld [vmem:[%s9755_s11 + $0x670] sm:$0xff] }
  0x91   :  { %347 = vst [vmem:[#allocation2 + $0x478] sm:$0xff] %v346_v15  ;;  %v474_v15 = vld [vmem:[%s9755_s11 + $0x678] sm:$0xff] }
  0x92   :  { %349 = vst [vmem:[#allocation2 + $0x480] sm:$0xff] %v348_v16  ;;  %v476_v16 = vld [vmem:[%s9755_s11 + $0x680] sm:$0xff] }
  0x93   :  { %351 = vst [vmem:[#allocation2 + $0x488] sm:$0xff] %v350_v17  ;;  %v478_v17 = vld [vmem:[%s9755_s11 + $0x688] sm:$0xff] }
  0x94   :  { %353 = vst [vmem:[#allocation2 + $0x490] sm:$0xff] %v352_v18  ;;  %v480_v18 = vld [vmem:[%s9755_s11 + $0x690] sm:$0xff] }
  0x95   :  { %355 = vst [vmem:[#allocation2 + $0x498] sm:$0xff] %v354_v19  ;;  %v482_v19 = vld [vmem:[%s9755_s11 + $0x698] sm:$0xff] }
  0x96   :  { %357 = vst [vmem:[#allocation2 + $0x4a0] sm:$0xff] %v356_v20  ;;  %v484_v20 = vld [vmem:[%s9755_s11 + $0x6a0] sm:$0xff] }
  0x97   :  { %359 = vst [vmem:[#allocation2 + $0x4a8] sm:$0xff] %v358_v21  ;;  %v486_v21 = vld [vmem:[%s9755_s11 + $0x6a8] sm:$0xff] }
  0x98   :  { %361 = vst [vmem:[#allocation2 + $0x4b0] sm:$0xff] %v360_v22  ;;  %v488_v22 = vld [vmem:[%s9755_s11 + $0x6b0] sm:$0xff] }
  0x99   :  { %363 = vst [vmem:[#allocation2 + $0x4b8] sm:$0xff] %v362_v23  ;;  %v490_v23 = vld [vmem:[%s9755_s11 + $0x6b8] sm:$0xff] }
  0x9a   :  { %365 = vst [vmem:[#allocation2 + $0x4c0] sm:$0xff] %v364_v24  ;;  %v492_v24 = vld [vmem:[%s9755_s11 + $0x6c0] sm:$0xff] }
  0x9b   :  { %367 = vst [vmem:[#allocation2 + $0x4c8] sm:$0xff] %v366_v25  ;;  %v494_v25 = vld [vmem:[%s9755_s11 + $0x6c8] sm:$0xff] }
  0x9c   :  { %369 = vst [vmem:[#allocation2 + $0x4d0] sm:$0xff] %v368_v26  ;;  %v496_v26 = vld [vmem:[%s9755_s11 + $0x6d0] sm:$0xff] }
  0x9d   :  { %371 = vst [vmem:[#allocation2 + $0x4d8] sm:$0xff] %v370_v27  ;;  %v498_v27 = vld [vmem:[%s9755_s11 + $0x6d8] sm:$0xff] }
  0x9e   :  { %373 = vst [vmem:[#allocation2 + $0x4e0] sm:$0xff] %v372_v28  ;;  %v500_v28 = vld [vmem:[%s9755_s11 + $0x6e0] sm:$0xff] }
  0x9f   :  { %375 = vst [vmem:[#allocation2 + $0x4e8] sm:$0xff] %v374_v29  ;;  %v502_v29 = vld [vmem:[%s9755_s11 + $0x6e8] sm:$0xff] }
  0xa0   :  { %377 = vst [vmem:[#allocation2 + $0x4f0] sm:$0xff] %v376_v30  ;;  %v504_v30 = vld [vmem:[%s9755_s11 + $0x6f0] sm:$0xff] }
  0xa1   :  { %379 = vst [vmem:[#allocation2 + $0x4f8] sm:$0xff] %v378_v31  ;;  %v506_v31 = vld [vmem:[%s9755_s11 + $0x6f8] sm:$0xff] }
  0xa2   :  { %381 = vst [vmem:[#allocation2 + $0x500] sm:$0xff] %v380_v32  ;;  %v508_v32 = vld [vmem:[%s9755_s11 + $0x700] sm:$0xff] }
  0xa3   :  { %383 = vst [vmem:[#allocation2 + $0x508] sm:$0xff] %v382_v33  ;;  %v510_v33 = vld [vmem:[%s9755_s11 + $0x708] sm:$0xff] }
  0xa4   :  { %385 = vst [vmem:[#allocation2 + $0x510] sm:$0xff] %v384_v34  ;;  %v512_v34 = vld [vmem:[%s9755_s11 + $0x710] sm:$0xff] }
  0xa5   :  { %387 = vst [vmem:[#allocation2 + $0x518] sm:$0xff] %v386_v35  ;;  %v514_v35 = vld [vmem:[%s9755_s11 + $0x718] sm:$0xff] }
  0xa6   :  { %389 = vst [vmem:[#allocation2 + $0x520] sm:$0xff] %v388_v36  ;;  %v516_v36 = vld [vmem:[%s9755_s11 + $0x720] sm:$0xff] }
  0xa7   :  { %391 = vst [vmem:[#allocation2 + $0x528] sm:$0xff] %v390_v37  ;;  %v518_v37 = vld [vmem:[%s9755_s11 + $0x728] sm:$0xff] }
  0xa8   :  { %393 = vst [vmem:[#allocation2 + $0x530] sm:$0xff] %v392_v38  ;;  %v520_v38 = vld [vmem:[%s9755_s11 + $0x730] sm:$0xff] }
  0xa9   :  { %395 = vst [vmem:[#allocation2 + $0x538] sm:$0xff] %v394_v39  ;;  %v522_v39 = vld [vmem:[%s9755_s11 + $0x738] sm:$0xff] }
  0xaa   :  { %397 = vst [vmem:[#allocation2 + $0x540] sm:$0xff] %v396_v40  ;;  %v524_v40 = vld [vmem:[%s9755_s11 + $0x740] sm:$0xff] }
  0xab   :  { %399 = vst [vmem:[#allocation2 + $0x548] sm:$0xff] %v398_v41  ;;  %v526_v41 = vld [vmem:[%s9755_s11 + $0x748] sm:$0xff] }
  0xac   :  { %401 = vst [vmem:[#allocation2 + $0x550] sm:$0xff] %v400_v42  ;;  %v528_v42 = vld [vmem:[%s9755_s11 + $0x750] sm:$0xff] }
  0xad   :  { %403 = vst [vmem:[#allocation2 + $0x558] sm:$0xff] %v402_v43  ;;  %v530_v43 = vld [vmem:[%s9755_s11 + $0x758] sm:$0xff] }
  0xae   :  { %405 = vst [vmem:[#allocation2 + $0x560] sm:$0xff] %v404_v44  ;;  %v532_v44 = vld [vmem:[%s9755_s11 + $0x760] sm:$0xff] }
  0xaf   :  { %407 = vst [vmem:[#allocation2 + $0x568] sm:$0xff] %v406_v45  ;;  %v534_v45 = vld [vmem:[%s9755_s11 + $0x768] sm:$0xff] }
  0xb0   :  { %409 = vst [vmem:[#allocation2 + $0x570] sm:$0xff] %v408_v46  ;;  %v536_v46 = vld [vmem:[%s9755_s11 + $0x770] sm:$0xff] }
  0xb1   :  { %411 = vst [vmem:[#allocation2 + $0x578] sm:$0xff] %v410_v47  ;;  %v538_v47 = vld [vmem:[%s9755_s11 + $0x778] sm:$0xff] }
  0xb2   :  { %413 = vst [vmem:[#allocation2 + $0x580] sm:$0xff] %v412_v48  ;;  %v540_v48 = vld [vmem:[%s9755_s11 + $0x780] sm:$0xff] }
  0xb3   :  { %415 = vst [vmem:[#allocation2 + $0x588] sm:$0xff] %v414_v49  ;;  %v542_v49 = vld [vmem:[%s9755_s11 + $0x788] sm:$0xff] }
  0xb4   :  { %417 = vst [vmem:[#allocation2 + $0x590] sm:$0xff] %v416_v50  ;;  %v544_v50 = vld [vmem:[%s9755_s11 + $0x790] sm:$0xff] }
  0xb5   :  { %419 = vst [vmem:[#allocation2 + $0x598] sm:$0xff] %v418_v51  ;;  %v546_v51 = vld [vmem:[%s9755_s11 + $0x798] sm:$0xff] }
  0xb6   :  { %421 = vst [vmem:[#allocation2 + $0x5a0] sm:$0xff] %v420_v52  ;;  %v548_v52 = vld [vmem:[%s9755_s11 + $0x7a0] sm:$0xff] }
  0xb7   :  { %423 = vst [vmem:[#allocation2 + $0x5a8] sm:$0xff] %v422_v53  ;;  %v550_v53 = vld [vmem:[%s9755_s11 + $0x7a8] sm:$0xff] }
  0xb8   :  { %425 = vst [vmem:[#allocation2 + $0x5b0] sm:$0xff] %v424_v54  ;;  %v552_v54 = vld [vmem:[%s9755_s11 + $0x7b0] sm:$0xff] }
  0xb9   :  { %427 = vst [vmem:[#allocation2 + $0x5b8] sm:$0xff] %v426_v55  ;;  %v554_v55 = vld [vmem:[%s9755_s11 + $0x7b8] sm:$0xff] }
  0xba   :  { %429 = vst [vmem:[#allocation2 + $0x5c0] sm:$0xff] %v428_v56  ;;  %v556_v56 = vld [vmem:[%s9755_s11 + $0x7c0] sm:$0xff] }
  0xbb   :  { %431 = vst [vmem:[#allocation2 + $0x5c8] sm:$0xff] %v430_v57  ;;  %v558_v57 = vld [vmem:[%s9755_s11 + $0x7c8] sm:$0xff] }
  0xbc   :  { %433 = vst [vmem:[#allocation2 + $0x5d0] sm:$0xff] %v432_v58  ;;  %v560_v58 = vld [vmem:[%s9755_s11 + $0x7d0] sm:$0xff] }
  0xbd   :  { %435 = vst [vmem:[#allocation2 + $0x5d8] sm:$0xff] %v434_v59  ;;  %v562_v59 = vld [vmem:[%s9755_s11 + $0x7d8] sm:$0xff] }
  0xbe   :  { %437 = vst [vmem:[#allocation2 + $0x5e0] sm:$0xff] %v436_v60  ;;  %v564_v60 = vld [vmem:[%s9755_s11 + $0x7e0] sm:$0xff] }
  0xbf   :  { %439 = vst [vmem:[#allocation2 + $0x5e8] sm:$0xff] %v438_v61  ;;  %v566_v61 = vld [vmem:[%s9755_s11 + $0x7e8] sm:$0xff] }
  0xc0   :  { %441 = vst [vmem:[#allocation2 + $0x5f0] sm:$0xff] %v440_v62  ;;  %v568_v62 = vld [vmem:[%s9755_s11 + $0x7f0] sm:$0xff] }
  0xc1   :  { %443 = vst [vmem:[#allocation2 + $0x5f8] sm:$0xff] %v442_v63  ;;  %v570_v63 = vld [vmem:[%s9755_s11 + $0x7f8] sm:$0xff] }
  0xc2   :  { %445 = vst [vmem:[#allocation2 + $0x600] sm:$0xff] %v444_v0 }
  0xc3   :  { %447 = vst [vmem:[#allocation2 + $0x608] sm:$0xff] %v446_v1 }
  0xc4   :  { %449 = vst [vmem:[#allocation2 + $0x610] sm:$0xff] %v448_v2 }
  0xc5   :  { %451 = vst [vmem:[#allocation2 + $0x618] sm:$0xff] %v450_v3 }
  0xc6   :  { %453 = vst [vmem:[#allocation2 + $0x620] sm:$0xff] %v452_v4 }
  0xc7   :  { %455 = vst [vmem:[#allocation2 + $0x628] sm:$0xff] %v454_v5 }
  0xc8   :  { %457 = vst [vmem:[#allocation2 + $0x630] sm:$0xff] %v456_v6 }
  0xc9   :  { %459 = vst [vmem:[#allocation2 + $0x638] sm:$0xff] %v458_v7 }
  0xca   :  { %461 = vst [vmem:[#allocation2 + $0x640] sm:$0xff] %v460_v8 }
  0xcb   :  { %463 = vst [vmem:[#allocation2 + $0x648] sm:$0xff] %v462_v9 }
  0xcc   :  { %465 = vst [vmem:[#allocation2 + $0x650] sm:$0xff] %v464_v10 }
  0xcd   :  { %467 = vst [vmem:[#allocation2 + $0x658] sm:$0xff] %v466_v11 }
  0xce   :  { %469 = vst [vmem:[#allocation2 + $0x660] sm:$0xff] %v468_v12 }
  0xcf   :  { %471 = vst [vmem:[#allocation2 + $0x668] sm:$0xff] %v470_v13 }
  0xd0   :  { %473 = vst [vmem:[#allocation2 + $0x670] sm:$0xff] %v472_v14 }
  0xd1   :  { %475 = vst [vmem:[#allocation2 + $0x678] sm:$0xff] %v474_v15 }
  0xd2   :  { %477 = vst [vmem:[#allocation2 + $0x680] sm:$0xff] %v476_v16 }
  0xd3   :  { %479 = vst [vmem:[#allocation2 + $0x688] sm:$0xff] %v478_v17 }
  0xd4   :  { %481 = vst [vmem:[#allocation2 + $0x690] sm:$0xff] %v480_v18 }
  0xd5   :  { %483 = vst [vmem:[#allocation2 + $0x698] sm:$0xff] %v482_v19 }
  0xd6   :  { %485 = vst [vmem:[#allocation2 + $0x6a0] sm:$0xff] %v484_v20 }
  0xd7   :  { %487 = vst [vmem:[#allocation2 + $0x6a8] sm:$0xff] %v486_v21 }
  0xd8   :  { %489 = vst [vmem:[#allocation2 + $0x6b0] sm:$0xff] %v488_v22 }
  0xd9   :  { %491 = vst [vmem:[#allocation2 + $0x6b8] sm:$0xff] %v490_v23 }
  0xda   :  { %493 = vst [vmem:[#allocation2 + $0x6c0] sm:$0xff] %v492_v24 }
  0xdb   :  { %495 = vst [vmem:[#allocation2 + $0x6c8] sm:$0xff] %v494_v25 }
  0xdc   :  { %497 = vst [vmem:[#allocation2 + $0x6d0] sm:$0xff] %v496_v26 }
  0xdd   :  { %499 = vst [vmem:[#allocation2 + $0x6d8] sm:$0xff] %v498_v27 }
  0xde   :  { %501 = vst [vmem:[#allocation2 + $0x6e0] sm:$0xff] %v500_v28 }
  0xdf   :  { %503 = vst [vmem:[#allocation2 + $0x6e8] sm:$0xff] %v502_v29 }
  0xe0   :  { %505 = vst [vmem:[#allocation2 + $0x6f0] sm:$0xff] %v504_v30 }
  0xe1   :  { %507 = vst [vmem:[#allocation2 + $0x6f8] sm:$0xff] %v506_v31 }
  0xe2   :  { %509 = vst [vmem:[#allocation2 + $0x700] sm:$0xff] %v508_v32 }
  0xe3   :  { %511 = vst [vmem:[#allocation2 + $0x708] sm:$0xff] %v510_v33 }
  0xe4   :  { %513 = vst [vmem:[#allocation2 + $0x710] sm:$0xff] %v512_v34 }
  0xe5   :  { %515 = vst [vmem:[#allocation2 + $0x718] sm:$0xff] %v514_v35 }
  0xe6   :  { %517 = vst [vmem:[#allocation2 + $0x720] sm:$0xff] %v516_v36 }
  0xe7   :  { %519 = vst [vmem:[#allocation2 + $0x728] sm:$0xff] %v518_v37 }
  0xe8   :  { %521 = vst [vmem:[#allocation2 + $0x730] sm:$0xff] %v520_v38 }
  0xe9   :  { %523 = vst [vmem:[#allocation2 + $0x738] sm:$0xff] %v522_v39 }
  0xea   :  { %525 = vst [vmem:[#allocation2 + $0x740] sm:$0xff] %v524_v40 }
  0xeb   :  { %527 = vst [vmem:[#allocation2 + $0x748] sm:$0xff] %v526_v41 }
  0xec   :  { %529 = vst [vmem:[#allocation2 + $0x750] sm:$0xff] %v528_v42 }
  0xed   :  { %531 = vst [vmem:[#allocation2 + $0x758] sm:$0xff] %v530_v43 }
  0xee   :  { %533 = vst [vmem:[#allocation2 + $0x760] sm:$0xff] %v532_v44 }
  0xef   :  { %535 = vst [vmem:[#allocation2 + $0x768] sm:$0xff] %v534_v45 }
  0xf0   :  { %537 = vst [vmem:[#allocation2 + $0x770] sm:$0xff] %v536_v46 }
  0xf1   :  { %539 = vst [vmem:[#allocation2 + $0x778] sm:$0xff] %v538_v47 }
  0xf2   :  { %541 = vst [vmem:[#allocation2 + $0x780] sm:$0xff] %v540_v48 }
  0xf3   :  { %543 = vst [vmem:[#allocation2 + $0x788] sm:$0xff] %v542_v49 }
  0xf4   :  { %545 = vst [vmem:[#allocation2 + $0x790] sm:$0xff] %v544_v50 }
  0xf5   :  { %547 = vst [vmem:[#allocation2 + $0x798] sm:$0xff] %v546_v51 }
  0xf6   :  { %549 = vst [vmem:[#allocation2 + $0x7a0] sm:$0xff] %v548_v52 }
  0xf7   :  { %551 = vst [vmem:[#allocation2 + $0x7a8] sm:$0xff] %v550_v53 }
  0xf8   :  { %553 = vst [vmem:[#allocation2 + $0x7b0] sm:$0xff] %v552_v54 }
  0xf9   :  { %555 = vst [vmem:[#allocation2 + $0x7b8] sm:$0xff] %v554_v55 }
  0xfa   :  { %557 = vst [vmem:[#allocation2 + $0x7c0] sm:$0xff] %v556_v56 }
  0xfb   :  { %559 = vst [vmem:[#allocation2 + $0x7c8] sm:$0xff] %v558_v57 }
  0xfc   :  { %561 = vst [vmem:[#allocation2 + $0x7d0] sm:$0xff] %v560_v58 }
  0xfd   :  { %563 = vst [vmem:[#allocation2 + $0x7d8] sm:$0xff] %v562_v59 }
  0xfe   :  { %565 = vst [vmem:[#allocation2 + $0x7e0] sm:$0xff] %v564_v60 }
  0xff   :  { %567 = vst [vmem:[#allocation2 + $0x7e8] sm:$0xff] %v566_v61 }
 0x100   :  { %569 = vst [vmem:[#allocation2 + $0x7f0] sm:$0xff] %v568_v62 }
 0x101   :  { %571 = vst [vmem:[#allocation2 + $0x7f8] sm:$0xff] %v570_v63 }
 0x102   :  { %577 = vsyncadd [#allocation4], 32768  ;;  %v589_v0 = vld [vmem:[%s9758_s14] sm:$0xff]  ;;  %v591_v1 = vld [vmem:[%s9758_s14 + $0x8] sm:$0xff]  ;;  %s9762_s25 = sld [smem:[#allocation9_spill]] }
 0x103   :  { %590 = vst [vmem:[#allocation3] sm:$0xff] %v589_v0  ;;  %v593_v2 = vld [vmem:[%s9758_s14 + $0x10] sm:$0xff]  ;;  %v595_v3 = vld [vmem:[%s9758_s14 + $0x18] sm:$0xff]  ;;  %v597_v4 = vld [vmem:[%s9758_s14 + $0x20] sm:$0xff] }
 0x104   :  { %592 = vst [vmem:[#allocation3 + $0x8] sm:$0xff] %v591_v1  ;;  %v599_v5 = vld [vmem:[%s9758_s14 + $0x28] sm:$0xff]  ;;  %v601_v6 = vld [vmem:[%s9758_s14 + $0x30] sm:$0xff]  ;;  %v603_v7 = vld [vmem:[%s9758_s14 + $0x38] sm:$0xff] }
 0x105   :  { %594 = vst [vmem:[#allocation3 + $0x10] sm:$0xff] %v593_v2  ;;  %v605_v8 = vld [vmem:[%s9758_s14 + $0x40] sm:$0xff]  ;;  %v607_v9 = vld [vmem:[%s9758_s14 + $0x48] sm:$0xff]  ;;  %v609_v10 = vld [vmem:[%s9758_s14 + $0x50] sm:$0xff] }
 0x106   :  { %596 = vst [vmem:[#allocation3 + $0x18] sm:$0xff] %v595_v3  ;;  %v611_v11 = vld [vmem:[%s9758_s14 + $0x58] sm:$0xff]  ;;  %v613_v12 = vld [vmem:[%s9758_s14 + $0x60] sm:$0xff]  ;;  %v615_v13 = vld [vmem:[%s9758_s14 + $0x68] sm:$0xff] }
 0x107   :  { %598 = vst [vmem:[#allocation3 + $0x20] sm:$0xff] %v597_v4  ;;  %v617_v14 = vld [vmem:[%s9758_s14 + $0x70] sm:$0xff]  ;;  %v619_v15 = vld [vmem:[%s9758_s14 + $0x78] sm:$0xff]  ;;  %v621_v16 = vld [vmem:[%s9758_s14 + $0x80] sm:$0xff] }
 0x108   :  { %600 = vst [vmem:[#allocation3 + $0x28] sm:$0xff] %v599_v5  ;;  %v623_v17 = vld [vmem:[%s9758_s14 + $0x88] sm:$0xff]  ;;  %v625_v18 = vld [vmem:[%s9758_s14 + $0x90] sm:$0xff]  ;;  %v627_v19 = vld [vmem:[%s9758_s14 + $0x98] sm:$0xff] }
 0x109   :  { %602 = vst [vmem:[#allocation3 + $0x30] sm:$0xff] %v601_v6  ;;  %v629_v20 = vld [vmem:[%s9758_s14 + $0xa0] sm:$0xff]  ;;  %v631_v21 = vld [vmem:[%s9758_s14 + $0xa8] sm:$0xff]  ;;  %v633_v22 = vld [vmem:[%s9758_s14 + $0xb0] sm:$0xff] }
 0x10a   :  { %604 = vst [vmem:[#allocation3 + $0x38] sm:$0xff] %v603_v7  ;;  %v635_v23 = vld [vmem:[%s9758_s14 + $0xb8] sm:$0xff]  ;;  %v637_v24 = vld [vmem:[%s9758_s14 + $0xc0] sm:$0xff]  ;;  %v639_v25 = vld [vmem:[%s9758_s14 + $0xc8] sm:$0xff] }
 0x10b   :  { %606 = vst [vmem:[#allocation3 + $0x40] sm:$0xff] %v605_v8  ;;  %v641_v26 = vld [vmem:[%s9758_s14 + $0xd0] sm:$0xff]  ;;  %v643_v27 = vld [vmem:[%s9758_s14 + $0xd8] sm:$0xff]  ;;  %v645_v28 = vld [vmem:[%s9758_s14 + $0xe0] sm:$0xff] }
 0x10c   :  { %608 = vst [vmem:[#allocation3 + $0x48] sm:$0xff] %v607_v9  ;;  %v647_v29 = vld [vmem:[%s9758_s14 + $0xe8] sm:$0xff]  ;;  %v649_v30 = vld [vmem:[%s9758_s14 + $0xf0] sm:$0xff]  ;;  %v651_v31 = vld [vmem:[%s9758_s14 + $0xf8] sm:$0xff] }
 0x10d   :  { %610 = vst [vmem:[#allocation3 + $0x50] sm:$0xff] %v609_v10  ;;  %v653_v32 = vld [vmem:[%s9758_s14 + $0x100] sm:$0xff]  ;;  %v655_v33 = vld [vmem:[%s9758_s14 + $0x108] sm:$0xff]  ;;  %v657_v34 = vld [vmem:[%s9758_s14 + $0x110] sm:$0xff] }
 0x10e   :  { %612 = vst [vmem:[#allocation3 + $0x58] sm:$0xff] %v611_v11  ;;  %v659_v35 = vld [vmem:[%s9758_s14 + $0x118] sm:$0xff]  ;;  %v661_v36 = vld [vmem:[%s9758_s14 + $0x120] sm:$0xff]  ;;  %v663_v37 = vld [vmem:[%s9758_s14 + $0x128] sm:$0xff] }
 0x10f   :  { %614 = vst [vmem:[#allocation3 + $0x60] sm:$0xff] %v613_v12  ;;  %v665_v38 = vld [vmem:[%s9758_s14 + $0x130] sm:$0xff]  ;;  %v667_v39 = vld [vmem:[%s9758_s14 + $0x138] sm:$0xff]  ;;  %v669_v40 = vld [vmem:[%s9758_s14 + $0x140] sm:$0xff] }
 0x110   :  { %616 = vst [vmem:[#allocation3 + $0x68] sm:$0xff] %v615_v13  ;;  %v671_v41 = vld [vmem:[%s9758_s14 + $0x148] sm:$0xff]  ;;  %v673_v42 = vld [vmem:[%s9758_s14 + $0x150] sm:$0xff]  ;;  %v675_v43 = vld [vmem:[%s9758_s14 + $0x158] sm:$0xff] }
 0x111   :  { %618 = vst [vmem:[#allocation3 + $0x70] sm:$0xff] %v617_v14  ;;  %v677_v44 = vld [vmem:[%s9758_s14 + $0x160] sm:$0xff]  ;;  %v679_v45 = vld [vmem:[%s9758_s14 + $0x168] sm:$0xff]  ;;  %v681_v46 = vld [vmem:[%s9758_s14 + $0x170] sm:$0xff] }
 0x112   :  { %620 = vst [vmem:[#allocation3 + $0x78] sm:$0xff] %v619_v15  ;;  %v683_v47 = vld [vmem:[%s9758_s14 + $0x178] sm:$0xff]  ;;  %v685_v48 = vld [vmem:[%s9758_s14 + $0x180] sm:$0xff]  ;;  %v687_v49 = vld [vmem:[%s9758_s14 + $0x188] sm:$0xff] }
 0x113   :  { %622 = vst [vmem:[#allocation3 + $0x80] sm:$0xff] %v621_v16  ;;  %v689_v50 = vld [vmem:[%s9758_s14 + $0x190] sm:$0xff]  ;;  %v691_v51 = vld [vmem:[%s9758_s14 + $0x198] sm:$0xff]  ;;  %v693_v52 = vld [vmem:[%s9758_s14 + $0x1a0] sm:$0xff] }
 0x114   :  { %624 = vst [vmem:[#allocation3 + $0x88] sm:$0xff] %v623_v17  ;;  %v695_v53 = vld [vmem:[%s9758_s14 + $0x1a8] sm:$0xff]  ;;  %v697_v54 = vld [vmem:[%s9758_s14 + $0x1b0] sm:$0xff]  ;;  %v699_v55 = vld [vmem:[%s9758_s14 + $0x1b8] sm:$0xff] }
 0x115   :  { %626 = vst [vmem:[#allocation3 + $0x90] sm:$0xff] %v625_v18  ;;  %v701_v56 = vld [vmem:[%s9758_s14 + $0x1c0] sm:$0xff]  ;;  %v703_v57 = vld [vmem:[%s9758_s14 + $0x1c8] sm:$0xff]  ;;  %v705_v58 = vld [vmem:[%s9758_s14 + $0x1d0] sm:$0xff] }
 0x116   :  { %628 = vst [vmem:[#allocation3 + $0x98] sm:$0xff] %v627_v19  ;;  %v707_v59 = vld [vmem:[%s9758_s14 + $0x1d8] sm:$0xff]  ;;  %v709_v60 = vld [vmem:[%s9758_s14 + $0x1e0] sm:$0xff]  ;;  %v711_v61 = vld [vmem:[%s9758_s14 + $0x1e8] sm:$0xff] }
 0x117   :  { %630 = vst [vmem:[#allocation3 + $0xa0] sm:$0xff] %v629_v20  ;;  %v713_v62 = vld [vmem:[%s9758_s14 + $0x1f0] sm:$0xff]  ;;  %v715_v63 = vld [vmem:[%s9758_s14 + $0x1f8] sm:$0xff]  ;;  %v717_v0 = vld [vmem:[%s9758_s14 + $0x200] sm:$0xff] }
 0x118   :  { %632 = vst [vmem:[#allocation3 + $0xa8] sm:$0xff] %v631_v21  ;;  %v719_v1 = vld [vmem:[%s9758_s14 + $0x208] sm:$0xff]  ;;  %v721_v2 = vld [vmem:[%s9758_s14 + $0x210] sm:$0xff]  ;;  %v723_v3 = vld [vmem:[%s9758_s14 + $0x218] sm:$0xff] }
 0x119   :  { %634 = vst [vmem:[#allocation3 + $0xb0] sm:$0xff] %v633_v22  ;;  %v725_v4 = vld [vmem:[%s9758_s14 + $0x220] sm:$0xff]  ;;  %v727_v5 = vld [vmem:[%s9758_s14 + $0x228] sm:$0xff]  ;;  %v729_v6 = vld [vmem:[%s9758_s14 + $0x230] sm:$0xff] }
 0x11a   :  { %636 = vst [vmem:[#allocation3 + $0xb8] sm:$0xff] %v635_v23  ;;  %v731_v7 = vld [vmem:[%s9758_s14 + $0x238] sm:$0xff]  ;;  %v733_v8 = vld [vmem:[%s9758_s14 + $0x240] sm:$0xff]  ;;  %v735_v9 = vld [vmem:[%s9758_s14 + $0x248] sm:$0xff] }
 0x11b   :  { %638 = vst [vmem:[#allocation3 + $0xc0] sm:$0xff] %v637_v24  ;;  %v737_v10 = vld [vmem:[%s9758_s14 + $0x250] sm:$0xff]  ;;  %v739_v11 = vld [vmem:[%s9758_s14 + $0x258] sm:$0xff]  ;;  %v741_v12 = vld [vmem:[%s9758_s14 + $0x260] sm:$0xff] }
 0x11c   :  { %640 = vst [vmem:[#allocation3 + $0xc8] sm:$0xff] %v639_v25  ;;  %v743_v13 = vld [vmem:[%s9758_s14 + $0x268] sm:$0xff]  ;;  %v745_v14 = vld [vmem:[%s9758_s14 + $0x270] sm:$0xff]  ;;  %v747_v15 = vld [vmem:[%s9758_s14 + $0x278] sm:$0xff] }
 0x11d   :  { %642 = vst [vmem:[#allocation3 + $0xd0] sm:$0xff] %v641_v26  ;;  %v749_v16 = vld [vmem:[%s9758_s14 + $0x280] sm:$0xff]  ;;  %v751_v17 = vld [vmem:[%s9758_s14 + $0x288] sm:$0xff]  ;;  %v753_v18 = vld [vmem:[%s9758_s14 + $0x290] sm:$0xff] }
 0x11e   :  { %644 = vst [vmem:[#allocation3 + $0xd8] sm:$0xff] %v643_v27  ;;  %v755_v19 = vld [vmem:[%s9758_s14 + $0x298] sm:$0xff]  ;;  %v757_v20 = vld [vmem:[%s9758_s14 + $0x2a0] sm:$0xff]  ;;  %v759_v21 = vld [vmem:[%s9758_s14 + $0x2a8] sm:$0xff] }
 0x11f   :  { %646 = vst [vmem:[#allocation3 + $0xe0] sm:$0xff] %v645_v28  ;;  %v761_v22 = vld [vmem:[%s9758_s14 + $0x2b0] sm:$0xff]  ;;  %v763_v23 = vld [vmem:[%s9758_s14 + $0x2b8] sm:$0xff]  ;;  %v765_v24 = vld [vmem:[%s9758_s14 + $0x2c0] sm:$0xff] }
 0x120   :  { %648 = vst [vmem:[#allocation3 + $0xe8] sm:$0xff] %v647_v29  ;;  %v767_v25 = vld [vmem:[%s9758_s14 + $0x2c8] sm:$0xff]  ;;  %v769_v26 = vld [vmem:[%s9758_s14 + $0x2d0] sm:$0xff]  ;;  %v771_v27 = vld [vmem:[%s9758_s14 + $0x2d8] sm:$0xff] }
 0x121   :  { %650 = vst [vmem:[#allocation3 + $0xf0] sm:$0xff] %v649_v30  ;;  %v773_v28 = vld [vmem:[%s9758_s14 + $0x2e0] sm:$0xff]  ;;  %v775_v29 = vld [vmem:[%s9758_s14 + $0x2e8] sm:$0xff]  ;;  %v777_v30 = vld [vmem:[%s9758_s14 + $0x2f0] sm:$0xff] }
 0x122   :  { %652 = vst [vmem:[#allocation3 + $0xf8] sm:$0xff] %v651_v31  ;;  %v779_v31 = vld [vmem:[%s9758_s14 + $0x2f8] sm:$0xff] }
 0x123   :  { %654 = vst [vmem:[#allocation3 + $0x100] sm:$0xff] %v653_v32  ;;  %v781_v32 = vld [vmem:[%s9758_s14 + $0x300] sm:$0xff] }
 0x124   :  { %656 = vst [vmem:[#allocation3 + $0x108] sm:$0xff] %v655_v33  ;;  %v783_v33 = vld [vmem:[%s9758_s14 + $0x308] sm:$0xff] }
 0x125   :  { %658 = vst [vmem:[#allocation3 + $0x110] sm:$0xff] %v657_v34  ;;  %v785_v34 = vld [vmem:[%s9758_s14 + $0x310] sm:$0xff] }
 0x126   :  { %660 = vst [vmem:[#allocation3 + $0x118] sm:$0xff] %v659_v35  ;;  %v787_v35 = vld [vmem:[%s9758_s14 + $0x318] sm:$0xff] }
 0x127   :  { %662 = vst [vmem:[#allocation3 + $0x120] sm:$0xff] %v661_v36  ;;  %v789_v36 = vld [vmem:[%s9758_s14 + $0x320] sm:$0xff] }
 0x128   :  { %664 = vst [vmem:[#allocation3 + $0x128] sm:$0xff] %v663_v37  ;;  %v791_v37 = vld [vmem:[%s9758_s14 + $0x328] sm:$0xff] }
 0x129   :  { %666 = vst [vmem:[#allocation3 + $0x130] sm:$0xff] %v665_v38  ;;  %v793_v38 = vld [vmem:[%s9758_s14 + $0x330] sm:$0xff] }
 0x12a   :  { %668 = vst [vmem:[#allocation3 + $0x138] sm:$0xff] %v667_v39  ;;  %v795_v39 = vld [vmem:[%s9758_s14 + $0x338] sm:$0xff] }
 0x12b   :  { %670 = vst [vmem:[#allocation3 + $0x140] sm:$0xff] %v669_v40  ;;  %v797_v40 = vld [vmem:[%s9758_s14 + $0x340] sm:$0xff] }
 0x12c   :  { %672 = vst [vmem:[#allocation3 + $0x148] sm:$0xff] %v671_v41  ;;  %v799_v41 = vld [vmem:[%s9758_s14 + $0x348] sm:$0xff] }
 0x12d   :  { %674 = vst [vmem:[#allocation3 + $0x150] sm:$0xff] %v673_v42  ;;  %v801_v42 = vld [vmem:[%s9758_s14 + $0x350] sm:$0xff] }
 0x12e   :  { %676 = vst [vmem:[#allocation3 + $0x158] sm:$0xff] %v675_v43  ;;  %v803_v43 = vld [vmem:[%s9758_s14 + $0x358] sm:$0xff] }
 0x12f   :  { %678 = vst [vmem:[#allocation3 + $0x160] sm:$0xff] %v677_v44  ;;  %v805_v44 = vld [vmem:[%s9758_s14 + $0x360] sm:$0xff] }
 0x130   :  { %680 = vst [vmem:[#allocation3 + $0x168] sm:$0xff] %v679_v45  ;;  %v807_v45 = vld [vmem:[%s9758_s14 + $0x368] sm:$0xff] }
 0x131   :  { %682 = vst [vmem:[#allocation3 + $0x170] sm:$0xff] %v681_v46  ;;  %v809_v46 = vld [vmem:[%s9758_s14 + $0x370] sm:$0xff] }
 0x132   :  { %684 = vst [vmem:[#allocation3 + $0x178] sm:$0xff] %v683_v47  ;;  %v811_v47 = vld [vmem:[%s9758_s14 + $0x378] sm:$0xff] }
 0x133   :  { %686 = vst [vmem:[#allocation3 + $0x180] sm:$0xff] %v685_v48  ;;  %v813_v48 = vld [vmem:[%s9758_s14 + $0x380] sm:$0xff] }
 0x134   :  { %688 = vst [vmem:[#allocation3 + $0x188] sm:$0xff] %v687_v49  ;;  %v815_v49 = vld [vmem:[%s9758_s14 + $0x388] sm:$0xff] }
 0x135   :  { %690 = vst [vmem:[#allocation3 + $0x190] sm:$0xff] %v689_v50  ;;  %v817_v50 = vld [vmem:[%s9758_s14 + $0x390] sm:$0xff] }
 0x136   :  { %692 = vst [vmem:[#allocation3 + $0x198] sm:$0xff] %v691_v51  ;;  %v819_v51 = vld [vmem:[%s9758_s14 + $0x398] sm:$0xff] }
 0x137   :  { %694 = vst [vmem:[#allocation3 + $0x1a0] sm:$0xff] %v693_v52  ;;  %v821_v52 = vld [vmem:[%s9758_s14 + $0x3a0] sm:$0xff] }
 0x138   :  { %696 = vst [vmem:[#allocation3 + $0x1a8] sm:$0xff] %v695_v53  ;;  %v823_v53 = vld [vmem:[%s9758_s14 + $0x3a8] sm:$0xff] }
 0x139   :  { %698 = vst [vmem:[#allocation3 + $0x1b0] sm:$0xff] %v697_v54  ;;  %v825_v54 = vld [vmem:[%s9758_s14 + $0x3b0] sm:$0xff] }
 0x13a   :  { %700 = vst [vmem:[#allocation3 + $0x1b8] sm:$0xff] %v699_v55  ;;  %v827_v55 = vld [vmem:[%s9758_s14 + $0x3b8] sm:$0xff] }
 0x13b   :  { %702 = vst [vmem:[#allocation3 + $0x1c0] sm:$0xff] %v701_v56  ;;  %v829_v56 = vld [vmem:[%s9758_s14 + $0x3c0] sm:$0xff] }
 0x13c   :  { %704 = vst [vmem:[#allocation3 + $0x1c8] sm:$0xff] %v703_v57  ;;  %v831_v57 = vld [vmem:[%s9758_s14 + $0x3c8] sm:$0xff] }
 0x13d   :  { %706 = vst [vmem:[#allocation3 + $0x1d0] sm:$0xff] %v705_v58  ;;  %v833_v58 = vld [vmem:[%s9758_s14 + $0x3d0] sm:$0xff] }
 0x13e   :  { %708 = vst [vmem:[#allocation3 + $0x1d8] sm:$0xff] %v707_v59  ;;  %v835_v59 = vld [vmem:[%s9758_s14 + $0x3d8] sm:$0xff] }
 0x13f   :  { %710 = vst [vmem:[#allocation3 + $0x1e0] sm:$0xff] %v709_v60  ;;  %v837_v60 = vld [vmem:[%s9758_s14 + $0x3e0] sm:$0xff] }
 0x140   :  { %712 = vst [vmem:[#allocation3 + $0x1e8] sm:$0xff] %v711_v61  ;;  %v839_v61 = vld [vmem:[%s9758_s14 + $0x3e8] sm:$0xff] }
 0x141   :  { %714 = vst [vmem:[#allocation3 + $0x1f0] sm:$0xff] %v713_v62  ;;  %v841_v62 = vld [vmem:[%s9758_s14 + $0x3f0] sm:$0xff] }
 0x142   :  { %716 = vst [vmem:[#allocation3 + $0x1f8] sm:$0xff] %v715_v63  ;;  %v843_v63 = vld [vmem:[%s9758_s14 + $0x3f8] sm:$0xff] }
 0x143   :  { %718 = vst [vmem:[#allocation3 + $0x200] sm:$0xff] %v717_v0  ;;  %v852_v0 = vld [vmem:[%s9762_s25] sm:$0xf] }
 0x144   :  { %720 = vst [vmem:[#allocation3 + $0x208] sm:$0xff] %v719_v1  ;;  %v7075_v1 = vld [vmem:[%s9747_s3 + $0x8] sm:$0xff] }
 0x145   :  { %722 = vst [vmem:[#allocation3 + $0x210] sm:$0xff] %v721_v2  ;;  %v7580_v2 = vmov 0  }
 0x146   :  { %724 = vst [vmem:[#allocation3 + $0x218] sm:$0xff] %v723_v3  ;;  %7542 = vset.pattern.permute.xlu0 %v7580_v2 }
 0x147   :  { %726 = vst [vmem:[#allocation3 + $0x220] sm:$0xff] %v725_v4 }
 0x148   :  { %728 = vst [vmem:[#allocation3 + $0x228] sm:$0xff] %v727_v5 }
 0x149   :  { %730 = vst [vmem:[#allocation3 + $0x230] sm:$0xff] %v729_v6 }
 0x14a   :  { %732 = vst [vmem:[#allocation3 + $0x238] sm:$0xff] %v731_v7 }
 0x14b   :  { %734 = vst [vmem:[#allocation3 + $0x240] sm:$0xff] %v733_v8 }
 0x14c   :  { %736 = vst [vmem:[#allocation3 + $0x248] sm:$0xff] %v735_v9 }
 0x14d   :  { %738 = vst [vmem:[#allocation3 + $0x250] sm:$0xff] %v737_v10 }
 0x14e   :  { %740 = vst [vmem:[#allocation3 + $0x258] sm:$0xff] %v739_v11 }
 0x14f   :  { %742 = vst [vmem:[#allocation3 + $0x260] sm:$0xff] %v741_v12 }
 0x150   :  { %744 = vst [vmem:[#allocation3 + $0x268] sm:$0xff] %v743_v13 }
 0x151   :  { %746 = vst [vmem:[#allocation3 + $0x270] sm:$0xff] %v745_v14 }
 0x152   :  { %748 = vst [vmem:[#allocation3 + $0x278] sm:$0xff] %v747_v15 }
 0x153   :  { %750 = vst [vmem:[#allocation3 + $0x280] sm:$0xff] %v749_v16 }
 0x154   :  { %752 = vst [vmem:[#allocation3 + $0x288] sm:$0xff] %v751_v17 }
 0x155   :  { %754 = vst [vmem:[#allocation3 + $0x290] sm:$0xff] %v753_v18 }
 0x156   :  { %756 = vst [vmem:[#allocation3 + $0x298] sm:$0xff] %v755_v19 }
 0x157   :  { %758 = vst [vmem:[#allocation3 + $0x2a0] sm:$0xff] %v757_v20 }
 0x158   :  { %760 = vst [vmem:[#allocation3 + $0x2a8] sm:$0xff] %v759_v21 }
 0x159   :  { %762 = vst [vmem:[#allocation3 + $0x2b0] sm:$0xff] %v761_v22 }
 0x15a   :  { %764 = vst [vmem:[#allocation3 + $0x2b8] sm:$0xff] %v763_v23 }
 0x15b   :  { %766 = vst [vmem:[#allocation3 + $0x2c0] sm:$0xff] %v765_v24 }
 0x15c   :  { %768 = vst [vmem:[#allocation3 + $0x2c8] sm:$0xff] %v767_v25 }
 0x15d   :  { %770 = vst [vmem:[#allocation3 + $0x2d0] sm:$0xff] %v769_v26 }
 0x15e   :  { %772 = vst [vmem:[#allocation3 + $0x2d8] sm:$0xff] %v771_v27 }
 0x15f   :  { %774 = vst [vmem:[#allocation3 + $0x2e0] sm:$0xff] %v773_v28 }
 0x160   :  { %776 = vst [vmem:[#allocation3 + $0x2e8] sm:$0xff] %v775_v29 }
 0x161   :  { %778 = vst [vmem:[#allocation3 + $0x2f0] sm:$0xff] %v777_v30 }
 0x162   :  { %780 = vst [vmem:[#allocation3 + $0x2f8] sm:$0xff] %v779_v31 }
 0x163   :  { %782 = vst [vmem:[#allocation3 + $0x300] sm:$0xff] %v781_v32 }
 0x164   :  { %784 = vst [vmem:[#allocation3 + $0x308] sm:$0xff] %v783_v33 }
 0x165   :  { %786 = vst [vmem:[#allocation3 + $0x310] sm:$0xff] %v785_v34 }
 0x166   :  { %788 = vst [vmem:[#allocation3 + $0x318] sm:$0xff] %v787_v35 }
 0x167   :  { %790 = vst [vmem:[#allocation3 + $0x320] sm:$0xff] %v789_v36 }
 0x168   :  { %792 = vst [vmem:[#allocation3 + $0x328] sm:$0xff] %v791_v37 }
 0x169   :  { %794 = vst [vmem:[#allocation3 + $0x330] sm:$0xff] %v793_v38 }
 0x16a   :  { %796 = vst [vmem:[#allocation3 + $0x338] sm:$0xff] %v795_v39 }
 0x16b   :  { %798 = vst [vmem:[#allocation3 + $0x340] sm:$0xff] %v797_v40 }
 0x16c   :  { %800 = vst [vmem:[#allocation3 + $0x348] sm:$0xff] %v799_v41 }
 0x16d   :  { %802 = vst [vmem:[#allocation3 + $0x350] sm:$0xff] %v801_v42 }
 0x16e   :  { %804 = vst [vmem:[#allocation3 + $0x358] sm:$0xff] %v803_v43 }
 0x16f   :  { %806 = vst [vmem:[#allocation3 + $0x360] sm:$0xff] %v805_v44 }
 0x170   :  { %808 = vst [vmem:[#allocation3 + $0x368] sm:$0xff] %v807_v45 }
 0x171   :  { %810 = vst [vmem:[#allocation3 + $0x370] sm:$0xff] %v809_v46 }
 0x172   :  { %812 = vst [vmem:[#allocation3 + $0x378] sm:$0xff] %v811_v47 }
 0x173   :  { %814 = vst [vmem:[#allocation3 + $0x380] sm:$0xff] %v813_v48 }
 0x174   :  { %816 = vst [vmem:[#allocation3 + $0x388] sm:$0xff] %v815_v49 }
 0x175   :  { %818 = vst [vmem:[#allocation3 + $0x390] sm:$0xff] %v817_v50 }
 0x176   :  { %820 = vst [vmem:[#allocation3 + $0x398] sm:$0xff] %v819_v51 }
 0x177   :  { %822 = vst [vmem:[#allocation3 + $0x3a0] sm:$0xff] %v821_v52 }
 0x178   :  { %824 = vst [vmem:[#allocation3 + $0x3a8] sm:$0xff] %v823_v53 }
 0x179   :  { %826 = vst [vmem:[#allocation3 + $0x3b0] sm:$0xff] %v825_v54 }
 0x17a   :  { %828 = vst [vmem:[#allocation3 + $0x3b8] sm:$0xff] %v827_v55 }
 0x17b   :  { %830 = vst [vmem:[#allocation3 + $0x3c0] sm:$0xff] %v829_v56 }
 0x17c   :  { %832 = vst [vmem:[#allocation3 + $0x3c8] sm:$0xff] %v831_v57 }
 0x17d   :  { %834 = vst [vmem:[#allocation3 + $0x3d0] sm:$0xff] %v833_v58 }
 0x17e   :  { %836 = vst [vmem:[#allocation3 + $0x3d8] sm:$0xff] %v835_v59 }
 0x17f   :  { %838 = vst [vmem:[#allocation3 + $0x3e0] sm:$0xff] %v837_v60 }
 0x180   :  { %840 = vst [vmem:[#allocation3 + $0x3e8] sm:$0xff] %v839_v61 }
 0x181   :  { %842 = vst [vmem:[#allocation3 + $0x3f0] sm:$0xff] %v841_v62 }
 0x182   :  { %844 = vst [vmem:[#allocation3 + $0x3f8] sm:$0xff] %v843_v63 }
 0x183   :  { %850 = vsyncadd [#allocation4 + $0x1], 16384  ;;  %856 = vperm.xlu0 %7542, %v852_v0   ;;  %913 = vmatpush.bf16.msra.mxu1 %v7075_v1  ;;  %v7074_v3 = vld [vmem:[%s9747_s3] sm:$0xff]  ;;  %vm903_vm0 = vcmask 261120   ;;  %v5274_v7 = vld [vmem:[%s9749_s5 + $0x70] sm:$0xf]  ;;  %v853_v43 = vlaneseq }
 0x184   :  { %v851_v4 = vld [vmem:[%s9745_s1] sm:$0xf]  ;;  %v7091_v8 = vld [vmem:[%s9749_s5 + $0x74] sm:$0xf0]  ;;  %v7090_v9 = vld [vmem:[%s9749_s5 + $0x74] sm:$0xf] }
 0x185   :  { %v861_v5 = vpack.c.bf16 %v851_v4, %v851_v4  ;;  %v866_v6 = vld [vmem:[%s9746_s2] sm:$0xff]  ;;  %v5275_v10 = vor.u32 %v7091_v8, %v5274_v7  ;;  %v5276_v11 = vld [vmem:[%s9749_s5 + $0x78] sm:$0xf0]  ;;  %v7089_v13 = vld [vmem:[%s9749_s5 + $0x64] sm:$0xf0]  ;;  %v854_v44 = vand.u32 127, %v853_v43 }
 0x186   :  { %886 = vmatpush.msra.mxu0 %v866_v6  ;;  %v5266_v12 = vld [vmem:[%s9749_s5 + $0x60] sm:$0xf]  ;;  %v5279_v14 = vor.u32 %v7090_v9, %v5276_v11  ;;  %v7088_v15 = vld [vmem:[%s9749_s5 + $0x64] sm:$0xf]  ;;  %v5268_v16 = vld [vmem:[%s9749_s5 + $0x68] sm:$0xf0] }
 0x187   :  { %914 = vmatpush.bf16.msra.mxu1 %v7074_v3  ;;  %1025 = vmatpush.bf16.msra.mxu2 %v5275_v10  ;;  %v5267_v17 = vor.u32 %v7089_v13, %v5266_v12  ;;  %v5271_v18 = vor.u32 %v7088_v15, %v5268_v16  ;;  %v5258_v19 = vld [vmem:[%s9749_s5 + $0x50] sm:$0xf]  ;;  %v7087_v20 = vld [vmem:[%s9749_s5 + $0x54] sm:$0xf0]  ;;  %v7086_v21 = vld [vmem:[%s9749_s5 + $0x54] sm:$0xf] }
 0x188   :  { %1038 = vmatpush.bf16.msra.mxu3 %v5279_v14  ;;  %v5260_v22 = vld [vmem:[%s9749_s5 + $0x58] sm:$0xf0]  ;;  %v5259_v23 = vor.u32 %v7087_v20, %v5258_v19  ;;  %v5250_v25 = vld [vmem:[%s9749_s5 + $0x40] sm:$0xf]  ;;  %v7085_v26 = vld [vmem:[%s9749_s5 + $0x44] sm:$0xf0] }
 0x189   :  { %v5263_v24 = vor.u32 %v7086_v21, %v5260_v22  ;;  %v7084_v27 = vld [vmem:[%s9749_s5 + $0x44] sm:$0xf]  ;;  %v5252_v28 = vld [vmem:[%s9749_s5 + $0x48] sm:$0xf0]  ;;  %v5251_v29 = vor.u32 %v7085_v26, %v5250_v25  ;;  %v5242_v31 = vld [vmem:[%s9749_s5 + $0x30] sm:$0xf] }
 0x18a   :  { %5215 = vmatmul.msk.bf16.vlgmr.msra.gmra.mxu1 %vm903_vm0, %v861_v5  ;;  %v5255_v30 = vor.u32 %v7084_v27, %v5252_v28  ;;  %v7083_v32 = vld [vmem:[%s9749_s5 + $0x34] sm:$0xf0]  ;;  %v7082_v33 = vld [vmem:[%s9749_s5 + $0x34] sm:$0xf]  ;;  %v5244_v35 = vld [vmem:[%s9749_s5 + $0x38] sm:$0xf0] }
 0x18b   :  { %1026 = vmatpush.bf16.msra.mxu2 %v5267_v17  ;;  %v5243_v34 = vor.u32 %v7083_v32, %v5242_v31  ;;  %v5234_v36 = vld [vmem:[%s9749_s5 + $0x20] sm:$0xf]  ;;  %v7081_v37 = vld [vmem:[%s9749_s5 + $0x24] sm:$0xf0]  ;;  %v5247_v38 = vor.u32 %v7082_v33, %v5244_v35  ;;  %v7080_v39 = vld [vmem:[%s9749_s5 + $0x24] sm:$0xf] }
 0x18c   :  { %1039 = vmatpush.bf16.msra.mxu3 %v5271_v18  ;;  %v5236_v40 = vld [vmem:[%s9749_s5 + $0x28] sm:$0xf0]  ;;  %v5235_v41 = vor.u32 %v7081_v37, %v5234_v36  ;;  %vm867_vm1 = vcmask 64512   ;;  %v7581_v46 = vmov 0.0   ;;  %v5226_v50 = vld [vmem:[%s9749_s5 + $0x10] sm:$0xf] }
 0x18d   :  { %v5239_v42 = vor.u32 %v7080_v39, %v5236_v40  ;;  %v7079_v51 = vld [vmem:[%s9749_s5 + $0x14] sm:$0xf0]  ;;  %v7078_v52 = vld [vmem:[%s9749_s5 + $0x14] sm:$0xf]  ;;  %v5228_v54 = vld [vmem:[%s9749_s5 + $0x18] sm:$0xf0] }
 0x18e   :  { %v5227_v53 = vor.u32 %v7079_v51, %v5226_v50  ;;  %v5231_v55 = vor.u32 %v7078_v52, %v5228_v54  ;;  %v5218_v56 = vld [vmem:[%s9749_s5] sm:$0xf]  ;;  %v7077_v57 = vld [vmem:[%s9749_s5 + $0x4] sm:$0xf0]  ;;  %v7076_v58 = vld [vmem:[%s9749_s5 + $0x4] sm:$0xf] }
 0x18f   :  { %1027 = vmatpush.bf16.msra.mxu2 %v5259_v23  ;;  %v5219_v59 = vor.u32 %v7077_v57, %v5218_v56  ;;  %v5220_v60 = vld [vmem:[%s9749_s5 + $0x8] sm:$0xf0]  ;;  %v7543_v62 = vld [vmem:[%s9748_s4] ss:$0 sm:$0xff]  ;;  %v7122_v6 = vld [vmem:[%s9752_s8 + $0xec] sm:$0xf0] }
 0x190   :  { %1040 = vmatpush.bf16.msra.mxu3 %v5263_v24  ;;  %v5223_v61 = vor.u32 %v7076_v58, %v5220_v60  ;;  %v5394_v5 = vld [vmem:[%s9752_s8 + $0xe0] sm:$0xf]  ;;  %v7154_v9 = vld [vmem:[%s9752_s8 + $0x1ec] sm:$0xf0]  ;;  %v7120_v10 = vld [vmem:[%s9752_s8 + $0xe4] sm:$0xf] }
 0x191   :  { %v5522_v7 = vld [vmem:[%s9752_s8 + $0x1e0] sm:$0xf]  ;;  %v5395_v8 = vor.u32 %v7122_v6, %v5394_v5  ;;  %v5396_v11 = vld [vmem:[%s9752_s8 + $0xf0] sm:$0xf0]  ;;  %v7152_v14 = vld [vmem:[%s9752_s8 + $0x1e4] sm:$0xf] }
 0x192   :  { %v5523_v12 = vor.u32 %v7154_v9, %v5522_v7  ;;  %v5399_v13 = vor.u32 %v7120_v10, %v5396_v11  ;;  %v5524_v15 = vld [vmem:[%s9752_s8 + $0x1f0] sm:$0xf0]  ;;  %v5378_v17 = vld [vmem:[%s9752_s8 + $0xc0] sm:$0xf]  ;;  %v7118_v18 = vld [vmem:[%s9752_s8 + $0xcc] sm:$0xf0] }
 0x193   :  { %1028 = vmatpush.bf16.msra.mxu2 %v5251_v29  ;;  %1537 = vmatpush.bf16.msrb.mxu0 %v5395_v8  ;;  %v5527_v16 = vor.u32 %v7152_v14, %v5524_v15  ;;  %v5506_v19 = vld [vmem:[%s9752_s8 + $0x1c0] sm:$0xf]  ;;  %v5379_v20 = vor.u32 %v7118_v18, %v5378_v17  ;;  %v7150_v21 = vld [vmem:[%s9752_s8 + $0x1cc] sm:$0xf0]  ;;  %v7116_v22 = vld [vmem:[%s9752_s8 + $0xc4] sm:$0xf] }
 0x194   :  { %1041 = vmatpush.bf16.msra.mxu3 %v5255_v30  ;;  %1550 = vmatpush.bf16.msrb.mxu1 %v5523_v12  ;;  %v5380_v23 = vld [vmem:[%s9752_s8 + $0xd0] sm:$0xf0]  ;;  %v5507_v24 = vor.u32 %v7150_v21, %v5506_v19  ;;  %v7148_v26 = vld [vmem:[%s9752_s8 + $0x1c4] sm:$0xf]  ;;  %v5362_v29 = vld [vmem:[%s9752_s8 + $0xa0] sm:$0xf] }
 0x195   :  { %v5383_v25 = vor.u32 %v7116_v22, %v5380_v23  ;;  %v5508_v27 = vld [vmem:[%s9752_s8 + $0x1d0] sm:$0xf0]  ;;  %v7114_v30 = vld [vmem:[%s9752_s8 + $0xac] sm:$0xf0]  ;;  %v5490_v31 = vld [vmem:[%s9752_s8 + $0x1a0] sm:$0xf] }
 0x196   :  { %v5511_v28 = vor.u32 %v7148_v26, %v5508_v27  ;;  %v5363_v32 = vor.u32 %v7114_v30, %v5362_v29  ;;  %v7146_v33 = vld [vmem:[%s9752_s8 + $0x1ac] sm:$0xf0]  ;;  %v5364_v35 = vld [vmem:[%s9752_s8 + $0xb0] sm:$0xf0]  ;;  %vm1053_vm4 = vcmask 1043456   ;;  %vm1119_vm8 = vcmask 1040384  }
 0x197   :  { %1029 = vmatpush.bf16.msra.mxu2 %v5243_v34  ;;  %1538 = vmatpush.bf16.msrb.mxu0 %v5379_v20  ;;  %v7112_v34 = vld [vmem:[%s9752_s8 + $0xa4] sm:$0xf]  ;;  %v5491_v36 = vor.u32 %v7146_v33, %v5490_v31  ;;  %v5492_v39 = vld [vmem:[%s9752_s8 + $0x1b0] sm:$0xf0]  ;;  %v5458_v5 = vld [vmem:[%s9752_s8 + $0x160] sm:$0xf] }
 0x198   :  { %1042 = vmatpush.bf16.msra.mxu3 %v5247_v38  ;;  %1551 = vmatpush.bf16.msrb.mxu1 %v5507_v24  ;;  %v5367_v37 = vor.u32 %v7112_v34, %v5364_v35  ;;  %v7144_v38 = vld [vmem:[%s9752_s8 + $0x1a4] sm:$0xf]  ;;  %v5348_v52 = vld [vmem:[%s9752_s8 + $0x90] sm:$0xf0]  ;;  %v7138_v6 = vld [vmem:[%s9752_s8 + $0x16c] sm:$0xf0] }
 0x199   :  { %v5495_v40 = vor.u32 %v7144_v38, %v5492_v39  ;;  %v7108_v51 = vld [vmem:[%s9752_s8 + $0x84] sm:$0xf]  ;;  %v5476_v58 = vld [vmem:[%s9752_s8 + $0x190] sm:$0xf0]  ;;  %v5459_v8 = vor.u32 %v7138_v6, %v5458_v5  ;;  %v5314_v19 = vld [vmem:[%s9752_s8 + $0x40] sm:$0xf] }
 0x19a   :  { %v7140_v57 = vld [vmem:[%s9752_s8 + $0x184] sm:$0xf]  ;;  %v5332_v10 = vld [vmem:[%s9752_s8 + $0x70] sm:$0xf0]  ;;  %v7102_v20 = vld [vmem:[%s9752_s8 + $0x4c] sm:$0xf0] }
 0x19b   :  { %1030 = vmatpush.bf16.msra.mxu2 %v5235_v41  ;;  %1539 = vmatpush.bf16.msrb.mxu0 %v5363_v32  ;;  %v5346_v41 = vld [vmem:[%s9752_s8 + $0x80] sm:$0xf]  ;;  %v7104_v9 = vld [vmem:[%s9752_s8 + $0x64] sm:$0xf]  ;;  %v5315_v30 = vor.u32 %v7102_v20, %v5314_v19  ;;  %v5316_v32 = vld [vmem:[%s9752_s8 + $0x50] sm:$0xf0] }
 0x19c   :  { %1043 = vmatpush.bf16.msra.mxu3 %v5239_v42  ;;  %1552 = vmatpush.bf16.msrb.mxu1 %v5491_v36  ;;  %v7136_v11 = vld [vmem:[%s9752_s8 + $0x164] sm:$0xf]  ;;  %v5335_v17 = vor.u32 %v7104_v9, %v5332_v10  ;;  %v5442_v21 = vld [vmem:[%s9752_s8 + $0x140] sm:$0xf]  ;;  %v5444_v34 = vld [vmem:[%s9752_s8 + $0x150] sm:$0xf0] }
 0x19d   :  { %v7100_v29 = vld [vmem:[%s9752_s8 + $0x44] sm:$0xf]  ;;  %v7126_v6 = vld [vmem:[%s9752_s8 + $0x10c] sm:$0xf0]  ;;  %v5284_v10 = vld [vmem:[%s9752_s8 + $0x10] sm:$0xf0] }
 0x19e   :  { %v7132_v33 = vld [vmem:[%s9752_s8 + $0x144] sm:$0xf]  ;;  %v5319_v39 = vor.u32 %v7100_v29, %v5316_v32  ;;  %v5530_v19 = vld [vmem:[%s9752_s8 + $0x1e8] sm:$0xf]  ;;  %v5532_v29 = vld [vmem:[%s9752_s8 + $0x1f8] sm:$0xf0] }
 0x19f   :  { %1031 = vmatpush.bf16.msra.mxu2 %v5227_v53  ;;  %v7119_v32 = vld [vmem:[%s9752_s8 + $0xd4] sm:$0xf0] }
 0x1a0   :  { %1044 = vmatpush.bf16.msra.mxu3 %v5231_v55 }
 0x1a3   :  { %1032 = vmatpush.bf16.msra.mxu2 %v5219_v59 }
 0x1a4   :  { %1045 = vmatpush.bf16.msra.mxu3 %v5223_v61  ;;  %v5351_v61 = vor.u32 %v7108_v51, %v5348_v52 }
 0x1a7   :  { %1563 = vmatpush.bf16.msrb.mxu2 %v5399_v13 }
 0x1a8   :  { %1576 = vmatpush.bf16.msrb.mxu3 %v5527_v16  ;;  %v5460_v16 = vld [vmem:[%s9752_s8 + $0x170] sm:$0xf0] }
 0x1a9   :  { %v5463_v18 = vor.u32 %v7136_v11, %v5460_v16  ;;  %v7124_v11 = vld [vmem:[%s9752_s8 + $0x104] sm:$0xf] }
 0x1ab   :  { %1564 = vmatpush.bf16.msrb.mxu2 %v5383_v25 }
 0x1ac   :  { %1577 = vmatpush.bf16.msrb.mxu3 %v5511_v28  ;;  %v7134_v28 = vld [vmem:[%s9752_s8 + $0x14c] sm:$0xf0] }
 0x1ad   :  { %v5443_v31 = vor.u32 %v7134_v28, %v5442_v21  ;;  %v7155_v21 = vld [vmem:[%s9752_s8 + $0x1f4] sm:$0xf0]  ;;  %v7153_v28 = vld [vmem:[%s9752_s8 + $0x1ec] sm:$0xf] }
 0x1af   :  { %1565 = vmatpush.bf16.msrb.mxu2 %v5367_v37 }
 0x1b0   :  { %1578 = vmatpush.bf16.msrb.mxu3 %v5495_v40  ;;  %v5447_v40 = vor.u32 %v7132_v33, %v5444_v34  ;;  %v5514_v33 = vld [vmem:[%s9752_s8 + $0x1c8] sm:$0xf] }
 0x1b3   :  { %1566 = vmatpush.bf16.msrb.mxu2 %v5351_v61 }
 0x1b7   :  { %1567 = vmatpush.bf16.msrb.mxu2 %v5335_v17  ;;  %v5402_v17 = vld [vmem:[%s9752_s8 + $0xe8] sm:$0xf] }
 0x1bb   :  { %1568 = vmatpush.bf16.msrb.mxu2 %v5319_v39  ;;  %v7117_v39 = vld [vmem:[%s9752_s8 + $0xcc] sm:$0xf] }
 0x1f5   :  { %v857_v45 = vpop.permute.xlu0 %856 }
 0x1f6   :  { %vm858_vm2 = vcmp.eq.s32.totalorder %v854_v44, %v857_v45  ;;  %v7110_v44 = vld [vmem:[%s9752_s8 + $0x8c] sm:$0xf0]  ;;  %v5474_v45 = vld [vmem:[%s9752_s8 + $0x180] sm:$0xf] }
 0x1f7   :  { %v5205_v47 = vsel %vm858_vm2, 1.0, %v7581_v46  ;;  %v7142_v46 = vld [vmem:[%s9752_s8 + $0x18c] sm:$0xf0]  ;;  %v5347_v55 = vor.u32 %v7110_v44, %v5346_v41  ;;  %v5298_v41 = vld [vmem:[%s9752_s8 + $0x20] sm:$0xf] }
 0x1f8   :  { %5206 = vmatmul.msk.f32.vlgmr.msra.gmra.mxu0 %vm867_vm1, %v5205_v47  ;;  %v5475_v56 = vor.u32 %v7142_v46, %v5474_v45  ;;  %v7098_v44 = vld [vmem:[%s9752_s8 + $0x2c] sm:$0xf0] }
 0x1f9   :  { %1540 = vmatpush.bf16.msrb.mxu0 %v5347_v55  ;;  %v5299_v51 = vor.u32 %v7098_v44, %v5298_v41  ;;  %v7128_v55 = vld [vmem:[%s9752_s8 + $0x124] sm:$0xf]  ;;  %v7149_v41 = vld [vmem:[%s9752_s8 + $0x1cc] sm:$0xf] }
 0x1fa   :  { %1553 = vmatpush.bf16.msrb.mxu1 %v5475_v56 }
 0x1fe   :  { %1554 = vmatpush.bf16.msrb.mxu1 %v5459_v8 }
 0x202   :  { %1555 = vmatpush.bf16.msrb.mxu1 %v5443_v31  ;;  %v5386_v31 = vld [vmem:[%s9752_s8 + $0xc8] sm:$0xf] }
 0x207   :  { %v916_v48 = vpop.f32.mrf.mxu1 }
 0x20f   :  { %v918_v49 = vpop.f32.mrf.mxu1 }
 0x275   :  { %v888_v63 = vpop.f32.mrf.mxu0 }
 0x276   :  { %v917_v0 = vadd.f32 %v916_v48, %v888_v63  ;;  %v5330_v63 = vld [vmem:[%s9752_s8 + $0x60] sm:$0xf] }
 0x278   :  { %v924_v1 = vadd.f32 %v7543_v62, %v917_v0  ;;  %v5479_v62 = vor.u32 %v7140_v57, %v5476_v58  ;;  %v7106_v0 = vld [vmem:[%s9752_s8 + $0x6c] sm:$0xf0] }
 0x279   :  { %v5331_v7 = vor.u32 %v7106_v0, %v5330_v63  ;;  %v5282_v63 = vld [vmem:[%s9752_s8] sm:$0xf]  ;;  %v7094_v0 = vld [vmem:[%s9752_s8 + $0xc] sm:$0xf0] }
 0x27a   :  { %vm925_vm3 = vcmp.gt.f32.partialorder %v924_v1, 0.0  ;;  %v926_v2 = vmul.f32 0.2, %v924_v1  ;;  %1579 = vmatpush.bf16.msrb.mxu3 %v5479_v62  ;;  %v5283_v8 = vor.u32 %v7094_v0, %v5282_v63  ;;  %v5482_v63 = vld [vmem:[%s9752_s8 + $0x188] sm:$0xf] }
 0x27b   :  { %1541 = vmatpush.bf16.msrb.mxu0 %v5331_v7  ;;  %v7092_v7 = vld [vmem:[%s9752_s8 + $0x4] sm:$0xf]  ;;  %v7143_v0 = vld [vmem:[%s9752_s8 + $0x194] sm:$0xf0] }
 0x27c   :  { %v927_v3 = vsel %vm925_vm3, %v924_v1, %v926_v2 }
 0x27d   :  { %v928_v4 = vpack.c.bf16 %v927_v3, %v927_v3 }
 0x27e   :  { %1580 = vmatpush.bf16.msrb.mxu3 %v5463_v18  ;;  %v7123_v18 = vld [vmem:[%s9752_s8 + $0xf4] sm:$0xf0] }
 0x27f   :  { %1033 = vmatmul.bf16.vlgmr.msra.gmra.mxu2 %v928_v4  ;;  %1046 = vmatmul.bf16.vlgmr.msra.gmra.mxu3 %v928_v4  ;;  %v5403_v20 = vor.u32 %v7123_v18, %v5402_v17  ;;  %v5466_v18 = vld [vmem:[%s9752_s8 + $0x168] sm:$0xf] }
 0x280   :  { %1542 = vmatpush.bf16.msrb.mxu0 %v5315_v30  ;;  %v5535_v30 = vor.u32 %v7153_v28, %v5532_v29  ;;  %v5322_v28 = vld [vmem:[%s9752_s8 + $0x48] sm:$0xf] }
 0x282   :  { %1581 = vmatpush.bf16.msrb.mxu3 %v5447_v40  ;;  %v5388_v40 = vld [vmem:[%s9752_s8 + $0xd8] sm:$0xf0] }
 0x283   :  { %v5391_v44 = vor.u32 %v7117_v39, %v5388_v40  ;;  %v5324_v40 = vld [vmem:[%s9752_s8 + $0x58] sm:$0xf0] }
 0x284   :  { %1543 = vmatpush.bf16.msrb.mxu0 %v5299_v51  ;;  %v7113_v51 = vld [vmem:[%s9752_s8 + $0xac] sm:$0xf] }
 0x288   :  { %1544 = vmatpush.bf16.msrb.mxu0 %v5283_v8 }
 0x28c   :  { %1589 = vmatpush.bf16.msra.mxu0 %v5403_v20  ;;  %v7105_v20 = vld [vmem:[%s9752_s8 + $0x6c] sm:$0xf] }
 0x302   :  { %v9008_v42 = vpop.f32.mrf.mxu2  ;;  %v9010_v43 = vpop.f32.mrf.mxu3 }
 0x303   :  { %v1054_v47 = vsel %vm1053_vm4, %v9008_v42, 0.0  ;;  %v1070_v48 = vmul.f32 %v9008_v42, %v9008_v42  ;;  %v1061_v49 = vsel %vm1053_vm4, %v9010_v43, 0.0  ;;  %v1071_v50 = vmul.f32 %v9010_v43, %v9010_v43 }
 0x304   :  { %v1055_v53 = vrot.slane %v1054_v47, 4  ;;  %v1062_v54 = vrot.slane %v1061_v49, 4 }
 0x305   :  { %v1072_v59 = vsel %vm1053_vm4, %v1070_v48, 0.0  ;;  %v1079_v60 = vsel %vm1053_vm4, %v1071_v50, 0.0  ;;  %v7130_v50 = vld [vmem:[%s9752_s8 + $0x12c] sm:$0xf0] }
 0x306   :  { %v1056_v1 = vadd.f32 %v1055_v53, %v1054_v47  ;;  %v1073_v2 = vrot.slane %v1072_v59, 4  ;;  %v1063_v3 = vadd.f32 %v1062_v54, %v1061_v49  ;;  %v1080_v4 = vrot.slane %v1079_v60, 4  ;;  %v5426_v49 = vld [vmem:[%s9752_s8 + $0x120] sm:$0xf]  ;;  %v7096_v53 = vld [vmem:[%s9752_s8 + $0x24] sm:$0xf] }
 0x307   :  { %v5427_v52 = vor.u32 %v7130_v50, %v5426_v49  ;;  %v5300_v54 = vld [vmem:[%s9752_s8 + $0x30] sm:$0xf0]  ;;  %v5498_v49 = vld [vmem:[%s9752_s8 + $0x1a8] sm:$0xf]  ;;  %v7147_v50 = vld [vmem:[%s9752_s8 + $0x1b4] sm:$0xf0] }
 0x308   :  { %v1057_v12 = vrot.slane %v1056_v1, 2  ;;  %v1074_v13 = vadd.f32 %v1073_v2, %v1072_v59  ;;  %v1064_v14 = vrot.slane %v1063_v3, 2  ;;  %v1081_v15 = vadd.f32 %v1080_v4, %v1079_v60  ;;  %v5428_v60 = vld [vmem:[%s9752_s8 + $0x130] sm:$0xf0] }
 0x309   :  { %v5303_v61 = vor.u32 %v7096_v53, %v5300_v54  ;;  %v5431_v62 = vor.u32 %v7128_v55, %v5428_v60  ;;  %1556 = vmatpush.bf16.msrb.mxu1 %v5427_v52  ;;  %v5499_v53 = vor.u32 %v7147_v50, %v5498_v49  ;;  %v5372_v54 = vld [vmem:[%s9752_s8 + $0xb8] sm:$0xf0]  ;;  %v7145_v55 = vld [vmem:[%s9752_s8 + $0x1ac] sm:$0xf]  ;;  %v5306_v49 = vld [vmem:[%s9752_s8 + $0x28] sm:$0xf] }
 0x30a   :  { %v1058_v22 = vadd.f32 %v1057_v12, %v1056_v1  ;;  %v1075_v23 = vrot.slane %v1074_v13, 2  ;;  %v1065_v24 = vadd.f32 %v1064_v14, %v1063_v3  ;;  %v1082_v25 = vrot.slane %v1081_v15, 2  ;;  %v1036_v26 = vpop.f32.mrf.mxu2  ;;  %v1049_v27 = vpop.f32.mrf.mxu3  ;;  %v5410_v1 = vld [vmem:[%s9752_s8 + $0x100] sm:$0xf]  ;;  %v5412_v12 = vld [vmem:[%s9752_s8 + $0x110] sm:$0xf0] }
 0x30b   :  { %1569 = vmatpush.bf16.msrb.mxu2 %v5303_v61  ;;  %1582 = vmatpush.bf16.msrb.mxu3 %v5431_v62  ;;  %v5411_v9 = vor.u32 %v7126_v6, %v5410_v1  ;;  %v5415_v16 = vor.u32 %v7124_v11, %v5412_v12  ;;  %v5531_v26 = vor.u32 %v7155_v21, %v5530_v19  ;;  %v5354_v61 = vld [vmem:[%s9752_s8 + $0x88] sm:$0xf]  ;;  %v7111_v62 = vld [vmem:[%s9752_s8 + $0x94] sm:$0xf0]  ;;  %v7109_v1 = vld [vmem:[%s9752_s8 + $0x8c] sm:$0xf] }
 0x30c   :  { %v1059_v35 = vrot.slane %v1058_v22, 1  ;;  %v1076_v36 = vadd.f32 %v1075_v23, %v1074_v13  ;;  %v1066_v37 = vrot.slane %v1065_v24, 1  ;;  %v1083_v38 = vadd.f32 %v1082_v25, %v1081_v15  ;;  %v5404_v23 = vld [vmem:[%s9752_s8 + $0xf8] sm:$0xf0]  ;;  %v7141_v6 = vld [vmem:[%s9752_s8 + $0x18c] sm:$0xf] }
 0x30d   :  { %v5287_v15 = vor.u32 %v7092_v7, %v5284_v10  ;;  %1557 = vmatpush.bf16.msrb.mxu1 %v5411_v9  ;;  %v5484_v7 = vld [vmem:[%s9752_s8 + $0x198] sm:$0xf0]  ;;  %v7139_v19 = vld [vmem:[%s9752_s8 + $0x174] sm:$0xf0] }
 0x30e   :  { %v1060_v45 = vadd.f32 %v1059_v35, %v1058_v22  ;;  %v1077_v46 = vrot.slane %v1076_v36, 1  ;;  %v1067_v47 = vadd.f32 %v1066_v37, %v1065_v24  ;;  %v1084_v48 = vrot.slane %v1083_v38, 1  ;;  %v7121_v22 = vld [vmem:[%s9752_s8 + $0xec] sm:$0xf]  ;;  %v7151_v37 = vld [vmem:[%s9752_s8 + $0x1d4] sm:$0xf0] }
 0x30f   :  { %v5407_v27 = vor.u32 %v7121_v22, %v5404_v23  ;;  %1570 = vmatpush.bf16.msrb.mxu2 %v5287_v15  ;;  %1583 = vmatpush.bf16.msrb.mxu3 %v5415_v16  ;;  %v5487_v11 = vor.u32 %v7141_v6, %v5484_v7  ;;  %v7107_v15 = vld [vmem:[%s9752_s8 + $0x74] sm:$0xf0]  ;;  %v5467_v22 = vor.u32 %v7139_v19, %v5466_v18  ;;  %v5340_v23 = vld [vmem:[%s9752_s8 + $0x78] sm:$0xf0]  ;;  %v7093_v7 = vld [vmem:[%s9752_s8 + $0xc] sm:$0xf] }
 0x310   :  { %v9112_v56 = vmul.f32 0.25, %v1060_v45  ;;  %v1078_v57 = vadd.f32 %v1077_v46, %v1076_v36  ;;  %v9114_v58 = vmul.f32 0.25, %v1067_v47  ;;  %v1085_v59 = vadd.f32 %v1084_v48, %v1083_v38  ;;  %v5516_v45 = vld [vmem:[%s9752_s8 + $0x1d8] sm:$0xf0]  ;;  %v5370_v46 = vld [vmem:[%s9752_s8 + $0xa8] sm:$0xf] }
 0x311   :  { %1602 = vmatpush.bf16.msra.mxu1 %v5531_v26  ;;  %v5387_v36 = vor.u32 %v7119_v32, %v5386_v31  ;;  %v5515_v38 = vor.u32 %v7151_v37, %v5514_v33  ;;  %v7115_v47 = vld [vmem:[%s9752_s8 + $0xb4] sm:$0xf0]  ;;  %v5519_v48 = vor.u32 %v7149_v41, %v5516_v45  ;;  %v5343_v26 = vor.u32 %v7105_v20, %v5340_v23  ;;  %v5450_v32 = vld [vmem:[%s9752_s8 + $0x148] sm:$0xf]  ;;  %v7133_v41 = vld [vmem:[%s9752_s8 + $0x14c] sm:$0xf] }
 0x312   :  { %v1086_v2 = vmul.f32 0.25, %v1078_v57  ;;  %v1088_v3 = vmul.f32 %v9112_v56, %v9112_v56  ;;  %v1087_v4 = vmul.f32 0.25, %v1085_v59  ;;  %v1089_v5 = vmul.f32 %v9114_v58, %v9114_v58  ;;  %v5500_v57 = vld [vmem:[%s9752_s8 + $0x1b8] sm:$0xf0]  ;;  %v7103_v31 = vld [vmem:[%s9752_s8 + $0x54] sm:$0xf0] }
 0x313   :  { %1615 = vmatpush.bf16.msra.mxu2 %v5407_v27  ;;  %1628 = vmatpush.bf16.msra.mxu3 %v5535_v30  ;;  %v5371_v52 = vor.u32 %v7115_v47, %v5370_v46  ;;  %v5375_v59 = vor.u32 %v7113_v51, %v5372_v54  ;;  %v5503_v60 = vor.u32 %v7145_v55, %v5500_v57  ;;  %v5468_v27 = vld [vmem:[%s9752_s8 + $0x178] sm:$0xf0]  ;;  %v7135_v37 = vld [vmem:[%s9752_s8 + $0x154] sm:$0xf0]  ;;  %v5434_v51 = vld [vmem:[%s9752_s8 + $0x128] sm:$0xf] }
 0x314   :  { %v1090_v13 = vsub.f32 %v1086_v2, %v1088_v3  ;;  %v1091_v14 = vsub.f32 %v1087_v4, %v1089_v5  ;;  %1590 = vmatpush.bf16.msra.mxu0 %v5387_v36  ;;  %v5356_v2 = vld [vmem:[%s9752_s8 + $0x98] sm:$0xf0]  ;;  %v5355_v4 = vor.u32 %v7111_v62, %v5354_v61  ;;  %v5483_v5 = vor.u32 %v7143_v0, %v5482_v63  ;;  %v7099_v50 = vld [vmem:[%s9752_s8 + $0x34] sm:$0xf0]  ;;  %v7097_v54 = vld [vmem:[%s9752_s8 + $0x2c] sm:$0xf] }
 0x315   :  { %1603 = vmatpush.bf16.msra.mxu1 %v5515_v38  ;;  %v5359_v10 = vor.u32 %v7109_v1, %v5356_v2  ;;  %v7101_v38 = vld [vmem:[%s9752_s8 + $0x4c] sm:$0xf]  ;;  %v5451_v39 = vor.u32 %v7135_v37, %v5450_v32  ;;  %v5308_v55 = vld [vmem:[%s9752_s8 + $0x38] sm:$0xf0]  ;;  %v7095_v2 = vld [vmem:[%s9752_s8 + $0x14] sm:$0xf0] }
 0x316   :  { %v1092_v24 = vmax.f32 %v1090_v13, 0.0  ;;  %v1093_v25 = vmax.f32 %v1091_v14, 0.0  ;;  %v5338_v14 = vld [vmem:[%s9752_s8 + $0x68] sm:$0xf]  ;;  %v5327_v47 = vor.u32 %v7101_v38, %v5324_v40  ;;  %v7129_v61 = vld [vmem:[%s9752_s8 + $0x12c] sm:$0xf]  ;;  %v5311_v0 = vor.u32 %v7097_v54, %v5308_v55 }
 0x317   :  { %1616 = vmatpush.bf16.msra.mxu2 %v5391_v44  ;;  %1629 = vmatpush.bf16.msra.mxu3 %v5519_v48  ;;  %v5339_v17 = vor.u32 %v7107_v15, %v5338_v14  ;;  %v5452_v44 = vld [vmem:[%s9752_s8 + $0x158] sm:$0xf0]  ;;  %v7127_v6 = vld [vmem:[%s9752_s8 + $0x114] sm:$0xf0]  ;;  %v1052_v19 = vld [vmem:[%s9751_s7] sm:$0x3] }
 0x318   :  { %v9180_v34 = vadd.f32 0.8, %v1092_v24  ;;  %v9182_v35 = vadd.f32 0.8, %v1093_v25  ;;  %1591 = vmatpush.bf16.msra.mxu0 %v5371_v52  ;;  %v7137_v24 = vld [vmem:[%s9752_s8 + $0x16c] sm:$0xf]  ;;  %v5455_v48 = vor.u32 %v7133_v41, %v5452_v44 }
 0x319   :  { %1604 = vmatpush.bf16.msra.mxu1 %v5499_v53  ;;  %v5471_v30 = vor.u32 %v7137_v24, %v5468_v27  ;;  %v1051_v52 = vld [vmem:[%s9750_s6] sm:$0x3]  ;;  %v7131_v53 = vld [vmem:[%s9752_s8 + $0x134] sm:$0xf0]  ;;  %v5436_v62 = vld [vmem:[%s9752_s8 + $0x138] sm:$0xf0] }
 0x31a   :  { %7544 = vrsqrt.f32 %v9180_v34  ;;  %vm1112_vm6 = vweird.f32 %v9182_v35  ;;  %vm1102_vm10 = vweird.f32 %v9180_v34  ;;  %v5439_v1 = vor.u32 %v7129_v61, %v5436_v62 }
 0x31b   :  { %7546 = vrsqrt.f32 %v9182_v35  ;;  %1617 = vmatpush.bf16.msra.mxu2 %v5375_v59  ;;  %1630 = vmatpush.bf16.msra.mxu3 %v5503_v60  ;;  %v5307_v59 = vor.u32 %v7099_v50, %v5306_v49  ;;  %v5435_v60 = vor.u32 %v7131_v53, %v5434_v51 }
 0x31c   :  { %1592 = vmatpush.bf16.msra.mxu0 %v5355_v4  ;;  %v5418_v4 = vld [vmem:[%s9752_s8 + $0x108] sm:$0xf] }
 0x31d   :  { %1605 = vmatpush.bf16.msra.mxu1 %v5483_v5 }
 0x31f   :  { %1618 = vmatpush.bf16.msra.mxu2 %v5359_v10  ;;  %1631 = vmatpush.bf16.msra.mxu3 %v5487_v11  ;;  %v7125_v10 = vld [vmem:[%s9752_s8 + $0x10c] sm:$0xf] }
 0x320   :  { %v9243_v3 = vpop.eup %7544  ;;  %1593 = vmatpush.bf16.msra.mxu0 %v5339_v17 }
 0x321   :  { %v9251_v8 = vpop.eup %7546  ;;  %v1097_v9 = vmul.f32 %v9243_v3, %v9180_v34  ;;  %1606 = vmatpush.bf16.msra.mxu1 %v5467_v22  ;;  %vm1103_vm9 = vweird.f32 %v9243_v3  ;;  %v5290_v34 = vld [vmem:[%s9752_s8 + $0x8] sm:$0xf] }
 0x322   :  { %v1107_v12 = vmul.f32 %v9251_v8, %v9182_v35  ;;  %vm1113_vm5 = vweird.f32 %v9251_v8  ;;  %v5323_v35 = vor.u32 %v7103_v31, %v5322_v28  ;;  %vm1104_vm11 = vmor %vm1102_vm10, %vm1103_vm9 }
 0x323   :  { %v1098_v13 = vmul.f32 %v9243_v3, %v1097_v9  ;;  %vm9296_vm7 = vmor %vm1112_vm6, %vm1113_vm5  ;;  %1619 = vmatpush.bf16.msra.mxu2 %v5343_v26  ;;  %1632 = vmatpush.bf16.msra.mxu3 %v5471_v30 }
 0x324   :  { %v1108_v16 = vmul.f32 %v9251_v8, %v1107_v12  ;;  %1594 = vmatpush.bf16.msra.mxu0 %v5323_v35  ;;  %v5291_v12 = vor.u32 %v7095_v2, %v5290_v34 }
 0x325   :  { %v1099_v21 = vmul.f32 0.5, %v1098_v13  ;;  %1607 = vmatpush.bf16.msra.mxu1 %v5451_v39  ;;  %v5419_v13 = vor.u32 %v7127_v6, %v5418_v4 }
 0x326   :  { %v1109_v25 = vmul.f32 0.5, %v1108_v16 }
 0x327   :  { %v1100_v29 = vsub.f32 1.5, %v1099_v21  ;;  %1620 = vmatpush.bf16.msra.mxu2 %v5327_v47  ;;  %1633 = vmatpush.bf16.msra.mxu3 %v5455_v48 }
 0x328   :  { %v1110_v33 = vsub.f32 1.5, %v1109_v25  ;;  %1595 = vmatpush.bf16.msra.mxu0 %v5307_v59 }
 0x329   :  { %v1101_v45 = vmul.f32 %v9243_v3, %v1100_v29  ;;  %1608 = vmatpush.bf16.msra.mxu1 %v5435_v60 }
 0x32a   :  { %v1111_v46 = vmul.f32 %v9251_v8, %v1110_v33 }
 0x32b   :  { %v1105_v5 = vsel %vm1104_vm11, %v9243_v3, %v1101_v45  ;;  %v5420_v3 = vld [vmem:[%s9752_s8 + $0x118] sm:$0xf0]  ;;  %1621 = vmatpush.bf16.msra.mxu2 %v5311_v0  ;;  %1634 = vmatpush.bf16.msra.mxu3 %v5439_v1  ;;  %vm1775_vm11 = vcmask 1042434  }
 0x32c   :  { %v1115_v57 = vsel %vm9296_vm7, %v9251_v8, %v1111_v46  ;;  %v5292_v8 = vld [vmem:[%s9752_s8 + $0x18] sm:$0xf0]  ;;  %v5423_v17 = vor.u32 %v7125_v10, %v5420_v3  ;;  %1596 = vmatpush.bf16.msra.mxu0 %v5291_v12 }
 0x32d   :  { %v1118_v63 = vrot.slane %v1115_v57, 7  ;;  %v5295_v14 = vor.u32 %v7093_v7, %v5292_v8  ;;  %1609 = vmatpush.bf16.msra.mxu1 %v5419_v13 }
 0x32f   :  { %v1120_v9 = vsel %vm1119_vm8, %v1105_v5, %v1118_v63  ;;  %1622 = vmatpush.bf16.msra.mxu2 %v5295_v14  ;;  %1635 = vmatpush.bf16.msra.mxu3 %v5423_v17 }
 0x330   :  { %v1122_v11 = vmul.f32 %v1120_v9, %v1051_v52 }
 0x332   :  { %v1124_v15 = vperm.slane %v1122_v11, 0  ;;  %v1125_v16 = vperm.slane %v1122_v11, 1 }
 0x334   :  { %v1129_v18 = vmul.f32 %v1125_v16, %v9114_v58  ;;  %v1128_v20 = vmul.f32 %v1124_v15, %v9112_v56  ;;  %v1136_v24 = vmul.f32 %v1124_v15, %v9008_v42  ;;  %v1137_v25 = vmul.f32 %v1125_v16, %v9010_v43 }
 0x336   :  { %v1132_v21 = vrot.slane %v1129_v18, 7 }
 0x338   :  { %v1133_v22 = vsel %vm1119_vm8, %v1128_v20, %v1132_v21 }
 0x339   :  { %v1135_v23 = vsub.f32 %v1052_v19, %v1133_v22 }
 0x33b   :  { %v1139_v26 = vperm.slane %v1135_v23, 0  ;;  %v1140_v58 = vperm.slane %v1135_v23, 1 }
 0x33d   :  { %v1144_v27 = vadd.f32 %v1140_v58, %v1137_v25  ;;  %v1143_v28 = vadd.f32 %v1139_v26, %v1136_v24 }
 0x33f   :  { %v1148_v29 = vmul.f32 0.2, %v1144_v27  ;;  %vm1145_vm12 = vcmp.gt.f32.partialorder %v1143_v28, 0.0  ;;  %v1147_v30 = vmul.f32 0.2, %v1143_v28  ;;  %vm1146_vm13 = vcmp.gt.f32.partialorder %v1144_v27, 0.0 }
 0x341   :  { %v1149_v31 = vsel %vm1145_vm12, %v1143_v28, %v1147_v30  ;;  %v1150_v32 = vsel %vm1146_vm13, %v1144_v27, %v1148_v29  ;;  %vm1777_vm13 = vcmask 1041408  }
 0x342   :  { %v1151_v56 = vpack.c.bf16 %v1149_v31, %v1149_v31  ;;  %v1152_v33 = vpack.c.bf16 %v1150_v32, %v1150_v32 }
 0x344   :  { %1545 = vmatmul.bf16.vlgmr.msrb.gmra.mxu0 %v1151_v56  ;;  %1558 = vmatmul.bf16.vlgmr.msrb.gmra.mxu1 %v1152_v33 }
 0x345   :  { %1571 = vmatmul.bf16.vlgmr.msrb.gmra.mxu2 %v1151_v56  ;;  %1584 = vmatmul.bf16.vlgmr.msrb.gmra.mxu3 %v1152_v33 }
 0x354   :  { %1597 = vmatmul.bf16.vlgmr.msra.gmra.mxu0 %v1151_v56  ;;  %1610 = vmatmul.bf16.vlgmr.msra.gmra.mxu1 %v1152_v33 }
 0x355   :  { %1623 = vmatmul.bf16.vlgmr.msra.gmra.mxu2 %v1151_v56  ;;  %1636 = vmatmul.bf16.vlgmr.msra.gmra.mxu3 %v1152_v33 }
 0x3c1   :  { %v1546_v42 = vpop.f32.mrf.mxu0  ;;  %v1559_v43 = vpop.f32.mrf.mxu1 }
 0x3c2   :  { %v9385_v36 = vadd.f32 %v1559_v43, %v1546_v42 }
 0x3c4   :  { %v1643_v35 = vsel %vm1053_vm4, %v9385_v36, 0.0  ;;  %v1675_v37 = vmul.f32 %v9385_v36, %v9385_v36 }
 0x3c5   :  { %v1644_v38 = vrot.slane %v1643_v35, 4 }
 0x3c6   :  { %v1679_v39 = vsel %vm1053_vm4, %v1675_v37, 0.0 }
 0x3c7   :  { %v1645_v40 = vadd.f32 %v1644_v38, %v1643_v35  ;;  %v1680_v41 = vrot.slane %v1679_v39, 4 }
 0x3c8   :  { %v1572_v44 = vpop.f32.mrf.mxu2  ;;  %v1585_v45 = vpop.f32.mrf.mxu3 }
 0x3c9   :  { %v1646_v46 = vrot.slane %v1645_v40, 2  ;;  %v1681_v47 = vadd.f32 %v1680_v41, %v1679_v39  ;;  %v9392_v48 = vadd.f32 %v1585_v45, %v1572_v44  ;;  %v1548_v49 = vpop.f32.mrf.mxu0  ;;  %v1561_v50 = vpop.f32.mrf.mxu1 }
 0x3cb   :  { %v1647_v51 = vadd.f32 %v1646_v46, %v1645_v40  ;;  %v1682_v52 = vrot.slane %v1681_v47, 2  ;;  %v1650_v53 = vsel %vm1053_vm4, %v9392_v48, 0.0  ;;  %v1676_v54 = vmul.f32 %v9392_v48, %v9392_v48 }
 0x3cc   :  { %v1651_v55 = vrot.slane %v1650_v53, 4 }
 0x3cd   :  { %v1648_v57 = vrot.slane %v1647_v51, 1  ;;  %v1686_v59 = vsel %vm1053_vm4, %v1676_v54, 0.0  ;;  %v1683_v60 = vadd.f32 %v1682_v52, %v1681_v47 }
 0x3ce   :  { %v1652_v61 = vadd.f32 %v1651_v55, %v1650_v53  ;;  %v1687_v62 = vrot.slane %v1686_v59, 4 }
 0x3cf   :  { %v1649_v2 = vadd.f32 %v1648_v57, %v1647_v51  ;;  %v1684_v6 = vrot.slane %v1683_v60, 1 }
 0x3d0   :  { %v1653_v34 = vrot.slane %v1652_v61, 2  ;;  %v1688_v63 = vadd.f32 %v1687_v62, %v1686_v59  ;;  %v1574_v0 = vpop.f32.mrf.mxu2  ;;  %v1587_v1 = vpop.f32.mrf.mxu3 }
 0x3d1   :  { %v1598_v4 = vpop.f32.mrf.mxu0  ;;  %v1611_v5 = vpop.f32.mrf.mxu1  ;;  %v9405_v13 = vmul.f32 0.25, %v1649_v2  ;;  %v1685_v15 = vadd.f32 %v1684_v6, %v1683_v60 }
 0x3d2   :  { %v1654_v7 = vadd.f32 %v1653_v34, %v1652_v61  ;;  %v1689_v8 = vrot.slane %v1688_v63, 2  ;;  %v9399_v9 = vadd.f32 %v1611_v5, %v1598_v4 }
 0x3d3   :  { %v1707_v29 = vmul.f32 0.25, %v1685_v15  ;;  %v1711_v30 = vmul.f32 %v9405_v13, %v9405_v13 }
 0x3d4   :  { %v1655_v10 = vrot.slane %v1654_v7, 1  ;;  %v1690_v3 = vadd.f32 %v1689_v8, %v1688_v63  ;;  %v1657_v11 = vsel %vm1053_vm4, %v9399_v9, 0.0  ;;  %v1677_v12 = vmul.f32 %v9399_v9, %v9399_v9 }
 0x3d5   :  { %v1658_v14 = vrot.slane %v1657_v11, 4  ;;  %v1715_v40 = vsub.f32 %v1707_v29, %v1711_v30 }
 0x3d6   :  { %v1656_v16 = vadd.f32 %v1655_v10, %v1654_v7  ;;  %v1691_v17 = vrot.slane %v1690_v3, 1  ;;  %v1693_v18 = vsel %vm1053_vm4, %v1677_v12, 0.0 }
 0x3d7   :  { %v1659_v19 = vadd.f32 %v1658_v14, %v1657_v11  ;;  %v1694_v20 = vrot.slane %v1693_v18, 4  ;;  %v1719_v59 = vmax.f32 %v1715_v40, 0.0 }
 0x3d8   :  { %v9408_v21 = vmul.f32 0.25, %v1656_v16  ;;  %v1692_v22 = vadd.f32 %v1691_v17, %v1690_v3  ;;  %v1624_v23 = vpop.f32.mrf.mxu2  ;;  %v1637_v24 = vpop.f32.mrf.mxu3 }
 0x3d9   :  { %v1660_v25 = vrot.slane %v1659_v19, 2  ;;  %v1695_v26 = vadd.f32 %v1694_v20, %v1693_v18  ;;  %v9410_v58 = vadd.f32 %v1637_v24, %v1624_v23  ;;  %v1600_v27 = vpop.f32.mrf.mxu0  ;;  %v1613_v28 = vpop.f32.mrf.mxu1  ;;  %v1723_v2 = vadd.f32 0.8, %v1719_v59 }
 0x3da   :  { %v1708_v31 = vmul.f32 0.25, %v1692_v22  ;;  %v1712_v32 = vmul.f32 %v9408_v21, %v9408_v21 }
 0x3db   :  { %v1661_v56 = vadd.f32 %v1660_v25, %v1659_v19  ;;  %v1696_v33 = vrot.slane %v1695_v26, 2  ;;  %v1664_v43 = vsel %vm1053_vm4, %v9410_v58, 0.0  ;;  %v1678_v35 = vmul.f32 %v9410_v58, %v9410_v58 }
 0x3dc   :  { %v1716_v42 = vsub.f32 %v1708_v31, %v1712_v32  ;;  %v1665_v39 = vrot.slane %v1664_v43, 4  ;;  %vm1733_vm10 = vweird.f32 %v1723_v2 }
 0x3dd   :  { %v1662_v37 = vrot.slane %v1661_v56, 1  ;;  %v1697_v38 = vadd.f32 %v1696_v33, %v1695_v26  ;;  %v1700_v44 = vsel %vm1053_vm4, %v1678_v35, 0.0 }
 0x3de   :  { %v1720_v41 = vmax.f32 %v1716_v42, 0.0  ;;  %v1666_v47 = vadd.f32 %v1665_v39, %v1664_v43  ;;  %v1701_v49 = vrot.slane %v1700_v44, 4 }
 0x3df   :  { %v1663_v45 = vadd.f32 %v1662_v37, %v1661_v56  ;;  %v1698_v46 = vrot.slane %v1697_v38, 1 }
 0x3e0   :  { %v1724_v50 = vadd.f32 0.8, %v1720_v41  ;;  %v1626_v51 = vpop.f32.mrf.mxu2  ;;  %v1639_v52 = vpop.f32.mrf.mxu3  ;;  %v1667_v55 = vrot.slane %v1666_v47, 2  ;;  %v1702_v57 = vadd.f32 %v1701_v49, %v1700_v44  ;;  %v1641_v49 = vld [vmem:[%s9753_s9] sm:$0xf] }
 0x3e1   :  { %v9421_v53 = vmul.f32 0.25, %v1663_v45  ;;  %v1699_v54 = vadd.f32 %v1698_v46, %v1697_v38 }
 0x3e2   :  { %v1668_v62 = vadd.f32 %v1667_v55, %v1666_v47  ;;  %v1703_v34 = vrot.slane %v1702_v57, 2  ;;  %7548 = vrsqrt.f32 %v1724_v50  ;;  %vm1743_vm15 = vweird.f32 %v1724_v50 }
 0x3e3   :  { %v1709_v60 = vmul.f32 0.25, %v1699_v54  ;;  %v1713_v61 = vmul.f32 %v9421_v53, %v9421_v53  ;;  %7550 = vrsqrt.f32 %v1723_v2 }
 0x3e4   :  { %v1669_v0 = vrot.slane %v1668_v62, 1  ;;  %v1704_v1 = vadd.f32 %v1703_v34, %v1702_v57 }
 0x3e5   :  { %v1717_v63 = vsub.f32 %v1709_v60, %v1713_v61 }
 0x3e6   :  { %v1670_v5 = vadd.f32 %v1669_v0, %v1668_v62  ;;  %v1705_v6 = vrot.slane %v1704_v1, 1 }
 0x3e7   :  { %v1721_v4 = vmax.f32 %v1717_v63, 0.0 }
 0x3e8   :  { %v9425_v8 = vmul.f32 0.25, %v1670_v5  ;;  %v7549_v10 = vpop.eup %7548  ;;  %v1706_v3 = vadd.f32 %v1705_v6, %v1704_v1  ;;  %v1642_v5 = vld [vmem:[%s9754_s10] sm:$0xf] }
 0x3e9   :  { %v1725_v7 = vadd.f32 0.8, %v1721_v4  ;;  %v1738_v14 = vmul.f32 %v7549_v10, %v1724_v50  ;;  %v7551_v16 = vpop.eup %7550  ;;  %vm1744_vm14 = vweird.f32 %v7549_v10 }
 0x3ea   :  { %v1714_v11 = vmul.f32 %v9425_v8, %v9425_v8  ;;  %v1710_v12 = vmul.f32 0.25, %v1706_v3  ;;  %v1728_v23 = vmul.f32 %v7551_v16, %v1723_v2  ;;  %vm1745_vm1 = vmor %vm1743_vm15, %vm1744_vm14  ;;  %vm1734_vm5 = vweird.f32 %v7551_v16 }
 0x3eb   :  { %7552 = vrsqrt.f32 %v1725_v7  ;;  %v1739_v19 = vmul.f32 %v7549_v10, %v1738_v14  ;;  %vm1753_vm2 = vweird.f32 %v1725_v7  ;;  %vm1735_vm12 = vmor %vm1733_vm10, %vm1734_vm5 }
 0x3ec   :  { %v1718_v15 = vsub.f32 %v1710_v12, %v1714_v11  ;;  %v1729_v26 = vmul.f32 %v7551_v16, %v1728_v23 }
 0x3ed   :  { %v1740_v25 = vmul.f32 0.5, %v1739_v19 }
 0x3ee   :  { %v1722_v17 = vmax.f32 %v1718_v15, 0.0  ;;  %v1730_v30 = vmul.f32 0.5, %v1729_v26 }
 0x3ef   :  { %v1741_v28 = vsub.f32 1.5, %v1740_v25 }
 0x3f0   :  { %v1726_v22 = vadd.f32 0.8, %v1722_v17  ;;  %v1731_v42 = vsub.f32 1.5, %v1730_v30 }
 0x3f1   :  { %v7553_v18 = vpop.eup %7552  ;;  %v1742_v56 = vmul.f32 %v7549_v10, %v1741_v28 }
 0x3f2   :  { %v1748_v20 = vmul.f32 %v7553_v18, %v1725_v7  ;;  %7554 = vrsqrt.f32 %v1726_v22  ;;  %vm1754_vm0 = vweird.f32 %v7553_v18  ;;  %v1732_v39 = vmul.f32 %v7551_v16, %v1731_v42 }
 0x3f3   :  { %v1746_v37 = vsel %vm1745_vm1, %v7549_v10, %v1742_v56  ;;  %vm1755_vm6 = vmor %vm1753_vm2, %vm1754_vm0  ;;  %vm1763_vm7 = vweird.f32 %v1726_v22 }
 0x3f4   :  { %v1749_v24 = vmul.f32 %v7553_v18, %v1748_v20  ;;  %v1771_v44 = vrot.slane %v1746_v37, 7  ;;  %v1736_v50 = vsel %vm1735_vm12, %v7551_v16, %v1732_v39 }
 0x3f6   :  { %v1750_v27 = vmul.f32 0.5, %v1749_v24  ;;  %v1774_v51 = vsel %vm1119_vm8, %v1736_v50, %v1771_v44 }
 0x3f8   :  { %v7555_v29 = vpop.eup %7554  ;;  %v1751_v31 = vsub.f32 1.5, %v1750_v27 }
 0x3f9   :  { %v1758_v32 = vmul.f32 %v7555_v29, %v1726_v22  ;;  %vm1764_vm3 = vweird.f32 %v7555_v29 }
 0x3fa   :  { %v1752_v43 = vmul.f32 %v7553_v18, %v1751_v31  ;;  %vm1765_vm9 = vmor %vm1763_vm7, %vm1764_vm3 }
 0x3fb   :  { %v1759_v33 = vmul.f32 %v7555_v29, %v1758_v32 }
 0x3fc   :  { %v1756_v40 = vsel %vm1755_vm6, %v7553_v18, %v1752_v43 }
 0x3fd   :  { %v1760_v35 = vmul.f32 0.5, %v1759_v33  ;;  %v1772_v46 = vrot.slane %v1756_v40, 6 }
 0x3ff   :  { %v1761_v38 = vsub.f32 1.5, %v1760_v35 }
 0x401   :  { %v1762_v41 = vmul.f32 %v7555_v29, %v1761_v38 }
 0x403   :  { %v1766_v45 = vsel %vm1765_vm9, %v7555_v29, %v1762_v41 }
 0x404   :  { %v1773_v47 = vrot.slane %v1766_v45, 5 }
 0x406   :  { %v1776_v52 = vsel %vm1775_vm11, %v1772_v46, %v1773_v47 }
 0x407   :  { %v1778_v54 = vsel %vm1777_vm13, %v1774_v51, %v1776_v52 }
 0x408   :  { %v1780_v55 = vmul.f32 %v1778_v54, %v1641_v49 }
 0x40a   :  { %v1782_v57 = vperm.slane %v1780_v55, 0  ;;  %v1783_v59 = vperm.slane %v1780_v55, 1  ;;  %v1784_v60 = vperm.slane %v1780_v55, 2  ;;  %v1785_v61 = vperm.slane %v1780_v55, 3 }
 0x40c   :  { %v1791_v62 = vmul.f32 %v1783_v59, %v9408_v21  ;;  %v1792_v34 = vmul.f32 %v1784_v60, %v9421_v53  ;;  %v1793_v63 = vmul.f32 %v1785_v61, %v9425_v8  ;;  %v1790_v0 = vmul.f32 %v1782_v57, %v9405_v13 }
 0x40d   :  { %v1806_v53 = vmul.f32 %v1782_v57, %v9385_v36  ;;  %v1807_v8 = vmul.f32 %v1783_v59, %v9392_v48  ;;  %v1808_v13 = vmul.f32 %v1784_v60, %v9399_v9  ;;  %v1809_v3 = vmul.f32 %v1785_v61, %v9410_v58 }
 0x40e   :  { %v1798_v1 = vrot.slane %v1791_v62, 7  ;;  %v1799_v2 = vrot.slane %v1792_v34, 6  ;;  %v1800_v4 = vrot.slane %v1793_v63, 5 }
 0x410   :  { %v1801_v6 = vsel %vm1119_vm8, %v1790_v0, %v1798_v1  ;;  %v1802_v7 = vsel %vm1775_vm11, %v1799_v2, %v1800_v4 }
 0x411   :  { %v1803_v10 = vsel %vm1777_vm13, %v1801_v6, %v1802_v7 }
 0x412   :  { %v1805_v21 = vsub.f32 %v1642_v5, %v1803_v10 }
 0x414   :  { %v1811_v11 = vperm.slane %v1805_v21, 0  ;;  %v1812_v12 = vperm.slane %v1805_v21, 1  ;;  %v1813_v14 = vperm.slane %v1805_v21, 2  ;;  %v1814_v15 = vperm.slane %v1805_v21, 3 }
 0x416   :  { %v1819_v16 = vadd.f32 %v1811_v11, %v1806_v53  ;;  %v1820_v17 = vadd.f32 %v1812_v12, %v1807_v8  ;;  %v1821_v18 = vadd.f32 %v1813_v14, %v1808_v13  ;;  %v1822_v19 = vadd.f32 %v1814_v15, %v1809_v3 }
 0x418   :  { %vm1823_vm14 = vcmp.gt.f32.partialorder %v1819_v16, 0.0  ;;  %vm1824_vm15 = vcmp.gt.f32.partialorder %v1820_v17, 0.0  ;;  %vm1825_vm0 = vcmp.gt.f32.partialorder %v1821_v18, 0.0  ;;  %vm1826_vm1 = vcmp.gt.f32.partialorder %v1822_v19, 0.0 }
 0x419   :  { %v1827_v20 = vmul.f32 0.2, %v1819_v16  ;;  %v1828_v36 = vmul.f32 0.2, %v1820_v17  ;;  %v1829_v22 = vmul.f32 0.2, %v1821_v18 }
 0x41a   :  { %v1830_v48 = vmul.f32 0.2, %v1822_v19 }
 0x41b   :  { %v9449_v23 = vsel %vm1823_vm14, %v1819_v16, %v1827_v20  ;;  %v9451_v9 = vsel %vm1824_vm15, %v1820_v17, %v1828_v36  ;;  %v9453_v58 = vsel %vm1825_vm0, %v1821_v18, %v1829_v22 }
 0x41c   :  { %v9455_v24 = vsel %vm1826_vm1, %v1822_v19, %v1830_v48 }
 0x41d   :  { %7576 = dma.done.wait [#allocation4], 32768 }
 0x41e   :  { %7577 = vsyncadd [#allocation4], 4294934528  ;;  %v5762_v25 = vld [vmem:[#allocation2 + $0x1c0] sm:$0xf] }
 0x41f   :  { %v7216_v26 = vld [vmem:[#allocation2 + $0x1dc] sm:$0xf0] }
 0x420   :  { %v6018_v27 = vld [vmem:[#allocation2 + $0x3c0] sm:$0xf]  ;;  %v5763_v28 = vor.u32 %v7216_v26, %v5762_v25 }
 0x421   :  { %v7280_v29 = vld [vmem:[#allocation2 + $0x3dc] sm:$0xf0] }
 0x422   :  { %v6274_v30 = vld [vmem:[#allocation2 + $0x5c0] sm:$0xf]  ;;  %v6019_v32 = vor.u32 %v7280_v29, %v6018_v27  ;;  %3379 = vmatpush.bf16.msrb.mxu0 %v5763_v28 }
 0x423   :  { %v7344_v31 = vld [vmem:[#allocation2 + $0x5dc] sm:$0xf0] }
 0x424   :  { %v6275_v56 = vor.u32 %v7344_v31, %v6274_v30  ;;  %v6530_v33 = vld [vmem:[#allocation2 + $0x7c0] sm:$0xf]  ;;  %3392 = vmatpush.bf16.msrb.mxu1 %v6019_v32 }
 0x425   :  { %v7408_v42 = vld [vmem:[#allocation2 + $0x7dc] sm:$0xf0] }
 0x426   :  { %v5730_v43 = vld [vmem:[#allocation2 + $0x180] sm:$0xf]  ;;  %v6531_v35 = vor.u32 %v7408_v42, %v6530_v33  ;;  %3405 = vmatpush.bf16.msrb.mxu2 %v6275_v56 }
 0x427   :  { %v7208_v37 = vld [vmem:[#allocation2 + $0x19c] sm:$0xf0] }
 0x428   :  { %v5986_v38 = vld [vmem:[#allocation2 + $0x380] sm:$0xf]  ;;  %v5731_v40 = vor.u32 %v7208_v37, %v5730_v43  ;;  %3418 = vmatpush.bf16.msrb.mxu3 %v6531_v35 }
 0x429   :  { %v7272_v39 = vld [vmem:[#allocation2 + $0x39c] sm:$0xf0] }
 0x42a   :  { %v5987_v41 = vor.u32 %v7272_v39, %v5986_v38  ;;  %v6242_v44 = vld [vmem:[#allocation2 + $0x580] sm:$0xf]  ;;  %3380 = vmatpush.bf16.msrb.mxu0 %v5731_v40 }
 0x42b   :  { %v7336_v45 = vld [vmem:[#allocation2 + $0x59c] sm:$0xf0] }
 0x42c   :  { %v6498_v46 = vld [vmem:[#allocation2 + $0x780] sm:$0xf]  ;;  %v6243_v47 = vor.u32 %v7336_v45, %v6242_v44  ;;  %3393 = vmatpush.bf16.msrb.mxu1 %v5987_v41 }
 0x42d   :  { %v7400_v49 = vld [vmem:[#allocation2 + $0x79c] sm:$0xf0] }
 0x42e   :  { %v5698_v50 = vld [vmem:[#allocation2 + $0x140] sm:$0xf]  ;;  %v6499_v52 = vor.u32 %v7400_v49, %v6498_v46  ;;  %3406 = vmatpush.bf16.msrb.mxu2 %v6243_v47 }
 0x42f   :  { %v7200_v51 = vld [vmem:[#allocation2 + $0x15c] sm:$0xf0] }
 0x430   :  { %v5954_v54 = vld [vmem:[#allocation2 + $0x340] sm:$0xf]  ;;  %v5699_v59 = vor.u32 %v7200_v51, %v5698_v50  ;;  %3419 = vmatpush.bf16.msrb.mxu3 %v6499_v52 }
 0x431   :  { %v7264_v55 = vld [vmem:[#allocation2 + $0x35c] sm:$0xf0] }
 0x432   :  { %v6210_v57 = vld [vmem:[#allocation2 + $0x540] sm:$0xf]  ;;  %v5955_v34 = vor.u32 %v7264_v55, %v5954_v54  ;;  %3381 = vmatpush.bf16.msrb.mxu0 %v5699_v59 }
 0x433   :  { %v7328_v60 = vld [vmem:[#allocation2 + $0x55c] sm:$0xf0] }
 0x434   :  { %v6466_v61 = vld [vmem:[#allocation2 + $0x740] sm:$0xf]  ;;  %v6211_v63 = vor.u32 %v7328_v60, %v6210_v57  ;;  %3394 = vmatpush.bf16.msrb.mxu1 %v5955_v34  ;;  %v5764_v34 = vld [vmem:[#allocation2 + $0x1e0] sm:$0xf0] }
 0x435   :  { %v7392_v62 = vld [vmem:[#allocation2 + $0x75c] sm:$0xf0] }
 0x436   :  { %v5666_v0 = vld [vmem:[#allocation2 + $0x100] sm:$0xf]  ;;  %v6467_v4 = vor.u32 %v7392_v62, %v6466_v61  ;;  %3407 = vmatpush.bf16.msrb.mxu2 %v6211_v63  ;;  %v7212_v62 = vld [vmem:[#allocation2 + $0x1c4] sm:$0xf] }
 0x437   :  { %v7192_v1 = vld [vmem:[#allocation2 + $0x11c] sm:$0xf0]  ;;  %v7276_v63 = vld [vmem:[#allocation2 + $0x3c4] sm:$0xf] }
 0x438   :  { %v5922_v2 = vld [vmem:[#allocation2 + $0x300] sm:$0xf]  ;;  %v5667_v53 = vor.u32 %v7192_v1, %v5666_v0  ;;  %3420 = vmatpush.bf16.msrb.mxu3 %v6467_v4  ;;  %v6020_v1 = vld [vmem:[#allocation2 + $0x3e0] sm:$0xf0] }
 0x439   :  { %v7256_v5 = vld [vmem:[#allocation2 + $0x31c] sm:$0xf0]  ;;  %v6276_v4 = vld [vmem:[#allocation2 + $0x5e0] sm:$0xf0] }
 0x43a   :  { %v6178_v6 = vld [vmem:[#allocation2 + $0x500] sm:$0xf]  ;;  %v5923_v8 = vor.u32 %v7256_v5, %v5922_v2  ;;  %3382 = vmatpush.bf16.msrb.mxu0 %v5667_v53  ;;  %v7340_v2 = vld [vmem:[#allocation2 + $0x5c4] sm:$0xf]  ;;  %v5767_v53 = vor.u32 %v7212_v62, %v5764_v34 }
 0x43b   :  { %v7320_v7 = vld [vmem:[#allocation2 + $0x51c] sm:$0xf0] }
 0x43c   :  { %v6434_v10 = vld [vmem:[#allocation2 + $0x700] sm:$0xf]  ;;  %v6179_v13 = vor.u32 %v7320_v7, %v6178_v6  ;;  %3395 = vmatpush.bf16.msrb.mxu1 %v5923_v8  ;;  %v7404_v7 = vld [vmem:[#allocation2 + $0x7c4] sm:$0xf]  ;;  %v6023_v8 = vor.u32 %v7276_v63, %v6020_v1 }
 0x43d   :  { %v7384_v21 = vld [vmem:[#allocation2 + $0x71c] sm:$0xf0]  ;;  %v5604_v1 = vld [vmem:[#allocation2 + $0xa0] sm:$0xf0] }
 0x43e   :  { %v5634_v3 = vld [vmem:[#allocation2 + $0xc0] sm:$0xf]  ;;  %v6435_v14 = vor.u32 %v7384_v21, %v6434_v10  ;;  %3408 = vmatpush.bf16.msrb.mxu2 %v6179_v13  ;;  %v6532_v10 = vld [vmem:[#allocation2 + $0x7e0] sm:$0xf0]  ;;  %v6279_v13 = vor.u32 %v7340_v2, %v6276_v4 }
 0x43f   :  { %v7184_v11 = vld [vmem:[#allocation2 + $0xdc] sm:$0xf0]  ;;  %v7236_v2 = vld [vmem:[#allocation2 + $0x284] sm:$0xf] }
 0x440   :  { %v5890_v12 = vld [vmem:[#allocation2 + $0x2c0] sm:$0xf]  ;;  %v5635_v20 = vor.u32 %v7184_v11, %v5634_v3  ;;  %3421 = vmatpush.bf16.msrb.mxu3 %v6435_v14  ;;  %v7204_v3 = vld [vmem:[#allocation2 + $0x184] sm:$0xf]  ;;  %v6535_v14 = vor.u32 %v7404_v7, %v6532_v10 }
 0x441   :  { %v7248_v15 = vld [vmem:[#allocation2 + $0x2dc] sm:$0xf0]  ;;  %v5732_v11 = vld [vmem:[#allocation2 + $0x1a0] sm:$0xf0] }
 0x442   :  { %v6146_v16 = vld [vmem:[#allocation2 + $0x4c0] sm:$0xf]  ;;  %v5891_v36 = vor.u32 %v7248_v15, %v5890_v12  ;;  %3383 = vmatpush.bf16.msrb.mxu0 %v5635_v20  ;;  %v7268_v12 = vld [vmem:[#allocation2 + $0x384] sm:$0xf] }
 0x443   :  { %v7312_v17 = vld [vmem:[#allocation2 + $0x4dc] sm:$0xf0]  ;;  %v5988_v15 = vld [vmem:[#allocation2 + $0x3a0] sm:$0xf0] }
 0x444   :  { %v6402_v18 = vld [vmem:[#allocation2 + $0x6c0] sm:$0xf]  ;;  %v6147_v22 = vor.u32 %v7312_v17, %v6146_v16  ;;  %3396 = vmatpush.bf16.msrb.mxu1 %v5891_v36  ;;  %v7332_v16 = vld [vmem:[#allocation2 + $0x584] sm:$0xf]  ;;  %v9463_v36 = vpack.c.bf16 %v9455_v24, %v9455_v24 }
 0x445   :  { %v7376_v19 = vld [vmem:[#allocation2 + $0x6dc] sm:$0xf0]  ;;  %v6244_v17 = vld [vmem:[#allocation2 + $0x5a0] sm:$0xf0] }
 0x446   :  { %v5602_v48 = vld [vmem:[#allocation2 + $0x80] sm:$0xf]  ;;  %v6403_v27 = vor.u32 %v7376_v19, %v6402_v18  ;;  %3409 = vmatpush.bf16.msrb.mxu2 %v6147_v22  ;;  %v9459_v18 = vpack.c.bf16 %v9453_v58, %v9453_v58  ;;  %v7396_v19 = vld [vmem:[#allocation2 + $0x784] sm:$0xf]  ;;  %v9467_v22 = vpack.c.bf16 %v9449_v23, %v9449_v23  ;;  %v5991_v58 = vor.u32 %v7268_v12, %v5988_v15 }
 0x447   :  { %v7176_v25 = vld [vmem:[#allocation2 + $0x9c] sm:$0xf0]  ;;  %v6500_v20 = vld [vmem:[#allocation2 + $0x7a0] sm:$0xf0] }
 0x448   :  { %v5858_v26 = vld [vmem:[#allocation2 + $0x280] sm:$0xf]  ;;  %v5603_v56 = vor.u32 %v7176_v25, %v5602_v48  ;;  %3422 = vmatpush.bf16.msrb.mxu3 %v6403_v27  ;;  %v5735_v48 = vor.u32 %v7204_v3, %v5732_v11  ;;  %v9471_v25 = vpack.c.bf16 %v9451_v9, %v9451_v9  ;;  %v7196_v27 = vld [vmem:[#allocation2 + $0x144] sm:$0xf]  ;;  %v6503_v24 = vor.u32 %v7396_v19, %v6500_v20 }
 0x449   :  { %v7240_v28 = vld [vmem:[#allocation2 + $0x29c] sm:$0xf0]  ;;  %v5956_v23 = vld [vmem:[#allocation2 + $0x360] sm:$0xf0] }
 0x44a   :  { %v6114_v29 = vld [vmem:[#allocation2 + $0x480] sm:$0xf]  ;;  %v5859_v33 = vor.u32 %v7240_v28, %v5858_v26  ;;  %3384 = vmatpush.bf16.msrb.mxu0 %v5603_v56  ;;  %v6247_v26 = vor.u32 %v7332_v16, %v6244_v17  ;;  %v5700_v28 = vld [vmem:[#allocation2 + $0x160] sm:$0xf0] }
 0x44b   :  { %v7304_v30 = vld [vmem:[#allocation2 + $0x49c] sm:$0xf0]  ;;  %v6468_v56 = vld [vmem:[#allocation2 + $0x760] sm:$0xf0]  ;;  %v5703_v9 = vor.u32 %v7196_v27, %v5700_v28 }
 0x44c   :  { %v6370_v31 = vld [vmem:[#allocation2 + $0x680] sm:$0xf]  ;;  %v6115_v42 = vor.u32 %v7304_v30, %v6114_v29  ;;  %3397 = vmatpush.bf16.msrb.mxu1 %v5859_v33  ;;  %v7260_v29 = vld [vmem:[#allocation2 + $0x344] sm:$0xf] }
 0x44d   :  { %v7368_v32 = vld [vmem:[#allocation2 + $0x69c] sm:$0xf0]  ;;  %v7324_v30 = vld [vmem:[#allocation2 + $0x544] sm:$0xf]  ;;  %v5959_v33 = vor.u32 %v7260_v29, %v5956_v23 }
 0x44e   :  { %v5570_v43 = vld [vmem:[#allocation2 + $0x40] sm:$0xf]  ;;  %v6371_v38 = vor.u32 %v7368_v32, %v6370_v31  ;;  %3410 = vmatpush.bf16.msrb.mxu2 %v6115_v42  ;;  %v6212_v31 = vld [vmem:[#allocation2 + $0x560] sm:$0xf0] }
 0x44f   :  { %v7168_v35 = vld [vmem:[#allocation2 + $0x5c] sm:$0xf0]  ;;  %v7388_v32 = vld [vmem:[#allocation2 + $0x744] sm:$0xf]  ;;  %v6215_v42 = vor.u32 %v7324_v30, %v6212_v31 }
 0x450   :  { %v5826_v37 = vld [vmem:[#allocation2 + $0x240] sm:$0xf]  ;;  %v5571_v46 = vor.u32 %v7168_v35, %v5570_v43  ;;  %3423 = vmatpush.bf16.msrb.mxu3 %v6371_v38  ;;  %v7188_v43 = vld [vmem:[#allocation2 + $0x104] sm:$0xf]  ;;  %v6471_v38 = vor.u32 %v7388_v32, %v6468_v56 }
 0x451   :  { %v7232_v39 = vld [vmem:[#allocation2 + $0x25c] sm:$0xf0]  ;;  %v5668_v35 = vld [vmem:[#allocation2 + $0x120] sm:$0xf0] }
 0x452   :  { %v6082_v40 = vld [vmem:[#allocation2 + $0x440] sm:$0xf]  ;;  %v5827_v50 = vor.u32 %v7232_v39, %v5826_v37  ;;  %3385 = vmatpush.bf16.msrb.mxu0 %v5571_v46  ;;  %v7252_v37 = vld [vmem:[#allocation2 + $0x304] sm:$0xf]  ;;  %v5671_v46 = vor.u32 %v7188_v43, %v5668_v35  ;;  %v7281_v35 = vld [vmem:[#allocation2 + $0x3e4] sm:$0xf0] }
 0x453   :  { %v7296_v41 = vld [vmem:[#allocation2 + $0x45c] sm:$0xf0]  ;;  %v5924_v39 = vld [vmem:[#allocation2 + $0x320] sm:$0xf0] }
 0x454   :  { %v6338_v44 = vld [vmem:[#allocation2 + $0x640] sm:$0xf]  ;;  %v6083_v51 = vor.u32 %v7296_v41, %v6082_v40  ;;  %3398 = vmatpush.bf16.msrb.mxu1 %v5827_v50  ;;  %v7316_v40 = vld [vmem:[#allocation2 + $0x504] sm:$0xf] }
 0x455   :  { %v7360_v45 = vld [vmem:[#allocation2 + $0x65c] sm:$0xf0]  ;;  %v6180_v41 = vld [vmem:[#allocation2 + $0x520] sm:$0xf0] }
 0x456   :  { %v5538_v47 = vld [vmem:[#allocation2] sm:$0xf]  ;;  %v6339_v57 = vor.u32 %v7360_v45, %v6338_v44  ;;  %3411 = vmatpush.bf16.msrb.mxu2 %v6083_v51  ;;  %v7380_v44 = vld [vmem:[#allocation2 + $0x704] sm:$0xf] }
 0x457   :  { %v7160_v49 = vld [vmem:[#allocation2 + $0x1c] sm:$0xf0]  ;;  %v6436_v45 = vld [vmem:[#allocation2 + $0x720] sm:$0xf0] }
 0x458   :  { %v5794_v52 = vld [vmem:[#allocation2 + $0x200] sm:$0xf]  ;;  %v5539_v0 = vor.u32 %v7160_v49, %v5538_v47  ;;  %3424 = vmatpush.bf16.msrb.mxu3 %v6339_v57  ;;  %v5927_v47 = vor.u32 %v7252_v37, %v5924_v39  ;;  %v6183_v49 = vor.u32 %v7316_v40, %v6180_v41  ;;  %v7180_v50 = vld [vmem:[#allocation2 + $0xc4] sm:$0xf]  ;;  %v6282_v37 = vld [vmem:[#allocation2 + $0x5c8] sm:$0xf] }
 0x459   :  { %v7224_v54 = vld [vmem:[#allocation2 + $0x21c] sm:$0xf0]  ;;  %v5636_v51 = vld [vmem:[#allocation2 + $0xe0] sm:$0xf0]  ;;  %v6538_v41 = vld [vmem:[#allocation2 + $0x7c8] sm:$0xf] }
 0x45a   :  { %v6050_v55 = vld [vmem:[#allocation2 + $0x400] sm:$0xf]  ;;  %v5795_v5 = vor.u32 %v7224_v54, %v5794_v52  ;;  %3386 = vmatpush.bf16.msrb.mxu0 %v5539_v0  ;;  %v7244_v52 = vld [vmem:[#allocation2 + $0x2c4] sm:$0xf]  ;;  %v6439_v54 = vor.u32 %v7380_v44, %v6436_v45  ;;  %v5639_v62 = vor.u32 %v7180_v50, %v5636_v51  ;;  %v7409_v44 = vld [vmem:[#allocation2 + $0x7e4] sm:$0xf0] }
 0x45b   :  { %v7288_v59 = vld [vmem:[#allocation2 + $0x41c] sm:$0xf0]  ;;  %v7308_v57 = vld [vmem:[#allocation2 + $0x4c4] sm:$0xf]  ;;  %v5738_v50 = vld [vmem:[#allocation2 + $0x188] sm:$0xf] }
 0x45c   :  { %v6306_v60 = vld [vmem:[#allocation2 + $0x600] sm:$0xf]  ;;  %v6051_v6 = vor.u32 %v7288_v59, %v6050_v55  ;;  %3399 = vmatpush.bf16.msrb.mxu1 %v5795_v5  ;;  %v5892_v55 = vld [vmem:[#allocation2 + $0x2e0] sm:$0xf0]  ;;  %v7209_v51 = vld [vmem:[#allocation2 + $0x1a4] sm:$0xf0] }
 0x45d   :  { %v7352_v61 = vld [vmem:[#allocation2 + $0x61c] sm:$0xf0]  ;;  %3387 = vmatmul.bf16.vlgmr.msrb.gmra.mxu0 %v9467_v22  ;;  %v6148_v59 = vld [vmem:[#allocation2 + $0x4e0] sm:$0xf0]  ;;  %v5895_v34 = vor.u32 %v7244_v52, %v5892_v55  ;;  %v5994_v52 = vld [vmem:[#allocation2 + $0x388] sm:$0xf] }
 0x45e   :  { %v6307_v21 = vor.u32 %v7352_v61, %v6306_v60  ;;  %3412 = vmatpush.bf16.msrb.mxu2 %v6051_v6  ;;  %3431 = vmatpush.bf16.msra.mxu0 %v5767_v53  ;;  %v7372_v60 = vld [vmem:[#allocation2 + $0x6c4] sm:$0xf]  ;;  %v6151_v63 = vor.u32 %v7308_v57, %v6148_v59  ;;  %v7273_v55 = vld [vmem:[#allocation2 + $0x3a4] sm:$0xf0] }
 0x45f   :  { %3400 = vmatmul.bf16.vlgmr.msrb.gmra.mxu1 %v9471_v25  ;;  %v6404_v61 = vld [vmem:[#allocation2 + $0x6e0] sm:$0xf0]  ;;  %v6250_v57 = vld [vmem:[#allocation2 + $0x588] sm:$0xf] }
 0x460   :  { %3425 = vmatpush.bf16.msrb.mxu3 %v6307_v21  ;;  %3444 = vmatpush.bf16.msra.mxu1 %v6023_v8  ;;  %v7172_v0 = vld [vmem:[#allocation2 + $0x84] sm:$0xf]  ;;  %v6407_v4 = vor.u32 %v7372_v60, %v6404_v61  ;;  %v7337_v59 = vld [vmem:[#allocation2 + $0x5a4] sm:$0xf0] }
 0x461   :  { %3413 = vmatmul.bf16.vlgmr.msrb.gmra.mxu2 %v9459_v18  ;;  %v5860_v5 = vld [vmem:[#allocation2 + $0x2a0] sm:$0xf0]  ;;  %v5607_v53 = vor.u32 %v7172_v0, %v5604_v1  ;;  %v6506_v60 = vld [vmem:[#allocation2 + $0x788] sm:$0xf] }
 0x462   :  { %3457 = vmatpush.bf16.msra.mxu2 %v6279_v13  ;;  %3432 = vmatpush.bf16.msra.mxu0 %v5735_v48  ;;  %v7300_v6 = vld [vmem:[#allocation2 + $0x484] sm:$0xf]  ;;  %v5863_v8 = vor.u32 %v7236_v2, %v5860_v5  ;;  %v7401_v61 = vld [vmem:[#allocation2 + $0x7a4] sm:$0xf0] }
 0x463   :  { %3426 = vmatmul.bf16.vlgmr.msrb.gmra.mxu3 %v9463_v36  ;;  %v6116_v7 = vld [vmem:[#allocation2 + $0x4a0] sm:$0xf0]  ;;  %v5706_v0 = vld [vmem:[#allocation2 + $0x148] sm:$0xf] }
 0x464   :  { %3470 = vmatpush.bf16.msra.mxu3 %v6535_v14  ;;  %3445 = vmatpush.bf16.msra.mxu1 %v5991_v58  ;;  %v7364_v10 = vld [vmem:[#allocation2 + $0x684] sm:$0xf]  ;;  %v6119_v13 = vor.u32 %v7300_v6, %v6116_v7  ;;  %v7201_v1 = vld [vmem:[#allocation2 + $0x164] sm:$0xf0] }
 0x465   :  { %v6372_v21 = vld [vmem:[#allocation2 + $0x6a0] sm:$0xf0]  ;;  %v5962_v2 = vld [vmem:[#allocation2 + $0x348] sm:$0xf] }
 0x466   :  { %3458 = vmatpush.bf16.msra.mxu2 %v6247_v26  ;;  %3433 = vmatpush.bf16.msra.mxu0 %v5703_v9  ;;  %v7164_v3 = vld [vmem:[#allocation2 + $0x44] sm:$0xf]  ;;  %v6375_v14 = vor.u32 %v7364_v10, %v6372_v21  ;;  %v5770_v9 = vld [vmem:[#allocation2 + $0x1c8] sm:$0xf] }
 0x467   :  { %v5572_v11 = vld [vmem:[#allocation2 + $0x60] sm:$0xf0]  ;;  %v7265_v5 = vld [vmem:[#allocation2 + $0x364] sm:$0xf0] }
 0x468   :  { %3471 = vmatpush.bf16.msra.mxu3 %v6503_v24  ;;  %3446 = vmatpush.bf16.msra.mxu1 %v5959_v33  ;;  %v7228_v12 = vld [vmem:[#allocation2 + $0x244] sm:$0xf]  ;;  %v5575_v48 = vor.u32 %v7164_v3, %v5572_v11  ;;  %v7217_v33 = vld [vmem:[#allocation2 + $0x1e4] sm:$0xf0] }
 0x469   :  { %v5828_v15 = vld [vmem:[#allocation2 + $0x260] sm:$0xf0]  ;;  %v6218_v6 = vld [vmem:[#allocation2 + $0x548] sm:$0xf] }
 0x46a   :  { %3459 = vmatpush.bf16.msra.mxu2 %v6215_v42  ;;  %3434 = vmatpush.bf16.msra.mxu0 %v5671_v46  ;;  %v7292_v16 = vld [vmem:[#allocation2 + $0x444] sm:$0xf]  ;;  %v5831_v27 = vor.u32 %v7228_v12, %v5828_v15  ;;  %v6026_v42 = vld [vmem:[#allocation2 + $0x3c8] sm:$0xf]  ;;  %v5771_v46 = vor.u32 %v7217_v33, %v5770_v9 }
 0x46b   :  { %v6084_v17 = vld [vmem:[#allocation2 + $0x460] sm:$0xf0]  ;;  %v7329_v7 = vld [vmem:[#allocation2 + $0x564] sm:$0xf0] }
 0x46c   :  { %3472 = vmatpush.bf16.msra.mxu3 %v6471_v38  ;;  %3447 = vmatpush.bf16.msra.mxu1 %v5927_v47  ;;  %v7356_v19 = vld [vmem:[#allocation2 + $0x644] sm:$0xf]  ;;  %v6087_v28 = vor.u32 %v7292_v16, %v6084_v17  ;;  %v7345_v38 = vld [vmem:[#allocation2 + $0x5e4] sm:$0xf0]  ;;  %v6027_v47 = vor.u32 %v7281_v35, %v6026_v42 }
 0x46d   :  { %v6340_v20 = vld [vmem:[#allocation2 + $0x660] sm:$0xf0]  ;;  %v6474_v10 = vld [vmem:[#allocation2 + $0x748] sm:$0xf] }
 0x46e   :  { %3460 = vmatpush.bf16.msra.mxu2 %v6183_v49  ;;  %3435 = vmatpush.bf16.msra.mxu0 %v5639_v62  ;;  %v7156_v58 = vld [vmem:[#allocation2 + $0x4] sm:$0xf]  ;;  %v6343_v30 = vor.u32 %v7356_v19, %v6340_v20  ;;  %v6283_v49 = vor.u32 %v7345_v38, %v6282_v37  ;;  %v5739_v62 = vor.u32 %v7209_v51, %v5738_v50  ;;  %v7393_v21 = vld [vmem:[#allocation2 + $0x764] sm:$0xf0] }
 0x46f   :  { %v5540_v26 = vld [vmem:[#allocation2 + $0x20] sm:$0xf0]  ;;  %v5674_v3 = vld [vmem:[#allocation2 + $0x108] sm:$0xf] }
 0x470   :  { %3473 = vmatpush.bf16.msra.mxu3 %v6439_v54  ;;  %3448 = vmatpush.bf16.msra.mxu1 %v5895_v34  ;;  %v7220_v29 = vld [vmem:[#allocation2 + $0x204] sm:$0xf]  ;;  %v5543_v43 = vor.u32 %v7156_v58, %v5540_v26  ;;  %v6539_v54 = vor.u32 %v7409_v44, %v6538_v41  ;;  %v5995_v34 = vor.u32 %v7273_v55, %v5994_v52  ;;  %v7193_v11 = vld [vmem:[#allocation2 + $0x124] sm:$0xf0] }
 0x471   :  { %v5796_v24 = vld [vmem:[#allocation2 + $0x220] sm:$0xf0]  ;;  %v5930_v12 = vld [vmem:[#allocation2 + $0x308] sm:$0xf] }
 0x472   :  { %3461 = vmatpush.bf16.msra.mxu2 %v6151_v63  ;;  %3436 = vmatpush.bf16.msra.mxu0 %v5607_v53  ;;  %v7284_v23 = vld [vmem:[#allocation2 + $0x404] sm:$0xf]  ;;  %v5799_v39 = vor.u32 %v7220_v29, %v5796_v24  ;;  %v6251_v63 = vor.u32 %v7337_v59, %v6250_v57  ;;  %v5707_v53 = vor.u32 %v7201_v1, %v5706_v0  ;;  %v7257_v15 = vld [vmem:[#allocation2 + $0x324] sm:$0xf0] }
 0x473   :  { %v6052_v31 = vld [vmem:[#allocation2 + $0x420] sm:$0xf0]  ;;  %v6186_v16 = vld [vmem:[#allocation2 + $0x508] sm:$0xf]  ;;  %v5931_v58 = vor.u32 %v7257_v15, %v5930_v12  ;;  %v7341_v12 = vld [vmem:[#allocation2 + $0x5cc] sm:$0xf] }
 0x474   :  { %3474 = vmatpush.bf16.msra.mxu3 %v6407_v4  ;;  %3449 = vmatpush.bf16.msra.mxu1 %v5863_v8  ;;  %v7348_v32 = vld [vmem:[#allocation2 + $0x604] sm:$0xf]  ;;  %v6055_v40 = vor.u32 %v7284_v23, %v6052_v31  ;;  %v6507_v4 = vor.u32 %v7401_v61, %v6506_v60  ;;  %v5963_v8 = vor.u32 %v7265_v5, %v5962_v2  ;;  %v7321_v17 = vld [vmem:[#allocation2 + $0x524] sm:$0xf0] }
 0x475   :  { %v6308_v56 = vld [vmem:[#allocation2 + $0x620] sm:$0xf0]  ;;  %v6442_v19 = vld [vmem:[#allocation2 + $0x708] sm:$0xf]  ;;  %v6187_v26 = vor.u32 %v7321_v17, %v6186_v16  ;;  %v7405_v17 = vld [vmem:[#allocation2 + $0x7cc] sm:$0xf] }
 0x476   :  { %3462 = vmatpush.bf16.msra.mxu2 %v6119_v13  ;;  %3437 = vmatpush.bf16.msra.mxu0 %v5575_v48  ;;  %v6311_v45 = vor.u32 %v7348_v32, %v6308_v56  ;;  %v6219_v13 = vor.u32 %v7329_v7, %v6218_v6  ;;  %v7385_v20 = vld [vmem:[#allocation2 + $0x724] sm:$0xf0]  ;;  %v5675_v48 = vor.u32 %v7193_v11, %v5674_v3  ;;  %v6028_v11 = vld [vmem:[#allocation2 + $0x3e8] sm:$0xf0] }
 0x477   :  { %v5898_v29 = vld [vmem:[#allocation2 + $0x2c8] sm:$0xf]  ;;  %v6443_v24 = vor.u32 %v7385_v20, %v6442_v19  ;;  %v6540_v19 = vld [vmem:[#allocation2 + $0x7e8] sm:$0xf0] }
 0x478   :  { %3475 = vmatpush.bf16.msra.mxu3 %v6375_v14  ;;  %3450 = vmatpush.bf16.msra.mxu1 %v5831_v27  ;;  %v6475_v14 = vor.u32 %v7393_v21, %v6474_v10  ;;  %v5642_v27 = vld [vmem:[#allocation2 + $0xc8] sm:$0xf] }
 0x479   :  { %v7249_v23 = vld [vmem:[#allocation2 + $0x2e4] sm:$0xf0] }
 0x47a   :  { %3463 = vmatpush.bf16.msra.mxu2 %v6087_v28  ;;  %3438 = vmatpush.bf16.msra.mxu0 %v5543_v43  ;;  %v7185_v28 = vld [vmem:[#allocation2 + $0xe4] sm:$0xf0]  ;;  %v5899_v33 = vor.u32 %v7249_v23, %v5898_v29  ;;  %v7269_v29 = vld [vmem:[#allocation2 + $0x38c] sm:$0xf] }
 0x47b   :  { %v7313_v31 = vld [vmem:[#allocation2 + $0x4e4] sm:$0xf0]  ;;  %v5643_v9 = vor.u32 %v7185_v28, %v5642_v27  ;;  %v7205_v27 = vld [vmem:[#allocation2 + $0x18c] sm:$0xf] }
 0x47c   :  { %3476 = vmatpush.bf16.msra.mxu3 %v6343_v30  ;;  %3451 = vmatpush.bf16.msra.mxu1 %v5799_v39  ;;  %v6154_v30 = vld [vmem:[#allocation2 + $0x4c8] sm:$0xf]  ;;  %v5740_v28 = vld [vmem:[#allocation2 + $0x1a8] sm:$0xf0] }
 0x47d   :  { %3439 = vmatmul.bf16.vlgmr.msra.gmra.mxu0 %v9467_v22  ;;  %v6410_v32 = vld [vmem:[#allocation2 + $0x6c8] sm:$0xf]  ;;  %v6155_v42 = vor.u32 %v7313_v31, %v6154_v30  ;;  %v5996_v23 = vld [vmem:[#allocation2 + $0x3a8] sm:$0xf0] }
 0x47e   :  { %3464 = vmatpush.bf16.msra.mxu2 %v6055_v40  ;;  %3483 = vmatpush.bf16.msrb.mxu0 %v5771_v46  ;;  %v7377_v56 = vld [vmem:[#allocation2 + $0x6e4] sm:$0xf0]  ;;  %v7333_v30 = vld [vmem:[#allocation2 + $0x58c] sm:$0xf] }
 0x47f   :  { %3452 = vmatmul.bf16.vlgmr.msra.gmra.mxu1 %v9471_v25  ;;  %v5610_v43 = vld [vmem:[#allocation2 + $0x88] sm:$0xf]  ;;  %v6411_v38 = vor.u32 %v7377_v56, %v6410_v32  ;;  %v6252_v31 = vld [vmem:[#allocation2 + $0x5a8] sm:$0xf0] }
 0x480   :  { %3477 = vmatpush.bf16.msra.mxu3 %v6311_v45  ;;  %3496 = vmatpush.bf16.msrb.mxu1 %v6027_v47  ;;  %v7177_v35 = vld [vmem:[#allocation2 + $0xa4] sm:$0xf0]  ;;  %v7397_v32 = vld [vmem:[#allocation2 + $0x78c] sm:$0xf] }
 0x481   :  { %3465 = vmatmul.bf16.vlgmr.msra.gmra.mxu2 %v9459_v18  ;;  %v5866_v37 = vld [vmem:[#allocation2 + $0x288] sm:$0xf]  ;;  %v5611_v46 = vor.u32 %v7177_v35, %v5610_v43  ;;  %v6508_v56 = vld [vmem:[#allocation2 + $0x7a8] sm:$0xf0] }
 0x482   :  { %3509 = vmatpush.bf16.msrb.mxu2 %v6283_v49  ;;  %3484 = vmatpush.bf16.msrb.mxu0 %v5739_v62  ;;  %v7241_v39 = vld [vmem:[#allocation2 + $0x2a4] sm:$0xf0]  ;;  %v7197_v43 = vld [vmem:[#allocation2 + $0x14c] sm:$0xf] }
 0x483   :  { %3478 = vmatmul.bf16.vlgmr.msra.gmra.mxu3 %v9463_v36  ;;  %v6122_v40 = vld [vmem:[#allocation2 + $0x488] sm:$0xf]  ;;  %v5867_v47 = vor.u32 %v7241_v39, %v5866_v37  ;;  %v5708_v35 = vld [vmem:[#allocation2 + $0x168] sm:$0xf0] }
 0x484   :  { %3522 = vmatpush.bf16.msrb.mxu3 %v6539_v54  ;;  %3497 = vmatpush.bf16.msrb.mxu1 %v5995_v34  ;;  %v7305_v41 = vld [vmem:[#allocation2 + $0x4a4] sm:$0xf0]  ;;  %v7261_v37 = vld [vmem:[#allocation2 + $0x34c] sm:$0xf] }
 0x485   :  { %v6378_v44 = vld [vmem:[#allocation2 + $0x688] sm:$0xf]  ;;  %v6123_v49 = vor.u32 %v7305_v41, %v6122_v40  ;;  %v5964_v39 = vld [vmem:[#allocation2 + $0x368] sm:$0xf0] }
 0x486   :  { %3510 = vmatpush.bf16.msrb.mxu2 %v6251_v63  ;;  %3485 = vmatpush.bf16.msrb.mxu0 %v5707_v53  ;;  %v7369_v45 = vld [vmem:[#allocation2 + $0x6a4] sm:$0xf0]  ;;  %v7213_v53 = vld [vmem:[#allocation2 + $0x1cc] sm:$0xf] }
 0x487   :  { %v5578_v50 = vld [vmem:[#allocation2 + $0x48] sm:$0xf]  ;;  %v6379_v54 = vor.u32 %v7369_v45, %v6378_v44  ;;  %v7325_v40 = vld [vmem:[#allocation2 + $0x54c] sm:$0xf] }
 0x488   :  { %3523 = vmatpush.bf16.msrb.mxu3 %v6507_v4  ;;  %3498 = vmatpush.bf16.msrb.mxu1 %v5963_v8  ;;  %v7169_v51 = vld [vmem:[#allocation2 + $0x64] sm:$0xf0]  ;;  %v5772_v8 = vld [vmem:[#allocation2 + $0x1e8] sm:$0xf0] }
 0x489   :  { %v5834_v52 = vld [vmem:[#allocation2 + $0x248] sm:$0xf]  ;;  %v5579_v62 = vor.u32 %v7169_v51, %v5578_v50  ;;  %v6220_v41 = vld [vmem:[#allocation2 + $0x568] sm:$0xf0] }
 0x48a   :  { %3511 = vmatpush.bf16.msrb.mxu2 %v6219_v13  ;;  %3486 = vmatpush.bf16.msrb.mxu0 %v5675_v48  ;;  %v7233_v55 = vld [vmem:[#allocation2 + $0x264] sm:$0xf0]  ;;  %v7277_v13 = vld [vmem:[#allocation2 + $0x3cc] sm:$0xf]  ;;  %v5775_v48 = vor.u32 %v7213_v53, %v5772_v8 }
 0x48b   :  { %v6090_v57 = vld [vmem:[#allocation2 + $0x448] sm:$0xf]  ;;  %v5835_v0 = vor.u32 %v7233_v55, %v5834_v52  ;;  %v7389_v44 = vld [vmem:[#allocation2 + $0x74c] sm:$0xf] }
 0x48c   :  { %3524 = vmatpush.bf16.msrb.mxu3 %v6475_v14  ;;  %3499 = vmatpush.bf16.msrb.mxu1 %v5931_v58  ;;  %v7297_v59 = vld [vmem:[#allocation2 + $0x464] sm:$0xf0]  ;;  %v6284_v14 = vld [vmem:[#allocation2 + $0x5e8] sm:$0xf0]  ;;  %v6031_v58 = vor.u32 %v7277_v13, %v6028_v11 }
 0x48d   :  { %v6346_v60 = vld [vmem:[#allocation2 + $0x648] sm:$0xf]  ;;  %v6091_v1 = vor.u32 %v7297_v59, %v6090_v57  ;;  %v6476_v45 = vld [vmem:[#allocation2 + $0x768] sm:$0xf0] }
 0x48e   :  { %3512 = vmatpush.bf16.msrb.mxu2 %v6187_v26  ;;  %3487 = vmatpush.bf16.msrb.mxu0 %v5643_v9  ;;  %v7361_v61 = vld [vmem:[#allocation2 + $0x664] sm:$0xf0]  ;;  %v6287_v26 = vor.u32 %v7341_v12, %v6284_v14  ;;  %v5743_v9 = vor.u32 %v7205_v27, %v5740_v28  ;;  %v7189_v50 = vld [vmem:[#allocation2 + $0x10c] sm:$0xf] }
 0x48f   :  { %v5546_v34 = vld [vmem:[#allocation2 + $0x8] sm:$0xf]  ;;  %v6347_v6 = vor.u32 %v7361_v61, %v6346_v60  ;;  %v5676_v51 = vld [vmem:[#allocation2 + $0x128] sm:$0xf0] }
 0x490   :  { %3525 = vmatpush.bf16.msrb.mxu3 %v6443_v24  ;;  %3500 = vmatpush.bf16.msrb.mxu1 %v5899_v33  ;;  %v7161_v63 = vld [vmem:[#allocation2 + $0x24] sm:$0xf0]  ;;  %v6543_v24 = vor.u32 %v7405_v17, %v6540_v19  ;;  %v5999_v33 = vor.u32 %v7269_v29, %v5996_v23  ;;  %v7253_v52 = vld [vmem:[#allocation2 + $0x30c] sm:$0xf] }
 0x491   :  { %v5802_v2 = vld [vmem:[#allocation2 + $0x208] sm:$0xf]  ;;  %v5547_v3 = vor.u32 %v7161_v63, %v5546_v34  ;;  %v5932_v55 = vld [vmem:[#allocation2 + $0x328] sm:$0xf0] }
 0x492   :  { %3513 = vmatpush.bf16.msrb.mxu2 %v6155_v42  ;;  %3488 = vmatpush.bf16.msrb.mxu0 %v5611_v46  ;;  %v7225_v4 = vld [vmem:[#allocation2 + $0x224] sm:$0xf0]  ;;  %v6255_v42 = vor.u32 %v7333_v30, %v6252_v31  ;;  %v5711_v46 = vor.u32 %v7197_v43, %v5708_v35  ;;  %v7317_v57 = vld [vmem:[#allocation2 + $0x50c] sm:$0xf]  ;;  %v5935_v34 = vor.u32 %v7253_v52, %v5932_v55  ;;  %v6290_v52 = vld [vmem:[#allocation2 + $0x5d0] sm:$0xf] }
 0x493   :  { %v6058_v5 = vld [vmem:[#allocation2 + $0x408] sm:$0xf]  ;;  %v5803_v15 = vor.u32 %v7225_v4, %v5802_v2  ;;  %v6188_v59 = vld [vmem:[#allocation2 + $0x528] sm:$0xf0] }
 0x494   :  { %3526 = vmatpush.bf16.msrb.mxu3 %v6411_v38  ;;  %3501 = vmatpush.bf16.msrb.mxu1 %v5867_v47  ;;  %v7289_v7 = vld [vmem:[#allocation2 + $0x424] sm:$0xf0]  ;;  %v6511_v38 = vor.u32 %v7397_v32, %v6508_v56  ;;  %v5967_v47 = vor.u32 %v7261_v37, %v5964_v39  ;;  %v7381_v60 = vld [vmem:[#allocation2 + $0x70c] sm:$0xf]  ;;  %v6191_v63 = vor.u32 %v7317_v57, %v6188_v59  ;;  %v6546_v59 = vld [vmem:[#allocation2 + $0x7d0] sm:$0xf] }
 0x495   :  { %v6314_v10 = vld [vmem:[#allocation2 + $0x608] sm:$0xf]  ;;  %v6059_v16 = vor.u32 %v7289_v7, %v6058_v5  ;;  %v6444_v61 = vld [vmem:[#allocation2 + $0x728] sm:$0xf0] }
 0x496   :  { %3514 = vmatpush.bf16.msrb.mxu2 %v6123_v49  ;;  %v7353_v21 = vld [vmem:[#allocation2 + $0x624] sm:$0xf0]  ;;  %3489 = vmatpush.bf16.msrb.mxu0 %v5579_v62  ;;  %v6223_v49 = vor.u32 %v7325_v40, %v6220_v41  ;;  %v5679_v62 = vor.u32 %v7189_v50, %v5676_v51  ;;  %v7245_v2 = vld [vmem:[#allocation2 + $0x2cc] sm:$0xf]  ;;  %v6447_v4 = vor.u32 %v7381_v60, %v6444_v61  ;;  %v7282_v51 = vld [vmem:[#allocation2 + $0x3ec] sm:$0xf0] }
 0x497   :  { %v6315_v20 = vor.u32 %v7353_v21, %v6314_v10  ;;  %v5900_v5 = vld [vmem:[#allocation2 + $0x2e8] sm:$0xf0]  ;;  %v7410_v60 = vld [vmem:[#allocation2 + $0x7ec] sm:$0xf0] }
 0x498   :  { %3527 = vmatpush.bf16.msrb.mxu3 %v6379_v54  ;;  %3502 = vmatpush.bf16.msrb.mxu1 %v5835_v0  ;;  %v6479_v54 = vor.u32 %v7389_v44, %v6476_v45  ;;  %v7181_v0 = vld [vmem:[#allocation2 + $0xcc] sm:$0xf]  ;;  %v5903_v8 = vor.u32 %v7245_v2, %v5900_v5  ;;  %v6002_v2 = vld [vmem:[#allocation2 + $0x390] sm:$0xf] }
 0x499   :  { %v6156_v7 = vld [vmem:[#allocation2 + $0x4e8] sm:$0xf0]  ;;  %v7274_v5 = vld [vmem:[#allocation2 + $0x3ac] sm:$0xf0] }
 0x49a   :  { %3515 = vmatpush.bf16.msrb.mxu2 %v6091_v1  ;;  %3490 = vmatpush.bf16.msrb.mxu0 %v5547_v3  ;;  %v5644_v1 = vld [vmem:[#allocation2 + $0xe8] sm:$0xf0] }
 0x49b   :  { %v7373_v10 = vld [vmem:[#allocation2 + $0x6cc] sm:$0xf]  ;;  %v5647_v53 = vor.u32 %v7181_v0, %v5644_v1  ;;  %v5746_v0 = vld [vmem:[#allocation2 + $0x190] sm:$0xf] }
 0x49c   :  { %3528 = vmatpush.bf16.msrb.mxu3 %v6347_v6  ;;  %3503 = vmatpush.bf16.msrb.mxu1 %v5803_v15  ;;  %v7309_v6 = vld [vmem:[#allocation2 + $0x4cc] sm:$0xf]  ;;  %v7210_v1 = vld [vmem:[#allocation2 + $0x1ac] sm:$0xf0] }
 0x49d   :  { %3491 = vmatmul.bf16.vlgmr.msrb.gmra.mxu0 %v9467_v22  ;;  %v6412_v21 = vld [vmem:[#allocation2 + $0x6e8] sm:$0xf0]  ;;  %v6159_v13 = vor.u32 %v7309_v6, %v6156_v7  ;;  %v6258_v6 = vld [vmem:[#allocation2 + $0x590] sm:$0xf] }
 0x49e   :  { %3516 = vmatpush.bf16.msrb.mxu2 %v6059_v16  ;;  %3535 = vmatpush.bf16.msra.mxu0 %v5775_v48  ;;  %v7173_v3 = vld [vmem:[#allocation2 + $0x8c] sm:$0xf]  ;;  %v6415_v14 = vor.u32 %v7373_v10, %v6412_v21  ;;  %v7338_v7 = vld [vmem:[#allocation2 + $0x5ac] sm:$0xf0] }
 0x49f   :  { %3504 = vmatmul.bf16.vlgmr.msrb.gmra.mxu1 %v9471_v25  ;;  %v5612_v11 = vld [vmem:[#allocation2 + $0xa8] sm:$0xf0]  ;;  %v6514_v10 = vld [vmem:[#allocation2 + $0x790] sm:$0xf] }
 0x4a0   :  { %3529 = vmatpush.bf16.msrb.mxu3 %v6315_v20  ;;  %3548 = vmatpush.bf16.msra.mxu1 %v6031_v58  ;;  %v7237_v12 = vld [vmem:[#allocation2 + $0x28c] sm:$0xf]  ;;  %v5615_v48 = vor.u32 %v7173_v3, %v5612_v11  ;;  %v7402_v21 = vld [vmem:[#allocation2 + $0x7ac] sm:$0xf0] }
 0x4a1   :  { %3517 = vmatmul.bf16.vlgmr.msrb.gmra.mxu2 %v9459_v18  ;;  %v5868_v15 = vld [vmem:[#allocation2 + $0x2a8] sm:$0xf0]  ;;  %v5714_v3 = vld [vmem:[#allocation2 + $0x150] sm:$0xf] }
 0x4a2   :  { %3561 = vmatpush.bf16.msra.mxu2 %v6287_v26  ;;  %3536 = vmatpush.bf16.msra.mxu0 %v5743_v9  ;;  %v7301_v16 = vld [vmem:[#allocation2 + $0x48c] sm:$0xf]  ;;  %v5871_v58 = vor.u32 %v7237_v12, %v5868_v15  ;;  %v7202_v11 = vld [vmem:[#allocation2 + $0x16c] sm:$0xf0] }
 0x4a3   :  { %3530 = vmatmul.bf16.vlgmr.msrb.gmra.mxu3 %v9463_v36  ;;  %v6124_v17 = vld [vmem:[#allocation2 + $0x4a8] sm:$0xf0]  ;;  %v5970_v12 = vld [vmem:[#allocation2 + $0x350] sm:$0xf] }
 0x4a4   :  { %3574 = vmatpush.bf16.msra.mxu3 %v6543_v24  ;;  %3549 = vmatpush.bf16.msra.mxu1 %v5999_v33  ;;  %v7365_v19 = vld [vmem:[#allocation2 + $0x68c] sm:$0xf]  ;;  %v6127_v26 = vor.u32 %v7301_v16, %v6124_v17  ;;  %v7266_v15 = vld [vmem:[#allocation2 + $0x36c] sm:$0xf0] }
 0x4a5   :  { %v6380_v20 = vld [vmem:[#allocation2 + $0x6a8] sm:$0xf0]  ;;  %v6226_v16 = vld [vmem:[#allocation2 + $0x550] sm:$0xf] }
 0x4a6   :  { %3562 = vmatpush.bf16.msra.mxu2 %v6255_v42  ;;  %3537 = vmatpush.bf16.msra.mxu0 %v5711_v46  ;;  %v7165_v27 = vld [vmem:[#allocation2 + $0x4c] sm:$0xf]  ;;  %v6383_v24 = vor.u32 %v7365_v19, %v6380_v20  ;;  %v5778_v46 = vld [vmem:[#allocation2 + $0x1d0] sm:$0xf] }
 0x4a7   :  { %v5580_v28 = vld [vmem:[#allocation2 + $0x68] sm:$0xf0]  ;;  %v7330_v17 = vld [vmem:[#allocation2 + $0x56c] sm:$0xf0] }
 0x4a8   :  { %3575 = vmatpush.bf16.msra.mxu3 %v6511_v38  ;;  %3550 = vmatpush.bf16.msra.mxu1 %v5967_v47  ;;  %v7229_v29 = vld [vmem:[#allocation2 + $0x24c] sm:$0xf]  ;;  %v5583_v9 = vor.u32 %v7165_v27, %v5580_v28  ;;  %v7218_v47 = vld [vmem:[#allocation2 + $0x1ec] sm:$0xf0] }
 0x4a9   :  { %v5836_v23 = vld [vmem:[#allocation2 + $0x268] sm:$0xf0]  ;;  %v6482_v19 = vld [vmem:[#allocation2 + $0x750] sm:$0xf] }
 0x4aa   :  { %3563 = vmatpush.bf16.msra.mxu2 %v6223_v49  ;;  %3538 = vmatpush.bf16.msra.mxu0 %v5679_v62  ;;  %v7293_v30 = vld [vmem:[#allocation2 + $0x44c] sm:$0xf]  ;;  %v5839_v43 = vor.u32 %v7229_v29, %v5836_v23  ;;  %v6034_v49 = vld [vmem:[#allocation2 + $0x3d0] sm:$0xf]  ;;  %v5779_v62 = vor.u32 %v7218_v47, %v5778_v46 }
 0x4ab   :  { %v6092_v31 = vld [vmem:[#allocation2 + $0x468] sm:$0xf0]  ;;  %v7394_v20 = vld [vmem:[#allocation2 + $0x76c] sm:$0xf0] }
 0x4ac   :  { %3576 = vmatpush.bf16.msra.mxu3 %v6479_v54  ;;  %3551 = vmatpush.bf16.msra.mxu1 %v5935_v34  ;;  %v7357_v32 = vld [vmem:[#allocation2 + $0x64c] sm:$0xf]  ;;  %v6095_v35 = vor.u32 %v7293_v30, %v6092_v31  ;;  %v7346_v54 = vld [vmem:[#allocation2 + $0x5ec] sm:$0xf0]  ;;  %v6035_v34 = vor.u32 %v7282_v51, %v6034_v49 }
 0x4ad   :  { %v6348_v56 = vld [vmem:[#allocation2 + $0x668] sm:$0xf0]  ;;  %v5682_v27 = vld [vmem:[#allocation2 + $0x110] sm:$0xf] }
 0x4ae   :  { %3564 = vmatpush.bf16.msra.mxu2 %v6191_v63  ;;  %3539 = vmatpush.bf16.msra.mxu0 %v5647_v53  ;;  %v7157_v33 = vld [vmem:[#allocation2 + $0xc] sm:$0xf]  ;;  %v6351_v40 = vor.u32 %v7357_v32, %v6348_v56  ;;  %v6291_v63 = vor.u32 %v7346_v54, %v6290_v52  ;;  %v5747_v53 = vor.u32 %v7210_v1, %v5746_v0  ;;  %v7194_v28 = vld [vmem:[#allocation2 + $0x12c] sm:$0xf0] }
 0x4af   :  { %v5548_v42 = vld [vmem:[#allocation2 + $0x28] sm:$0xf0]  ;;  %v5938_v29 = vld [vmem:[#allocation2 + $0x310] sm:$0xf] }
 0x4b0   :  { %3577 = vmatpush.bf16.msra.mxu3 %v6447_v4  ;;  %3552 = vmatpush.bf16.msra.mxu1 %v5903_v8  ;;  %v7221_v37 = vld [vmem:[#allocation2 + $0x20c] sm:$0xf]  ;;  %v5551_v50 = vor.u32 %v7157_v33, %v5548_v42  ;;  %v6547_v4 = vor.u32 %v7410_v60, %v6546_v59  ;;  %v6003_v8 = vor.u32 %v7274_v5, %v6002_v2  ;;  %v7258_v23 = vld [vmem:[#allocation2 + $0x32c] sm:$0xf0] }
 0x4b1   :  { %v5804_v38 = vld [vmem:[#allocation2 + $0x228] sm:$0xf0]  ;;  %v6194_v30 = vld [vmem:[#allocation2 + $0x510] sm:$0xf]  ;;  %v5939_v33 = vor.u32 %v7258_v23, %v5938_v29  ;;  %v7342_v29 = vld [vmem:[#allocation2 + $0x5d4] sm:$0xf] }
 0x4b2   :  { %3565 = vmatpush.bf16.msra.mxu2 %v6159_v13  ;;  %3540 = vmatpush.bf16.msra.mxu0 %v5615_v48  ;;  %v7285_v39 = vld [vmem:[#allocation2 + $0x40c] sm:$0xf]  ;;  %v5807_v55 = vor.u32 %v7221_v37, %v5804_v38  ;;  %v6259_v13 = vor.u32 %v7338_v7, %v6258_v6  ;;  %v5715_v48 = vor.u32 %v7202_v11, %v5714_v3  ;;  %v7322_v31 = vld [vmem:[#allocation2 + $0x52c] sm:$0xf0] }
 0x4b3   :  { %v6060_v41 = vld [vmem:[#allocation2 + $0x428] sm:$0xf0]  ;;  %v6450_v32 = vld [vmem:[#allocation2 + $0x710] sm:$0xf]  ;;  %v6195_v42 = vor.u32 %v7322_v31, %v6194_v30  ;;  %v7406_v31 = vld [vmem:[#allocation2 + $0x7d4] sm:$0xf] }
 0x4b4   :  { %3578 = vmatpush.bf16.msra.mxu3 %v6415_v14  ;;  %3553 = vmatpush.bf16.msra.mxu1 %v5871_v58  ;;  %v7349_v44 = vld [vmem:[#allocation2 + $0x60c] sm:$0xf]  ;;  %v6063_v57 = vor.u32 %v7285_v39, %v6060_v41  ;;  %v6515_v14 = vor.u32 %v7402_v21, %v6514_v10  ;;  %v5971_v58 = vor.u32 %v7266_v15, %v5970_v12  ;;  %v7386_v56 = vld [vmem:[#allocation2 + $0x72c] sm:$0xf0] }
 0x4b5   :  { %v6316_v45 = vld [vmem:[#allocation2 + $0x628] sm:$0xf0]  ;;  %v5906_v37 = vld [vmem:[#allocation2 + $0x2d0] sm:$0xf]  ;;  %v6451_v38 = vor.u32 %v7386_v56, %v6450_v32  ;;  %v6548_v32 = vld [vmem:[#allocation2 + $0x7f0] sm:$0xf0] }
 0x4b6   :  { %3566 = vmatpush.bf16.msra.mxu2 %v6127_v26  ;;  %3541 = vmatpush.bf16.msra.mxu0 %v5583_v9  ;;  %v6319_v61 = vor.u32 %v7349_v44, %v6316_v45  ;;  %v6227_v26 = vor.u32 %v7330_v17, %v6226_v16  ;;  %v5683_v9 = vor.u32 %v7194_v28, %v5682_v27  ;;  %v7250_v39 = vld [vmem:[#allocation2 + $0x2ec] sm:$0xf0]  ;;  %v6036_v28 = vld [vmem:[#allocation2 + $0x3f0] sm:$0xf0] }
 0x4b7   :  { %v7314_v41 = vld [vmem:[#allocation2 + $0x4ec] sm:$0xf0]  ;;  %v5907_v47 = vor.u32 %v7250_v39, %v5906_v37  ;;  %v7270_v37 = vld [vmem:[#allocation2 + $0x394] sm:$0xf] }
 0x4b8   :  { %3579 = vmatpush.bf16.msra.mxu3 %v6383_v24  ;;  %3554 = vmatpush.bf16.msra.mxu1 %v5839_v43  ;;  %v6483_v24 = vor.u32 %v7394_v20, %v6482_v19  ;;  %v5650_v43 = vld [vmem:[#allocation2 + $0xd0] sm:$0xf]  ;;  %v6004_v39 = vld [vmem:[#allocation2 + $0x3b0] sm:$0xf0] }
 0x4b9   :  { %v6418_v44 = vld [vmem:[#allocation2 + $0x6d0] sm:$0xf] }
 0x4ba   :  { %3567 = vmatpush.bf16.msra.mxu2 %v6095_v35  ;;  %3542 = vmatpush.bf16.msra.mxu0 %v5551_v50  ;;  %v7186_v35 = vld [vmem:[#allocation2 + $0xec] sm:$0xf0] }
 0x4bb   :  { %v7378_v45 = vld [vmem:[#allocation2 + $0x6ec] sm:$0xf0]  ;;  %v5651_v46 = vor.u32 %v7186_v35, %v5650_v43  ;;  %v7206_v43 = vld [vmem:[#allocation2 + $0x194] sm:$0xf] }
 0x4bc   :  { %3580 = vmatpush.bf16.msra.mxu3 %v6351_v40  ;;  %3555 = vmatpush.bf16.msra.mxu1 %v5807_v55  ;;  %v6162_v40 = vld [vmem:[#allocation2 + $0x4d0] sm:$0xf]  ;;  %v6419_v54 = vor.u32 %v7378_v45, %v6418_v44  ;;  %v5748_v35 = vld [vmem:[#allocation2 + $0x1b0] sm:$0xf0] }
 0x4bd   :  { %3543 = vmatmul.bf16.vlgmr.msra.gmra.mxu0 %v9467_v22  ;;  %v6163_v49 = vor.u32 %v7314_v41, %v6162_v40  ;;  %v5618_v50 = vld [vmem:[#allocation2 + $0x90] sm:$0xf]  ;;  %v7334_v40 = vld [vmem:[#allocation2 + $0x594] sm:$0xf] }
 0x4be   :  { %3568 = vmatpush.bf16.msra.mxu2 %v6063_v57  ;;  %3587 = vmatpush.bf16.msrb.mxu0 %v5779_v62  ;;  %v7178_v51 = vld [vmem:[#allocation2 + $0xac] sm:$0xf0]  ;;  %v6260_v41 = vld [vmem:[#allocation2 + $0x5b0] sm:$0xf0] }
 0x4bf   :  { %3556 = vmatmul.bf16.vlgmr.msra.gmra.mxu1 %v9471_v25  ;;  %v5874_v52 = vld [vmem:[#allocation2 + $0x290] sm:$0xf]  ;;  %v5619_v62 = vor.u32 %v7178_v51, %v5618_v50  ;;  %v7398_v44 = vld [vmem:[#allocation2 + $0x794] sm:$0xf] }
 0x4c0   :  { %3581 = vmatpush.bf16.msra.mxu3 %v6319_v61  ;;  %3600 = vmatpush.bf16.msrb.mxu1 %v6035_v34  ;;  %v7242_v55 = vld [vmem:[#allocation2 + $0x2ac] sm:$0xf0]  ;;  %v6516_v45 = vld [vmem:[#allocation2 + $0x7b0] sm:$0xf0] }
 0x4c1   :  { %3569 = vmatmul.bf16.vlgmr.msra.gmra.mxu2 %v9459_v18  ;;  %v6130_v57 = vld [vmem:[#allocation2 + $0x490] sm:$0xf]  ;;  %v5875_v34 = vor.u32 %v7242_v55, %v5874_v52  ;;  %v7198_v50 = vld [vmem:[#allocation2 + $0x154] sm:$0xf] }
 0x4c2   :  { %3613 = vmatpush.bf16.msrb.mxu2 %v6291_v63  ;;  %3588 = vmatpush.bf16.msrb.mxu0 %v5747_v53  ;;  %v7306_v59 = vld [vmem:[#allocation2 + $0x4ac] sm:$0xf0]  ;;  %v5716_v51 = vld [vmem:[#allocation2 + $0x170] sm:$0xf0] }
 0x4c3   :  { %3582 = vmatmul.bf16.vlgmr.msra.gmra.mxu3 %v9463_v36  ;;  %v6386_v60 = vld [vmem:[#allocation2 + $0x690] sm:$0xf]  ;;  %v6131_v63 = vor.u32 %v7306_v59, %v6130_v57  ;;  %v7262_v52 = vld [vmem:[#allocation2 + $0x354] sm:$0xf] }
 0x4c4   :  { %3626 = vmatpush.bf16.msrb.mxu3 %v6547_v4  ;;  %3601 = vmatpush.bf16.msrb.mxu1 %v6003_v8  ;;  %v7370_v61 = vld [vmem:[#allocation2 + $0x6ac] sm:$0xf0]  ;;  %v5972_v55 = vld [vmem:[#allocation2 + $0x370] sm:$0xf0] }
 0x4c5   :  { %v5586_v0 = vld [vmem:[#allocation2 + $0x50] sm:$0xf]  ;;  %v6387_v4 = vor.u32 %v7370_v61, %v6386_v60  ;;  %v7326_v57 = vld [vmem:[#allocation2 + $0x554] sm:$0xf] }
 0x4c6   :  { %3614 = vmatpush.bf16.msrb.mxu2 %v6259_v13  ;;  %3589 = vmatpush.bf16.msrb.mxu0 %v5715_v48  ;;  %v7170_v1 = vld [vmem:[#allocation2 + $0x6c] sm:$0xf0]  ;;  %v7214_v48 = vld [vmem:[#allocation2 + $0x1d4] sm:$0xf] }
 0x4c7   :  { %v5842_v2 = vld [vmem:[#allocation2 + $0x250] sm:$0xf]  ;;  %v5587_v53 = vor.u32 %v7170_v1, %v5586_v0  ;;  %v6228_v59 = vld [vmem:[#allocation2 + $0x570] sm:$0xf0] }
 0x4c8   :  { %3627 = vmatpush.bf16.msrb.mxu3 %v6515_v14  ;;  %3602 = vmatpush.bf16.msrb.mxu1 %v5971_v58  ;;  %v7234_v5 = vld [vmem:[#allocation2 + $0x26c] sm:$0xf0]  ;;  %v5780_v58 = vld [vmem:[#allocation2 + $0x1f0] sm:$0xf0] }
 0x4c9   :  { %v6098_v6 = vld [vmem:[#allocation2 + $0x450] sm:$0xf]  ;;  %v5843_v3 = vor.u32 %v7234_v5, %v5842_v2  ;;  %v7390_v60 = vld [vmem:[#allocation2 + $0x754] sm:$0xf] }
 0x4ca   :  { %3615 = vmatpush.bf16.msrb.mxu2 %v6227_v26  ;;  %3590 = vmatpush.bf16.msrb.mxu0 %v5683_v9  ;;  %v7298_v7 = vld [vmem:[#allocation2 + $0x46c] sm:$0xf0]  ;;  %v7278_v26 = vld [vmem:[#allocation2 + $0x3d4] sm:$0xf]  ;;  %v5783_v9 = vor.u32 %v7214_v48, %v5780_v58 }
 0x4cb   :  { %v6354_v10 = vld [vmem:[#allocation2 + $0x650] sm:$0xf]  ;;  %v6099_v11 = vor.u32 %v7298_v7, %v6098_v6  ;;  %v6484_v61 = vld [vmem:[#allocation2 + $0x770] sm:$0xf0] }
 0x4cc   :  { %3628 = vmatpush.bf16.msrb.mxu3 %v6483_v24  ;;  %3603 = vmatpush.bf16.msrb.mxu1 %v5939_v33  ;;  %v7362_v21 = vld [vmem:[#allocation2 + $0x66c] sm:$0xf0]  ;;  %v6292_v24 = vld [vmem:[#allocation2 + $0x5f0] sm:$0xf0]  ;;  %v6039_v33 = vor.u32 %v7278_v26, %v6036_v28 }
 0x4cd   :  { %v5554_v8 = vld [vmem:[#allocation2 + $0x10] sm:$0xf]  ;;  %v6355_v16 = vor.u32 %v7362_v21, %v6354_v10  ;;  %v7190_v0 = vld [vmem:[#allocation2 + $0x114] sm:$0xf] }
 0x4ce   :  { %3616 = vmatpush.bf16.msrb.mxu2 %v6195_v42  ;;  %3591 = vmatpush.bf16.msrb.mxu0 %v5651_v46  ;;  %v7162_v13 = vld [vmem:[#allocation2 + $0x2c] sm:$0xf0]  ;;  %v6295_v42 = vor.u32 %v7342_v29, %v6292_v24  ;;  %v5751_v46 = vor.u32 %v7206_v43, %v5748_v35  ;;  %v5684_v1 = vld [vmem:[#allocation2 + $0x130] sm:$0xf0] }
 0x4cf   :  { %v5810_v12 = vld [vmem:[#allocation2 + $0x210] sm:$0xf]  ;;  %v5555_v27 = vor.u32 %v7162_v13, %v5554_v8  ;;  %v7254_v2 = vld [vmem:[#allocation2 + $0x314] sm:$0xf] }
 0x4d0   :  { %3629 = vmatpush.bf16.msrb.mxu3 %v6451_v38  ;;  %3604 = vmatpush.bf16.msrb.mxu1 %v5907_v47  ;;  %v7226_v14 = vld [vmem:[#allocation2 + $0x22c] sm:$0xf0]  ;;  %v6551_v38 = vor.u32 %v7406_v31, %v6548_v32  ;;  %v6007_v47 = vor.u32 %v7270_v37, %v6004_v39  ;;  %v5940_v5 = vld [vmem:[#allocation2 + $0x330] sm:$0xf0] }
 0x4d1   :  { %v6066_v15 = vld [vmem:[#allocation2 + $0x410] sm:$0xf]  ;;  %v5811_v23 = vor.u32 %v7226_v14, %v5810_v12  ;;  %v7318_v6 = vld [vmem:[#allocation2 + $0x514] sm:$0xf]  ;;  %v5943_v13 = vor.u32 %v7254_v2, %v5940_v5 }
 0x4d2   :  { %3617 = vmatpush.bf16.msrb.mxu2 %v6163_v49  ;;  %3592 = vmatpush.bf16.msrb.mxu0 %v5619_v62  ;;  %v7290_v17 = vld [vmem:[#allocation2 + $0x42c] sm:$0xf0]  ;;  %v6263_v49 = vor.u32 %v7334_v40, %v6260_v41  ;;  %v5719_v62 = vor.u32 %v7198_v50, %v5716_v51  ;;  %v6196_v7 = vld [vmem:[#allocation2 + $0x530] sm:$0xf0] }
 0x4d3   :  { %v6322_v19 = vld [vmem:[#allocation2 + $0x610] sm:$0xf]  ;;  %v6067_v30 = vor.u32 %v7290_v17, %v6066_v15  ;;  %v7382_v10 = vld [vmem:[#allocation2 + $0x714] sm:$0xf] }
 0x4d4   :  { %3630 = vmatpush.bf16.msrb.mxu3 %v6419_v54  ;;  %3605 = vmatpush.bf16.msrb.mxu1 %v5875_v34  ;;  %v7354_v20 = vld [vmem:[#allocation2 + $0x62c] sm:$0xf0]  ;;  %v6519_v54 = vor.u32 %v7398_v44, %v6516_v45  ;;  %v5975_v34 = vor.u32 %v7262_v52, %v5972_v55  ;;  %v6452_v21 = vld [vmem:[#allocation2 + $0x730] sm:$0xf0] }
 0x4d5   :  { %v6323_v56 = vor.u32 %v7354_v20, %v6322_v19  ;;  %v5652_v12 = vld [vmem:[#allocation2 + $0xf0] sm:$0xf0] }
 0x4d6   :  { %3618 = vmatpush.bf16.msrb.mxu2 %v6131_v63  ;;  %3593 = vmatpush.bf16.msrb.mxu0 %v5587_v53  ;;  %v6231_v63 = vor.u32 %v7326_v57, %v6228_v59  ;;  %v5687_v53 = vor.u32 %v7190_v0, %v5684_v1  ;;  %v7246_v14 = vld [vmem:[#allocation2 + $0x2d4] sm:$0xf] }
 0x4d7   :  { %v5908_v17 = vld [vmem:[#allocation2 + $0x2f0] sm:$0xf0] }
 0x4d8   :  { %3631 = vmatpush.bf16.msrb.mxu3 %v6387_v4  ;;  %3606 = vmatpush.bf16.msrb.mxu1 %v5843_v3  ;;  %v6487_v4 = vor.u32 %v7390_v60, %v6484_v61  ;;  %v6199_v3 = vor.u32 %v7318_v6, %v6196_v7  ;;  %v7310_v19 = vld [vmem:[#allocation2 + $0x4d4] sm:$0xf]  ;;  %v5911_v28 = vor.u32 %v7246_v14, %v5908_v17  ;;  %v7219_v14 = vld [vmem:[#allocation2 + $0x1f4] sm:$0xf0] }
 0x4d9   :  { %v6164_v20 = vld [vmem:[#allocation2 + $0x4f0] sm:$0xf0] }
 0x4da   :  { %3619 = vmatpush.bf16.msrb.mxu2 %v6099_v11  ;;  %3594 = vmatpush.bf16.msrb.mxu0 %v5555_v27  ;;  %v3388_v8 = vpop.f32.mrf.mxu0  ;;  %v7182_v11 = vld [vmem:[#allocation2 + $0xd4] sm:$0xf]  ;;  %v6167_v29 = vor.u32 %v7310_v19, %v6164_v20 }
 0x4db   :  { %v7374_v58 = vld [vmem:[#allocation2 + $0x6d4] sm:$0xf]  ;;  %v5655_v27 = vor.u32 %v7182_v11, %v5652_v12  ;;  %v5786_v11 = vld [vmem:[#allocation2 + $0x1d8] sm:$0xf] }
 0x4dc   :  { %3632 = vmatpush.bf16.msrb.mxu3 %v6355_v16  ;;  %3607 = vmatpush.bf16.msrb.mxu1 %v5811_v23  ;;  %v3401_v15 = vpop.f32.mrf.mxu1  ;;  %v6455_v16 = vor.u32 %v7382_v10, %v6452_v21  ;;  %v6420_v26 = vld [vmem:[#allocation2 + $0x6f0] sm:$0xf0] }
 0x4dd   :  { %3595 = vmatmul.bf16.vlgmr.msrb.gmra.mxu0 %v9467_v22  ;;  %v3402_v48 = vadd.f32 %v3401_v15, %v3388_v8  ;;  %v7174_v24 = vld [vmem:[#allocation2 + $0x94] sm:$0xf]  ;;  %v6423_v32 = vor.u32 %v7374_v58, %v6420_v26  ;;  %v6042_v15 = vld [vmem:[#allocation2 + $0x3d8] sm:$0xf] }
 0x4de   :  { %3620 = vmatpush.bf16.msrb.mxu2 %v6067_v30  ;;  %3639 = vmatpush.bf16.msra.mxu0 %v5783_v9  ;;  %v5620_v23 = vld [vmem:[#allocation2 + $0xb0] sm:$0xf0]  ;;  %v7347_v58 = vld [vmem:[#allocation2 + $0x5f4] sm:$0xf0] }
 0x4df   :  { %3608 = vmatmul.bf16.vlgmr.msrb.gmra.mxu1 %v9471_v25  ;;  %v7238_v30 = vld [vmem:[#allocation2 + $0x294] sm:$0xf] }
 0x4e0   :  { %3633 = vmatpush.bf16.msrb.mxu3 %v6323_v56  ;;  %3652 = vmatpush.bf16.msra.mxu1 %v6039_v33  ;;  %v5876_v56 = vld [vmem:[#allocation2 + $0x2b0] sm:$0xf0] }
 0x4e1   :  { %3621 = vmatmul.bf16.vlgmr.msrb.gmra.mxu2 %v9459_v18  ;;  %v7302_v9 = vld [vmem:[#allocation2 + $0x494] sm:$0xf] }
 0x4e2   :  { %3665 = vmatpush.bf16.msra.mxu2 %v6295_v42  ;;  %3640 = vmatpush.bf16.msra.mxu0 %v5751_v46  ;;  %v6132_v33 = vld [vmem:[#allocation2 + $0x4b0] sm:$0xf0]  ;;  %v3390_v45 = vpop.f32.mrf.mxu0  ;;  %v5879_v46 = vor.u32 %v7238_v30, %v5876_v56  ;;  %v5754_v30 = vld [vmem:[#allocation2 + $0x198] sm:$0xf] }
 0x4e3   :  { %3634 = vmatmul.bf16.vlgmr.msrb.gmra.mxu3 %v9463_v36  ;;  %v7366_v35 = vld [vmem:[#allocation2 + $0x694] sm:$0xf]  ;;  %v7211_v56 = vld [vmem:[#allocation2 + $0x1b4] sm:$0xf0] }
 0x4e4   :  { %3678 = vmatpush.bf16.msra.mxu3 %v6551_v38  ;;  %3653 = vmatpush.bf16.msra.mxu1 %v6007_v47  ;;  %v3414_v31 = vpop.f32.mrf.mxu2  ;;  %v6388_v37 = vld [vmem:[#allocation2 + $0x6b0] sm:$0xf0]  ;;  %v5623_v38 = vor.u32 %v7174_v24, %v5620_v23  ;;  %v6135_v47 = vor.u32 %v7302_v9, %v6132_v33  ;;  %v3403_v52 = vpop.f32.mrf.mxu1  ;;  %v5787_v23 = vor.u32 %v7219_v14, %v5786_v11  ;;  %v6010_v9 = vld [vmem:[#allocation2 + $0x398] sm:$0xf] }
 0x4e5   :  { %v3415_v42 = vadd.f32 %v3414_v31, %v3402_v48  ;;  %v7166_v39 = vld [vmem:[#allocation2 + $0x54] sm:$0xf]  ;;  %v6298_v48 = vld [vmem:[#allocation2 + $0x5d8] sm:$0xf] }
 0x4e6   :  { %3666 = vmatpush.bf16.msra.mxu2 %v6263_v49  ;;  %3641 = vmatpush.bf16.msra.mxu0 %v5719_v62  ;;  %v3427_v43 = vpop.f32.mrf.mxu3  ;;  %v5588_v40 = vld [vmem:[#allocation2 + $0x70] sm:$0xf0]  ;;  %v7275_v33 = vld [vmem:[#allocation2 + $0x3b4] sm:$0xf0] }
 0x4e7   :  { %v7230_v41 = vld [vmem:[#allocation2 + $0x254] sm:$0xf]  ;;  %v9493_v44 = vadd.f32 %v3427_v43, %v3415_v42  ;;  %v5722_v45 = vld [vmem:[#allocation2 + $0x158] sm:$0xf] }
 0x4e8   :  { %3679 = vmatpush.bf16.msra.mxu3 %v6519_v54  ;;  %3654 = vmatpush.bf16.msra.mxu1 %v5975_v34  ;;  %v5844_v49 = vld [vmem:[#allocation2 + $0x270] sm:$0xf0]  ;;  %v6391_v54 = vor.u32 %v7366_v35, %v6388_v37  ;;  %v6266_v37 = vld [vmem:[#allocation2 + $0x598] sm:$0xf] }
 0x4e9   :  { %v7294_v50 = vld [vmem:[#allocation2 + $0x454] sm:$0xf]  ;;  %v3797_v59 = vsel %vm1053_vm4, %v9493_v44, 0.0  ;;  %v3861_v60 = vmul.f32 %v9493_v44, %v9493_v44  ;;  %v5658_v11 = vld [vmem:[#allocation2 + $0xd8] sm:$0xf] }
 0x4ea   :  { %3667 = vmatpush.bf16.msra.mxu2 %v6231_v63  ;;  %3642 = vmatpush.bf16.msra.mxu0 %v5687_v53  ;;  %v6100_v51 = vld [vmem:[#allocation2 + $0x470] sm:$0xf0]  ;;  %v3798_v61 = vrot.slane %v3797_v59, 4  ;;  %v5591_v63 = vor.u32 %v7166_v39, %v5588_v40  ;;  %v6522_v39 = vld [vmem:[#allocation2 + $0x798] sm:$0xf] }
 0x4eb   :  { %v7358_v55 = vld [vmem:[#allocation2 + $0x654] sm:$0xf]  ;;  %v3869_v0 = vsel %vm1053_vm4, %v3861_v60, 0.0  ;;  %v6103_v5 = vor.u32 %v7294_v50, %v6100_v51  ;;  %v7403_v40 = vld [vmem:[#allocation2 + $0x7b4] sm:$0xf0] }
 0x4ec   :  { %3680 = vmatpush.bf16.msra.mxu3 %v6487_v4  ;;  %3655 = vmatpush.bf16.msra.mxu1 %v5943_v13  ;;  %v6356_v57 = vld [vmem:[#allocation2 + $0x670] sm:$0xf0]  ;;  %v5847_v4 = vor.u32 %v7230_v41, %v5844_v49  ;;  %v3799_v6 = vadd.f32 %v3798_v61, %v3797_v59  ;;  %v3870_v7 = vrot.slane %v3869_v0, 4  ;;  %v3416_v53 = vpop.f32.mrf.mxu2  ;;  %v5755_v41 = vor.u32 %v7211_v56, %v5754_v30  ;;  %v7203_v49 = vld [vmem:[#allocation2 + $0x174] sm:$0xf0] }
 0x4ed   :  { %v7158_v62 = vld [vmem:[#allocation2 + $0x14] sm:$0xf]  ;;  %v6359_v8 = vor.u32 %v7358_v55, %v6356_v57  ;;  %v5978_v50 = vld [vmem:[#allocation2 + $0x358] sm:$0xf]  ;;  %v6523_v55 = vor.u32 %v7403_v40, %v6522_v39 }
 0x4ee   :  { %3668 = vmatpush.bf16.msra.mxu2 %v6199_v3  ;;  %3643 = vmatpush.bf16.msra.mxu0 %v5655_v27  ;;  %v5556_v34 = vld [vmem:[#allocation2 + $0x30] sm:$0xf0]  ;;  %v3429_v12 = vpop.f32.mrf.mxu3  ;;  %v3800_v17 = vrot.slane %v3799_v6, 2  ;;  %v3871_v19 = vadd.f32 %v3870_v7, %v3869_v0  ;;  %v7267_v51 = vld [vmem:[#allocation2 + $0x374] sm:$0xf0] }
 0x4ef   :  { %v7222_v1 = vld [vmem:[#allocation2 + $0x214] sm:$0xf]  ;;  %v5559_v20 = vor.u32 %v7158_v62, %v5556_v34  ;;  %v6234_v57 = vld [vmem:[#allocation2 + $0x558] sm:$0xf]  ;;  %v5723_v62 = vor.u32 %v7203_v49, %v5722_v45 }
 0x4f0   :  { %3681 = vmatpush.bf16.msra.mxu3 %v6455_v16  ;;  %3656 = vmatpush.bf16.msra.mxu1 %v5911_v28  ;;  %v5812_v2 = vld [vmem:[#allocation2 + $0x230] sm:$0xf0]  ;;  %v7283_v16 = vld [vmem:[#allocation2 + $0x3f4] sm:$0xf0]  ;;  %v3801_v42 = vadd.f32 %v3800_v17, %v3799_v6  ;;  %v3872_v43 = vrot.slane %v3871_v19, 2 }
 0x4f1   :  { %v7286_v10 = vld [vmem:[#allocation2 + $0x414] sm:$0xf]  ;;  %v5815_v26 = vor.u32 %v7222_v1, %v5812_v2  ;;  %v6554_v28 = vld [vmem:[#allocation2 + $0x7d8] sm:$0xf]  ;;  %v6043_v31 = vor.u32 %v7283_v16, %v6042_v15 }
 0x4f2   :  { %3669 = vmatpush.bf16.msra.mxu2 %v6167_v29  ;;  %3644 = vmatpush.bf16.msra.mxu0 %v5623_v38  ;;  %v6068_v21 = vld [vmem:[#allocation2 + $0x430] sm:$0xf0]  ;;  %v7411_v29 = vld [vmem:[#allocation2 + $0x7f4] sm:$0xf0]  ;;  %v3802_v52 = vrot.slane %v3801_v42, 1 }
 0x4f3   :  { %v7350_v13 = vld [vmem:[#allocation2 + $0x614] sm:$0xf]  ;;  %v6071_v27 = vor.u32 %v7286_v10, %v6068_v21  ;;  %v6555_v35 = vor.u32 %v7411_v29, %v6554_v28  ;;  %v7339_v38 = vld [vmem:[#allocation2 + $0x5b4] sm:$0xf0] }
 0x4f4   :  { %3682 = vmatpush.bf16.msra.mxu3 %v6423_v32  ;;  %3657 = vmatpush.bf16.msra.mxu1 %v5879_v46  ;;  %v6324_v3 = vld [vmem:[#allocation2 + $0x630] sm:$0xf0]  ;;  %v6299_v32 = vor.u32 %v7347_v58, %v6298_v48  ;;  %v6011_v46 = vor.u32 %v7275_v33, %v6010_v9  ;;  %v7331_v59 = vld [vmem:[#allocation2 + $0x574] sm:$0xf0] }
 0x4f5   :  { %v6327_v24 = vor.u32 %v7350_v13, %v6324_v3  ;;  %v6490_v60 = vld [vmem:[#allocation2 + $0x758] sm:$0xf]  ;;  %v6235_v0 = vor.u32 %v7331_v59, %v6234_v57 }
 0x4f6   :  { %3670 = vmatpush.bf16.msra.mxu2 %v6135_v47  ;;  %3645 = vmatpush.bf16.msra.mxu0 %v5591_v63  ;;  %v6267_v47 = vor.u32 %v7339_v38, %v6266_v37  ;;  %v7395_v61 = vld [vmem:[#allocation2 + $0x774] sm:$0xf0]  ;;  %v5979_v63 = vor.u32 %v7267_v51, %v5978_v50 }
 0x4f7   :  { %v5690_v34 = vld [vmem:[#allocation2 + $0x118] sm:$0xf]  ;;  %v6491_v7 = vor.u32 %v7395_v61, %v6490_v60 }
 0x4f8   :  { %3683 = vmatpush.bf16.msra.mxu3 %v6391_v54  ;;  %3658 = vmatpush.bf16.msra.mxu1 %v5847_v4  ;;  %v3873_v54 = vadd.f32 %v3872_v43, %v3871_v19  ;;  %v7195_v1 = vld [vmem:[#allocation2 + $0x134] sm:$0xf0] }
 0x4f9   :  { %v5946_v2 = vld [vmem:[#allocation2 + $0x318] sm:$0xf]  ;;  %v5691_v13 = vor.u32 %v7195_v1, %v5690_v34 }
 0x4fa   :  { %3671 = vmatpush.bf16.msra.mxu2 %v6103_v5  ;;  %3646 = vmatpush.bf16.msra.mxu0 %v5559_v20  ;;  %v7259_v4 = vld [vmem:[#allocation2 + $0x334] sm:$0xf0]  ;;  %v3803_v5 = vadd.f32 %v3802_v52, %v3801_v42  ;;  %v3874_v6 = vrot.slane %v3873_v54, 1  ;;  %v3440_v3 = vpop.f32.mrf.mxu0 }
 0x4fb   :  { %v6202_v10 = vld [vmem:[#allocation2 + $0x518] sm:$0xf]  ;;  %v5947_v12 = vor.u32 %v7259_v4, %v5946_v2 }
 0x4fc   :  { %3684 = vmatpush.bf16.msra.mxu3 %v6359_v8  ;;  %3659 = vmatpush.bf16.msra.mxu1 %v5815_v26  ;;  %v7323_v21 = vld [vmem:[#allocation2 + $0x534] sm:$0xf0]  ;;  %v3453_v15 = vpop.f32.mrf.mxu1  ;;  %v9504_v20 = vmul.f32 0.25, %v3803_v5  ;;  %v3875_v48 = vadd.f32 %v3874_v6, %v3873_v54 }
 0x4fd   :  { %3647 = vmatmul.bf16.vlgmr.msra.gmra.mxu0 %v9467_v22  ;;  %v6458_v53 = vld [vmem:[#allocation2 + $0x718] sm:$0xf]  ;;  %v6203_v14 = vor.u32 %v7323_v21, %v6202_v10  ;;  %v3454_v26 = vadd.f32 %v3453_v15, %v3440_v3 }
 0x4fe   :  { %3672 = vmatpush.bf16.msra.mxu2 %v6071_v27  ;;  %3691 = vmatpush.bf16.msrb.mxu0 %v5787_v23  ;;  %v7387_v8 = vld [vmem:[#allocation2 + $0x734] sm:$0xf0]  ;;  %v3925_v43 = vmul.f32 0.25, %v3875_v48 }
 0x4ff   :  { %3660 = vmatmul.bf16.vlgmr.msra.gmra.mxu1 %v9471_v25  ;;  %v7187_v16 = vld [vmem:[#allocation2 + $0xf4] sm:$0xf0]  ;;  %v6459_v58 = vor.u32 %v7387_v8, %v6458_v53 }
 0x500   :  { %3685 = vmatpush.bf16.msra.mxu3 %v6327_v24  ;;  %3704 = vmatpush.bf16.msrb.mxu1 %v6043_v31  ;;  %v5914_v17 = vld [vmem:[#allocation2 + $0x2d8] sm:$0xf]  ;;  %v5659_v23 = vor.u32 %v7187_v16, %v5658_v11 }
 0x501   :  { %3673 = vmatmul.bf16.vlgmr.msra.gmra.mxu2 %v9459_v18  ;;  %v7251_v19 = vld [vmem:[#allocation2 + $0x2f4] sm:$0xf0] }
 0x502   :  { %3717 = vmatpush.bf16.msrb.mxu2 %v6299_v32  ;;  %3692 = vmatpush.bf16.msrb.mxu0 %v5755_v41  ;;  %v6170_v27 = vld [vmem:[#allocation2 + $0x4d8] sm:$0xf]  ;;  %v5915_v31 = vor.u32 %v7251_v19, %v5914_v17  ;;  %v3442_v54 = vpop.f32.mrf.mxu0 }
 0x503   :  { %3686 = vmatmul.bf16.vlgmr.msra.gmra.mxu3 %v9463_v36  ;;  %v7315_v28 = vld [vmem:[#allocation2 + $0x4f4] sm:$0xf0] }
 0x504   :  { %3730 = vmatpush.bf16.msrb.mxu3 %v6555_v35  ;;  %3705 = vmatpush.bf16.msrb.mxu1 %v6011_v46  ;;  %v6426_v29 = vld [vmem:[#allocation2 + $0x6d8] sm:$0xf]  ;;  %v6171_v32 = vor.u32 %v7315_v28, %v6170_v27  ;;  %v3466_v56 = vpop.f32.mrf.mxu2  ;;  %v3933_v35 = vmul.f32 %v9504_v20, %v9504_v20 }
 0x505   :  { %v7379_v24 = vld [vmem:[#allocation2 + $0x6f4] sm:$0xf0]  ;;  %v3467_v38 = vadd.f32 %v3466_v56, %v3454_v26  ;;  %v7215_v26 = vld [vmem:[#allocation2 + $0x1dc] sm:$0xf] }
 0x506   :  { %3718 = vmatpush.bf16.msrb.mxu2 %v6267_v47  ;;  %3693 = vmatpush.bf16.msrb.mxu0 %v5723_v62  ;;  %v5626_v30 = vld [vmem:[#allocation2 + $0x98] sm:$0xf]  ;;  %v6427_v37 = vor.u32 %v7379_v24, %v6426_v29  ;;  %v3479_v39 = vpop.f32.mrf.mxu3  ;;  %v3455_v62 = vpop.f32.mrf.mxu1  ;;  %v3941_v34 = vsub.f32 %v3925_v43, %v3933_v35  ;;  %v5788_v24 = vld [vmem:[#allocation2 + $0x1f8] sm:$0xf0] }
 0x507   :  { %v7179_v9 = vld [vmem:[#allocation2 + $0xb4] sm:$0xf0]  ;;  %v9508_v47 = vadd.f32 %v3479_v39, %v3467_v38  ;;  %v6300_v56 = vld [vmem:[#allocation2 + $0x5f8] sm:$0xf0] }
 0x508   :  { %3731 = vmatpush.bf16.msrb.mxu3 %v6523_v55  ;;  %3706 = vmatpush.bf16.msrb.mxu1 %v5979_v63  ;;  %v5882_v33 = vld [vmem:[#allocation2 + $0x298] sm:$0xf]  ;;  %v5627_v49 = vor.u32 %v7179_v9, %v5626_v30  ;;  %v3949_v19 = vmax.f32 %v3941_v34, 0.0  ;;  %v7407_v35 = vld [vmem:[#allocation2 + $0x7dc] sm:$0xf] }
 0x509   :  { %v7243_v42 = vld [vmem:[#allocation2 + $0x2b4] sm:$0xf0]  ;;  %v3804_v63 = vsel %vm1053_vm4, %v9508_v47, 0.0  ;;  %v7399_v62 = vld [vmem:[#allocation2 + $0x79c] sm:$0xf] }
 0x50a   :  { %3719 = vmatpush.bf16.msrb.mxu2 %v6235_v0  ;;  %3694 = vmatpush.bf16.msrb.mxu0 %v5691_v13  ;;  %v6138_v40 = vld [vmem:[#allocation2 + $0x498] sm:$0xf]  ;;  %v5883_v55 = vor.u32 %v7243_v42, %v5882_v33  ;;  %v3862_v0 = vmul.f32 %v9508_v47, %v9508_v47  ;;  %v3805_v5 = vrot.slane %v3804_v63, 4  ;;  %v9515_v38 = vadd.f32 0.8, %v3949_v19 }
 0x50b   :  { %v7307_v41 = vld [vmem:[#allocation2 + $0x4b4] sm:$0xf0]  ;;  %v6524_v34 = vld [vmem:[#allocation2 + $0x7b8] sm:$0xf0] }
 0x50c   :  { %3732 = vmatpush.bf16.msrb.mxu3 %v6491_v7  ;;  %3707 = vmatpush.bf16.msrb.mxu1 %v5947_v12  ;;  %v6394_v45 = vld [vmem:[#allocation2 + $0x698] sm:$0xf]  ;;  %v6139_v57 = vor.u32 %v7307_v41, %v6138_v40  ;;  %v3876_v10 = vsel %vm1053_vm4, %v3862_v0, 0.0  ;;  %v3806_v3 = vadd.f32 %v3805_v5, %v3804_v63  ;;  %v3468_v17 = vpop.f32.mrf.mxu2  ;;  %v5791_v40 = vor.u32 %v7215_v26, %v5788_v24  ;;  %v7207_v41 = vld [vmem:[#allocation2 + $0x19c] sm:$0xf] }
 0x50d   :  { %v7371_v46 = vld [vmem:[#allocation2 + $0x6b4] sm:$0xf0]  ;;  %v3877_v11 = vrot.slane %v3876_v10, 4  ;;  %7556 = vrsqrt.f32 %v9515_v38  ;;  %v7199_v0 = vld [vmem:[#allocation2 + $0x15c] sm:$0xf]  ;;  %vm3971_vm5 = vweird.f32 %v9515_v38 }
 0x50e   :  { %3720 = vmatpush.bf16.msrb.mxu2 %v6203_v14  ;;  %3695 = vmatpush.bf16.msrb.mxu0 %v5659_v23  ;;  %v5594_v50 = vld [vmem:[#allocation2 + $0x58] sm:$0xf]  ;;  %v6395_v1 = vor.u32 %v7371_v46, %v6394_v45  ;;  %v3481_v27 = vpop.f32.mrf.mxu3  ;;  %v3807_v28 = vrot.slane %v3806_v3, 2  ;;  %v7279_v23 = vld [vmem:[#allocation2 + $0x3dc] sm:$0xf] }
 0x50f   :  { %v7171_v51 = vld [vmem:[#allocation2 + $0x74] sm:$0xf0]  ;;  %v3878_v29 = vadd.f32 %v3877_v11, %v3876_v10  ;;  %v6527_v10 = vor.u32 %v7399_v62, %v6524_v34  ;;  %v7391_v11 = vld [vmem:[#allocation2 + $0x75c] sm:$0xf] }
 0x510   :  { %3733 = vmatpush.bf16.msrb.mxu3 %v6459_v58  ;;  %v5850_v52 = vld [vmem:[#allocation2 + $0x258] sm:$0xf]  ;;  %3708 = vmatpush.bf16.msrb.mxu1 %v5915_v31  ;;  %v5595_v21 = vor.u32 %v7171_v51, %v5594_v50  ;;  %v6044_v31 = vld [vmem:[#allocation2 + $0x3f8] sm:$0xf0]  ;;  %v3808_v9 = vadd.f32 %v3807_v28, %v3806_v3 }
 0x511   :  { %v7235_v59 = vld [vmem:[#allocation2 + $0x274] sm:$0xf0]  ;;  %v3879_v33 = vrot.slane %v3878_v29, 2  ;;  %v5756_v51 = vld [vmem:[#allocation2 + $0x1b8] sm:$0xf0] }
 0x512   :  { %3721 = vmatpush.bf16.msrb.mxu2 %v6171_v32  ;;  %v6106_v60 = vld [vmem:[#allocation2 + $0x458] sm:$0xf]  ;;  %3696 = vmatpush.bf16.msrb.mxu0 %v5627_v49  ;;  %v5851_v12 = vor.u32 %v7235_v59, %v5850_v52  ;;  %v7343_v32 = vld [vmem:[#allocation2 + $0x5dc] sm:$0xf]  ;;  %v3809_v45 = vrot.slane %v3808_v9, 1  ;;  %v6047_v49 = vor.u32 %v7279_v23, %v6044_v31  ;;  %v5759_v63 = vor.u32 %v7207_v41, %v5756_v51 }
 0x513   :  { %v7299_v61 = vld [vmem:[#allocation2 + $0x474] sm:$0xf0]  ;;  %v3880_v46 = vadd.f32 %v3879_v33, %v3878_v29  ;;  %v6303_v50 = vor.u32 %v7343_v32, %v6300_v56  ;;  %v7271_v52 = vld [vmem:[#allocation2 + $0x39c] sm:$0xf]  ;;  %v9526_v26 = vpop.eup %7556 }
 0x514   :  { %3734 = vmatpush.bf16.msrb.mxu3 %v6427_v37  ;;  %v6362_v2 = vld [vmem:[#allocation2 + $0x658] sm:$0xf]  ;;  %3709 = vmatpush.bf16.msrb.mxu1 %v5883_v55  ;;  %v6107_v14 = vor.u32 %v7299_v61, %v6106_v60  ;;  %v6556_v37 = vld [vmem:[#allocation2 + $0x7f8] sm:$0xf0]  ;;  %v3810_v60 = vadd.f32 %v3809_v45, %v3808_v9  ;;  %v3966_v33 = vmul.f32 %v9526_v26, %v9515_v38  ;;  %vm3972_vm6 = vweird.f32 %v9526_v26 }
 0x515   :  { %v7363_v4 = vld [vmem:[#allocation2 + $0x674] sm:$0xf0]  ;;  %v6559_v54 = vor.u32 %v7407_v35, %v6556_v37  ;;  %v6012_v55 = vld [vmem:[#allocation2 + $0x3b8] sm:$0xf0]  ;;  %v3881_v61 = vrot.slane %v3880_v46, 1  ;;  %vm3973_vm9 = vmor %vm3971_vm5, %vm3972_vm6 }
 0x516   :  { %v5562_v6 = vld [vmem:[#allocation2 + $0x18] sm:$0xf]  ;;  %3722 = vmatpush.bf16.msrb.mxu2 %v6139_v57  ;;  %v6363_v48 = vor.u32 %v7363_v4, %v6362_v2  ;;  %3697 = vmatpush.bf16.msrb.mxu0 %v5595_v21  ;;  %v7335_v57 = vld [vmem:[#allocation2 + $0x59c] sm:$0xf]  ;;  %v6015_v4 = vor.u32 %v7271_v52, %v6012_v55  ;;  %v3967_v55 = vmul.f32 %v9526_v26, %v3966_v33 }
 0x517   :  { %v7163_v7 = vld [vmem:[#allocation2 + $0x34] sm:$0xf0]  ;;  %v6268_v59 = vld [vmem:[#allocation2 + $0x5b8] sm:$0xf0]  ;;  %v3882_v2 = vadd.f32 %v3881_v61, %v3880_v46 }
 0x518   :  { %v5818_v53 = vld [vmem:[#allocation2 + $0x218] sm:$0xf]  ;;  %3735 = vmatpush.bf16.msrb.mxu3 %v6395_v1  ;;  %v5563_v30 = vor.u32 %v7163_v7, %v5562_v6  ;;  %3710 = vmatpush.bf16.msrb.mxu1 %v5851_v12  ;;  %v9518_v1 = vmul.f32 0.25, %v3810_v60  ;;  %v6271_v5 = vor.u32 %v7335_v57, %v6268_v59  ;;  %v5724_v6 = vld [vmem:[#allocation2 + $0x178] sm:$0xf0] }
 0x519   :  { %v7227_v8 = vld [vmem:[#allocation2 + $0x234] sm:$0xf0]  ;;  %v7263_v7 = vld [vmem:[#allocation2 + $0x35c] sm:$0xf] }
 0x51a   :  { %v6074_v13 = vld [vmem:[#allocation2 + $0x418] sm:$0xf]  ;;  %3723 = vmatpush.bf16.msrb.mxu2 %v6107_v14  ;;  %v5819_v42 = vor.u32 %v7227_v8, %v5818_v53  ;;  %3698 = vmatpush.bf16.msrb.mxu0 %v5563_v30  ;;  %v5980_v21 = vld [vmem:[#allocation2 + $0x378] sm:$0xf0]  ;;  %v3934_v3 = vmul.f32 %v9518_v1, %v9518_v1  ;;  %v5727_v14 = vor.u32 %v7199_v0, %v5724_v6  ;;  %v3492_v9 = vpop.f32.mrf.mxu0 }
 0x51b   :  { %v7291_v15 = vld [vmem:[#allocation2 + $0x434] sm:$0xf0]  ;;  %v7327_v53 = vld [vmem:[#allocation2 + $0x55c] sm:$0xf] }
 0x51c   :  { %v6330_v16 = vld [vmem:[#allocation2 + $0x618] sm:$0xf]  ;;  %v6075_v43 = vor.u32 %v7291_v15, %v6074_v13  ;;  %3736 = vmatpush.bf16.msrb.mxu3 %v6363_v48  ;;  %3711 = vmatpush.bf16.msrb.mxu1 %v5819_v42  ;;  %v6236_v8 = vld [vmem:[#allocation2 + $0x578] sm:$0xf0]  ;;  %v3926_v13 = vmul.f32 0.25, %v3882_v2 }
 0x51d   :  { %v7355_v58 = vld [vmem:[#allocation2 + $0x634] sm:$0xf0]  ;;  %3699 = vmatmul.bf16.vlgmr.msrb.gmra.mxu0 %v9467_v22  ;;  %v6492_v12 = vld [vmem:[#allocation2 + $0x778] sm:$0xf0]  ;;  %v6239_v17 = vor.u32 %v7327_v53, %v6236_v8 }
 0x51e   :  { %v6331_v39 = vor.u32 %v7355_v58, %v6330_v16  ;;  %3724 = vmatpush.bf16.msrb.mxu2 %v6075_v43  ;;  %3743 = vmatpush.bf16.msra.mxu0 %v5791_v40  ;;  %v3942_v15 = vsub.f32 %v3926_v13, %v3934_v3  ;;  %v5983_v16 = vor.u32 %v7263_v7, %v5980_v21  ;;  %v7191_v19 = vld [vmem:[#allocation2 + $0x11c] sm:$0xf]  ;;  %v3505_v40 = vpop.f32.mrf.mxu1 }
 0x51f   :  { %3712 = vmatmul.bf16.vlgmr.msrb.gmra.mxu1 %v9471_v25  ;;  %v5692_v48 = vld [vmem:[#allocation2 + $0x138] sm:$0xf0]  ;;  %v6495_v27 = vor.u32 %v7391_v11, %v6492_v12  ;;  %v3968_v12 = vmul.f32 0.5, %v3967_v55 }
 0x520   :  { %3737 = vmatpush.bf16.msrb.mxu3 %v6331_v39  ;;  %3756 = vmatpush.bf16.msra.mxu1 %v6047_v49  ;;  %v7255_v58 = vld [vmem:[#allocation2 + $0x31c] sm:$0xf]  ;;  %v3950_v23 = vmax.f32 %v3942_v15, 0.0  ;;  %v5695_v32 = vor.u32 %v7191_v19, %v5692_v48 }
 0x521   :  { %3725 = vmatmul.bf16.vlgmr.msrb.gmra.mxu2 %v9459_v18  ;;  %v5948_v28 = vld [vmem:[#allocation2 + $0x338] sm:$0xf0] }
 0x522   :  { %3769 = vmatpush.bf16.msra.mxu2 %v6303_v50  ;;  %3744 = vmatpush.bf16.msra.mxu0 %v5759_v63  ;;  %v7319_v29 = vld [vmem:[#allocation2 + $0x51c] sm:$0xf]  ;;  %v9530_v42 = vadd.f32 0.8, %v3950_v23  ;;  %v5951_v43 = vor.u32 %v7255_v58, %v5948_v28  ;;  %v3506_v50 = vadd.f32 %v3505_v40, %v3492_v9  ;;  %v3494_v3 = vpop.f32.mrf.mxu0 }
 0x523   :  { %3738 = vmatmul.bf16.vlgmr.msrb.gmra.mxu3 %v9463_v36  ;;  %v6204_v24 = vld [vmem:[#allocation2 + $0x538] sm:$0xf0] }
 0x524   :  { %3782 = vmatpush.bf16.msra.mxu3 %v6559_v54  ;;  %3757 = vmatpush.bf16.msra.mxu1 %v6015_v4  ;;  %v7383_v30 = vld [vmem:[#allocation2 + $0x71c] sm:$0xf]  ;;  %v6207_v35 = vor.u32 %v7319_v29, %v6204_v24  ;;  %7558 = vrsqrt.f32 %v9530_v42  ;;  %v3518_v34 = vpop.f32.mrf.mxu2  ;;  %vm3981_vm2 = vweird.f32 %v9530_v42 }
 0x525   :  { %v6460_v31 = vld [vmem:[#allocation2 + $0x738] sm:$0xf0] }
 0x526   :  { %3770 = vmatpush.bf16.msra.mxu2 %v6271_v5  ;;  %3745 = vmatpush.bf16.msra.mxu0 %v5727_v14  ;;  %v7183_v56 = vld [vmem:[#allocation2 + $0xdc] sm:$0xf]  ;;  %v6463_v41 = vor.u32 %v7383_v30, %v6460_v31  ;;  %v3519_v5 = vadd.f32 %v3518_v34, %v3506_v50  ;;  %v3531_v6 = vpop.f32.mrf.mxu3  ;;  %v3507_v19 = vpop.f32.mrf.mxu1 }
 0x527   :  { %v5660_v37 = vld [vmem:[#allocation2 + $0xf8] sm:$0xf0] }
 0x528   :  { %3783 = vmatpush.bf16.msra.mxu3 %v6527_v10  ;;  %3758 = vmatpush.bf16.msra.mxu1 %v5983_v16  ;;  %v7247_v39 = vld [vmem:[#allocation2 + $0x2dc] sm:$0xf]  ;;  %v5663_v54 = vor.u32 %v7183_v56, %v5660_v37  ;;  %v9534_v13 = vadd.f32 %v3531_v6, %v3519_v5  ;;  %v3969_v37 = vsub.f32 1.5, %v3968_v12 }
 0x529   :  { %v5916_v45 = vld [vmem:[#allocation2 + $0x2f8] sm:$0xf0] }
 0x52a   :  { %3771 = vmatpush.bf16.msra.mxu2 %v6239_v17  ;;  %v7311_v46 = vld [vmem:[#allocation2 + $0x4dc] sm:$0xf]  ;;  %3746 = vmatpush.bf16.msra.mxu0 %v5695_v32  ;;  %v5919_v57 = vor.u32 %v7247_v39, %v5916_v45  ;;  %v9536_v11 = vpop.eup %7558  ;;  %v3811_v29 = vsel %vm1053_vm4, %v9534_v13, 0.0  ;;  %v3863_v24 = vmul.f32 %v9534_v13, %v9534_v13  ;;  %v3970_v5 = vmul.f32 %v9526_v26, %v3969_v37 }
 0x52b   :  { %v6172_v49 = vld [vmem:[#allocation2 + $0x4f8] sm:$0xf0]  ;;  %v3976_v48 = vmul.f32 %v9536_v11, %v9530_v42  ;;  %v3812_v31 = vrot.slane %v3811_v29, 4  ;;  %vm3982_vm3 = vweird.f32 %v9536_v11 }
 0x52c   :  { %3784 = vmatpush.bf16.msra.mxu3 %v6495_v27  ;;  %v7375_v51 = vld [vmem:[#allocation2 + $0x6dc] sm:$0xf]  ;;  %3759 = vmatpush.bf16.msra.mxu1 %v5951_v43  ;;  %v6175_v59 = vor.u32 %v7311_v46, %v6172_v49  ;;  %v3883_v33 = vsel %vm1053_vm4, %v3863_v24, 0.0  ;;  %v3520_v49 = vpop.f32.mrf.mxu2  ;;  %vm3983_vm7 = vmor %vm3981_vm2, %vm3982_vm3 }
 0x52d   :  { %v6428_v52 = vld [vmem:[#allocation2 + $0x6f8] sm:$0xf0]  ;;  %v3977_v32 = vmul.f32 %v9536_v11, %v3976_v48  ;;  %v3813_v40 = vadd.f32 %v3812_v31, %v3811_v29 }
 0x52e   :  { %3772 = vmatpush.bf16.msra.mxu2 %v6207_v35  ;;  %v7175_v60 = vld [vmem:[#allocation2 + $0x9c] sm:$0xf]  ;;  %v6431_v63 = vor.u32 %v7375_v51, %v6428_v52  ;;  %3747 = vmatpush.bf16.msra.mxu0 %v5663_v54  ;;  %v3533_v55 = vpop.f32.mrf.mxu3 }
 0x52f   :  { %v5628_v61 = vld [vmem:[#allocation2 + $0xb8] sm:$0xf0]  ;;  %v3978_v50 = vmul.f32 0.5, %v3977_v32 }
 0x530   :  { %v7239_v62 = vld [vmem:[#allocation2 + $0x29c] sm:$0xf]  ;;  %3785 = vmatpush.bf16.msra.mxu3 %v6463_v41  ;;  %v5631_v21 = vor.u32 %v7175_v60, %v5628_v61  ;;  %3760 = vmatpush.bf16.msra.mxu1 %v5919_v57  ;;  %v3884_v41 = vrot.slane %v3883_v33, 4  ;;  %v3814_v57 = vrot.slane %v3813_v40, 2 }
 0x531   :  { %v5884_v0 = vld [vmem:[#allocation2 + $0x2b8] sm:$0xf0] }
 0x532   :  { %v7303_v2 = vld [vmem:[#allocation2 + $0x49c] sm:$0xf]  ;;  %3773 = vmatpush.bf16.msra.mxu2 %v6175_v59  ;;  %v5887_v14 = vor.u32 %v7239_v62, %v5884_v0  ;;  %3748 = vmatpush.bf16.msra.mxu0 %v5631_v21  ;;  %v3885_v59 = vadd.f32 %v3884_v41, %v3883_v33  ;;  %v3979_v62 = vsub.f32 1.5, %v3978_v50 }
 0x533   :  { %v6140_v4 = vld [vmem:[#allocation2 + $0x4b8] sm:$0xf0] }
 0x534   :  { %v7367_v7 = vld [vmem:[#allocation2 + $0x69c] sm:$0xf]  ;;  %v6143_v15 = vor.u32 %v7303_v2, %v6140_v4  ;;  %3786 = vmatpush.bf16.msra.mxu3 %v6431_v63  ;;  %3761 = vmatpush.bf16.msra.mxu1 %v5887_v14  ;;  %v3815_v63 = vadd.f32 %v3814_v57, %v3813_v40  ;;  %v3886_v0 = vrot.slane %v3885_v59, 2  ;;  %v3980_v6 = vmul.f32 %v9536_v11, %v3979_v62 }
 0x535   :  { %v6396_v10 = vld [vmem:[#allocation2 + $0x6b8] sm:$0xf0] }
 0x536   :  { %v7167_v53 = vld [vmem:[#allocation2 + $0x5c] sm:$0xf]  ;;  %v6399_v58 = vor.u32 %v7367_v7, %v6396_v10  ;;  %3774 = vmatpush.bf16.msra.mxu2 %v6143_v15  ;;  %v3984_v42 = vsel %vm3983_vm7, %v9536_v11, %v3980_v6  ;;  %v3816_v21 = vrot.slane %v3815_v63, 1 }
 0x537   :  { %v5596_v8 = vld [vmem:[#allocation2 + $0x78] sm:$0xf0]  ;;  %v4053_v10 = vrot.slane %v3984_v42, 7 }
 0x538   :  { %v7231_v16 = vld [vmem:[#allocation2 + $0x25c] sm:$0xf]  ;;  %v5599_v56 = vor.u32 %v7167_v53, %v5596_v8  ;;  %3787 = vmatpush.bf16.msra.mxu3 %v6399_v58  ;;  %v3887_v53 = vadd.f32 %v3886_v0, %v3885_v59  ;;  %v3974_v8 = vsel %vm3973_vm9, %v9526_v26, %v3970_v5  ;;  %v3817_v38 = vadd.f32 %v3816_v21, %v3815_v63 }
 0x539   :  { %v5852_v17 = vld [vmem:[#allocation2 + $0x278] sm:$0xf0]  ;;  %v9564_v3 = vsel %vm1119_vm8, %v3974_v8, %v4053_v10 }
 0x53a   :  { %v7295_v27 = vld [vmem:[#allocation2 + $0x45c] sm:$0xf]  ;;  %v5855_v9 = vor.u32 %v7231_v16, %v5852_v17  ;;  %3749 = vmatpush.bf16.msra.mxu0 %v5599_v56  ;;  %v3888_v11 = vrot.slane %v3887_v53, 1  ;;  %v9569_v12 = vmul.f32 0.25, %v3817_v38  ;;  %v3544_v15 = vpop.f32.mrf.mxu0 }
 0x53b   :  { %v6108_v28 = vld [vmem:[#allocation2 + $0x478] sm:$0xf0] }
 0x53c   :  { %v7359_v23 = vld [vmem:[#allocation2 + $0x65c] sm:$0xf]  ;;  %v6111_v39 = vor.u32 %v7295_v27, %v6108_v28  ;;  %3762 = vmatpush.bf16.msra.mxu1 %v5855_v9  ;;  %v3889_v14 = vadd.f32 %v3888_v11, %v3887_v53  ;;  %v3557_v16 = vpop.f32.mrf.mxu1 }
 0x53d   :  { %v6364_v30 = vld [vmem:[#allocation2 + $0x678] sm:$0xf0]  ;;  %v3558_v26 = vadd.f32 %v3557_v16, %v3544_v15 }
 0x53e   :  { %v7159_v43 = vld [vmem:[#allocation2 + $0x1c] sm:$0xf]  ;;  %v6367_v51 = vor.u32 %v7359_v23, %v6364_v30  ;;  %3775 = vmatpush.bf16.msra.mxu2 %v6111_v39  ;;  %v3927_v17 = vmul.f32 0.25, %v3889_v14 }
 0x53f   :  { %v5564_v35 = vld [vmem:[#allocation2 + $0x38] sm:$0xf0] }
 0x540   :  { %v7223_v45 = vld [vmem:[#allocation2 + $0x21c] sm:$0xf]  ;;  %v5567_v34 = vor.u32 %v7159_v43, %v5564_v35  ;;  %3788 = vmatpush.bf16.msra.mxu3 %v6367_v51 }
 0x541   :  { %v5820_v46 = vld [vmem:[#allocation2 + $0x238] sm:$0xf0] }
 0x542   :  { %v7287_v52 = vld [vmem:[#allocation2 + $0x41c] sm:$0xf]  ;;  %v5823_v2 = vor.u32 %v7223_v45, %v5820_v46  ;;  %3750 = vmatpush.bf16.msra.mxu0 %v5567_v34 }
 0x543   :  { %v6076_v54 = vld [vmem:[#allocation2 + $0x438] sm:$0xf0] }
 0x544   :  { %v7351_v60 = vld [vmem:[#allocation2 + $0x61c] sm:$0xf]  ;;  %v6079_v4 = vor.u32 %v7287_v52, %v6076_v54  ;;  %3763 = vmatpush.bf16.msra.mxu1 %v5823_v2  ;;  %v3570_v19 = vpop.f32.mrf.mxu2  ;;  %v3559_v28 = vpop.f32.mrf.mxu1 }
 0x545   :  { %v6332_v61 = vld [vmem:[#allocation2 + $0x638] sm:$0xf0]  ;;  %3751 = vmatmul.bf16.vlgmr.msra.gmra.mxu0 %v9467_v22  ;;  %v3935_v22 = vmul.f32 %v9569_v12, %v9569_v12  ;;  %v3571_v48 = vadd.f32 %v3570_v19, %v3558_v26 }
 0x546   :  { %v6335_v7 = vor.u32 %v7351_v60, %v6332_v61  ;;  %3776 = vmatpush.bf16.msra.mxu2 %v6079_v4  ;;  %v3583_v58 = vpop.f32.mrf.mxu3 }
 0x547   :  { %3764 = vmatmul.bf16.vlgmr.msra.gmra.mxu1 %v9471_v25  ;;  %v3943_v25 = vsub.f32 %v3927_v17, %v3935_v22  ;;  %v9573_v27 = vadd.f32 %v3583_v58, %v3571_v48 }
 0x548   :  { %3789 = vmatpush.bf16.msra.mxu3 %v6335_v7 }
 0x549   :  { %3777 = vmatmul.bf16.vlgmr.msra.gmra.mxu2 %v9459_v18  ;;  %v3546_v18 = vpop.f32.mrf.mxu0  ;;  %v3864_v29 = vmul.f32 %v9573_v27, %v9573_v27  ;;  %v3951_v24 = vmax.f32 %v3943_v25, 0.0 }
 0x54b   :  { %3790 = vmatmul.bf16.vlgmr.msra.gmra.mxu3 %v9463_v36  ;;  %v3818_v36 = vsel %vm1053_vm4, %v9573_v27, 0.0  ;;  %v3890_v30 = vsel %vm1053_vm4, %v3864_v29, 0.0  ;;  %v3959_v33 = vadd.f32 0.8, %v3951_v24 }
 0x54c   :  { %v3819_v23 = vrot.slane %v3818_v36, 4  ;;  %v3891_v32 = vrot.slane %v3890_v30, 4  ;;  %v3572_v56 = vpop.f32.mrf.mxu2 }
 0x54d   :  { %7560 = vrsqrt.f32 %v3959_v33  ;;  %vm3991_vm10 = vweird.f32 %v3959_v33 }
 0x54e   :  { %v3820_v31 = vadd.f32 %v3819_v23, %v3818_v36  ;;  %v3585_v9 = vpop.f32.mrf.mxu3  ;;  %v3892_v35 = vadd.f32 %v3891_v32, %v3890_v30 }
 0x550   :  { %v3821_v43 = vrot.slane %v3820_v31, 2  ;;  %v3893_v39 = vrot.slane %v3892_v35, 2 }
 0x552   :  { %v3822_v37 = vadd.f32 %v3821_v43, %v3820_v31  ;;  %v3894_v41 = vadd.f32 %v3893_v39, %v3892_v35 }
 0x553   :  { %v7561_v51 = vpop.eup %7560 }
 0x554   :  { %v3823_v40 = vrot.slane %v3822_v37, 1  ;;  %v3895_v46 = vrot.slane %v3894_v41, 1  ;;  %v3986_v57 = vmul.f32 %v7561_v51, %v3959_v33  ;;  %vm3992_vm12 = vweird.f32 %v7561_v51 }
 0x555   :  { %vm3993_vm0 = vmor %vm3991_vm10, %vm3992_vm12  ;;  %vm4063_vm10 = vcmask 1044484  }
 0x556   :  { %v3824_v45 = vadd.f32 %v3823_v40, %v3822_v37  ;;  %v3896_v50 = vadd.f32 %v3895_v46, %v3894_v41  ;;  %v3987_v34 = vmul.f32 %v7561_v51, %v3986_v57 }
 0x558   :  { %v9580_v49 = vmul.f32 0.25, %v3824_v45  ;;  %v3928_v52 = vmul.f32 0.25, %v3896_v50  ;;  %v3988_v2 = vmul.f32 0.5, %v3987_v34 }
 0x55a   :  { %v3936_v54 = vmul.f32 %v9580_v49, %v9580_v49  ;;  %v3596_v60 = vpop.f32.mrf.mxu0  ;;  %v3989_v21 = vsub.f32 1.5, %v3988_v2 }
 0x55c   :  { %v3944_v55 = vsub.f32 %v3928_v52, %v3936_v54  ;;  %v3609_v62 = vpop.f32.mrf.mxu1  ;;  %v3990_v22 = vmul.f32 %v7561_v51, %v3989_v21 }
 0x55d   :  { %v3610_v63 = vadd.f32 %v3609_v62, %v3596_v60 }
 0x55e   :  { %v3952_v59 = vmax.f32 %v3944_v55, 0.0  ;;  %v3994_v29 = vsel %vm3993_vm0, %v7561_v51, %v3990_v22 }
 0x55f   :  { %v4054_v30 = vrot.slane %v3994_v29, 6 }
 0x560   :  { %v3960_v61 = vadd.f32 0.8, %v3952_v59 }
 0x562   :  { %7562 = vrsqrt.f32 %v3960_v61  ;;  %v3598_v7 = vpop.f32.mrf.mxu0  ;;  %vm4001_vm14 = vweird.f32 %v3960_v61 }
 0x564   :  { %v3622_v0 = vpop.f32.mrf.mxu2  ;;  %v3611_v10 = vpop.f32.mrf.mxu1 }
 0x565   :  { %v3623_v4 = vadd.f32 %v3622_v0, %v3610_v63 }
 0x566   :  { %v3635_v5 = vpop.f32.mrf.mxu3 }
 0x567   :  { %v9584_v6 = vadd.f32 %v3635_v5, %v3623_v4 }
 0x568   :  { %v7563_v42 = vpop.eup %7562 }
 0x569   :  { %v3996_v53 = vmul.f32 %v7563_v42, %v3960_v61  ;;  %v3825_v8 = vsel %vm1053_vm4, %v9584_v6, 0.0  ;;  %v3865_v38 = vmul.f32 %v9584_v6, %v9584_v6  ;;  %vm4002_vm15 = vweird.f32 %v7563_v42 }
 0x56a   :  { %v3826_v11 = vrot.slane %v3825_v8, 4  ;;  %vm4003_vm1 = vmor %vm4001_vm14, %vm4002_vm15 }
 0x56b   :  { %v3997_v14 = vmul.f32 %v7563_v42, %v3996_v53  ;;  %v3897_v15 = vsel %vm1053_vm4, %v3865_v38, 0.0 }
 0x56c   :  { %v3827_v16 = vadd.f32 %v3826_v11, %v3825_v8  ;;  %v3898_v26 = vrot.slane %v3897_v15, 4  ;;  %v3624_v17 = vpop.f32.mrf.mxu2 }
 0x56d   :  { %v3998_v19 = vmul.f32 0.5, %v3997_v14 }
 0x56e   :  { %v3637_v48 = vpop.f32.mrf.mxu3  ;;  %v3828_v58 = vrot.slane %v3827_v16, 2  ;;  %v3899_v25 = vadd.f32 %v3898_v26, %v3897_v15 }
 0x56f   :  { %v3999_v18 = vsub.f32 1.5, %v3998_v19 }
 0x570   :  { %v3829_v28 = vadd.f32 %v3828_v58, %v3827_v16  ;;  %v3900_v36 = vrot.slane %v3899_v25, 2 }
 0x571   :  { %v4000_v24 = vmul.f32 %v7563_v42, %v3999_v18 }
 0x572   :  { %v3830_v32 = vrot.slane %v3829_v28, 1  ;;  %v3901_v56 = vadd.f32 %v3900_v36, %v3899_v25 }
 0x573   :  { %v4004_v23 = vsel %vm4003_vm1, %v7563_v42, %v4000_v24 }
 0x574   :  { %v4055_v31 = vrot.slane %v4004_v23, 5  ;;  %v3831_v43 = vadd.f32 %v3830_v32, %v3829_v28  ;;  %v3902_v35 = vrot.slane %v3901_v56, 1 }
 0x576   :  { %v4061_v9 = vsel %vm1775_vm11, %v4054_v30, %v4055_v31  ;;  %v9596_v37 = vmul.f32 0.25, %v3831_v43  ;;  %v3903_v39 = vadd.f32 %v3902_v35, %v3901_v56 }
 0x577   :  { %v9594_v33 = vsel %vm1777_vm13, %v9564_v3, %v4061_v9 }
 0x578   :  { %v3929_v46 = vmul.f32 0.25, %v3903_v39  ;;  %v3937_v50 = vmul.f32 %v9596_v37, %v9596_v37 }
 0x57a   :  { %v3648_v40 = vpop.f32.mrf.mxu0  ;;  %v3945_v55 = vsub.f32 %v3929_v46, %v3937_v50 }
 0x57c   :  { %v3661_v41 = vpop.f32.mrf.mxu1  ;;  %v3953_v62 = vmax.f32 %v3945_v55, 0.0 }
 0x57d   :  { %v3662_v45 = vadd.f32 %v3661_v41, %v3648_v40 }
 0x57e   :  { %v3961_v7 = vadd.f32 0.8, %v3953_v62 }
 0x580   :  { %7564 = vrsqrt.f32 %v3961_v7  ;;  %vm4011_vm2 = vweird.f32 %v3961_v7 }
 0x582   :  { %v3650_v3 = vpop.f32.mrf.mxu0 }
 0x584   :  { %v3674_v51 = vpop.f32.mrf.mxu2  ;;  %v3663_v59 = vpop.f32.mrf.mxu1 }
 0x585   :  { %v3675_v52 = vadd.f32 %v3674_v51, %v3662_v45 }
 0x586   :  { %v3687_v54 = vpop.f32.mrf.mxu3  ;;  %v7565_v26 = vpop.eup %7564 }
 0x587   :  { %v9600_v57 = vadd.f32 %v3687_v54, %v3675_v52  ;;  %v4006_v48 = vmul.f32 %v7565_v26, %v3961_v7  ;;  %vm4012_vm3 = vweird.f32 %v7565_v26 }
 0x588   :  { %vm4013_vm7 = vmor %vm4011_vm2, %vm4012_vm3  ;;  %vm4065_vm3 = vcmask 1046534  }
 0x589   :  { %v3832_v60 = vsel %vm1053_vm4, %v9600_v57, 0.0  ;;  %v3866_v61 = vmul.f32 %v9600_v57, %v9600_v57  ;;  %v4007_v36 = vmul.f32 %v7565_v26, %v4006_v48 }
 0x58a   :  { %v3833_v34 = vrot.slane %v3832_v60, 4 }
 0x58b   :  { %v3904_v63 = vsel %vm1053_vm4, %v3866_v61, 0.0  ;;  %v4008_v23 = vmul.f32 0.5, %v4007_v36 }
 0x58c   :  { %v3834_v0 = vadd.f32 %v3833_v34, %v3832_v60  ;;  %v3905_v2 = vrot.slane %v3904_v63, 4  ;;  %v3676_v4 = vpop.f32.mrf.mxu2 }
 0x58d   :  { %v4009_v35 = vsub.f32 1.5, %v4008_v23 }
 0x58e   :  { %v3689_v5 = vpop.f32.mrf.mxu3  ;;  %v3835_v42 = vrot.slane %v3834_v0, 2  ;;  %v3906_v10 = vadd.f32 %v3905_v2, %v3904_v63 }
 0x58f   :  { %v4010_v55 = vmul.f32 %v7565_v26, %v4009_v35 }
 0x590   :  { %v3836_v21 = vadd.f32 %v3835_v42, %v3834_v0  ;;  %v3907_v53 = vrot.slane %v3906_v10, 2 }
 0x591   :  { %v4014_v0 = vsel %vm4013_vm7, %v7565_v26, %v4010_v55 }
 0x592   :  { %v3837_v8 = vrot.slane %v3836_v21, 1  ;;  %v3908_v38 = vadd.f32 %v3907_v53, %v3906_v10  ;;  %v4056_v5 = vrot.slane %v4014_v0, 4 }
 0x594   :  { %v3838_v11 = vadd.f32 %v3837_v8, %v3836_v21  ;;  %v3909_v14 = vrot.slane %v3908_v38, 1 }
 0x596   :  { %v9607_v15 = vmul.f32 0.25, %v3838_v11  ;;  %v3910_v16 = vadd.f32 %v3909_v14, %v3908_v38 }
 0x598   :  { %v3930_v17 = vmul.f32 0.25, %v3910_v16  ;;  %v3938_v22 = vmul.f32 %v9607_v15, %v9607_v15 }
 0x59a   :  { %v3946_v19 = vsub.f32 %v3930_v17, %v3938_v22  ;;  %v3700_v25 = vpop.f32.mrf.mxu0 }
 0x59c   :  { %v3954_v58 = vmax.f32 %v3946_v19, 0.0  ;;  %v3713_v28 = vpop.f32.mrf.mxu1 }
 0x59d   :  { %v3714_v29 = vadd.f32 %v3713_v28, %v3700_v25 }
 0x59e   :  { %v3962_v18 = vadd.f32 0.8, %v3954_v58 }
 0x5a0   :  { %7566 = vrsqrt.f32 %v3962_v18  ;;  %vm4021_vm5 = vweird.f32 %v3962_v18 }
 0x5a2   :  { %v3702_v56 = vpop.f32.mrf.mxu0 }
 0x5a4   :  { %v3726_v24 = vpop.f32.mrf.mxu2  ;;  %v3715_v43 = vpop.f32.mrf.mxu1 }
 0x5a5   :  { %v3727_v30 = vadd.f32 %v3726_v24, %v3714_v29 }
 0x5a6   :  { %v3739_v31 = vpop.f32.mrf.mxu3  ;;  %v7567_v9 = vpop.eup %7566 }
 0x5a7   :  { %v9611_v32 = vadd.f32 %v3739_v31, %v3727_v30  ;;  %v4016_v39 = vmul.f32 %v7567_v9, %v3962_v18  ;;  %vm4022_vm6 = vweird.f32 %v7567_v9 }
 0x5a8   :  { %vm4023_vm9 = vmor %vm4021_vm5, %vm4022_vm6  ;;  %vm4067_vm5 = vcmask 1045508  }
 0x5a9   :  { %v3839_v40 = vsel %vm1053_vm4, %v9611_v32, 0.0  ;;  %v3867_v41 = vmul.f32 %v9611_v32, %v9611_v32  ;;  %v4017_v46 = vmul.f32 %v7567_v9, %v4016_v39 }
 0x5aa   :  { %v3840_v45 = vrot.slane %v3839_v40, 4 }
 0x5ab   :  { %v3911_v50 = vsel %vm1053_vm4, %v3867_v41, 0.0  ;;  %v4018_v3 = vmul.f32 0.5, %v4017_v46 }
 0x5ac   :  { %v3841_v51 = vadd.f32 %v3840_v45, %v3839_v40  ;;  %v3912_v52 = vrot.slane %v3911_v50, 4  ;;  %v3728_v54 = vpop.f32.mrf.mxu2 }
 0x5ad   :  { %v4019_v62 = vsub.f32 1.5, %v4018_v3 }
 0x5ae   :  { %v3741_v59 = vpop.f32.mrf.mxu3  ;;  %v3842_v60 = vrot.slane %v3841_v51, 2  ;;  %v3913_v61 = vadd.f32 %v3912_v52, %v3911_v50 }
 0x5af   :  { %v4020_v2 = vmul.f32 %v7567_v9, %v4019_v62 }
 0x5b0   :  { %v3843_v34 = vadd.f32 %v3842_v60, %v3841_v51  ;;  %v3914_v63 = vrot.slane %v3913_v61, 2 }
 0x5b1   :  { %v4024_v4 = vsel %vm4023_vm9, %v7567_v9, %v4020_v2 }
 0x5b2   :  { %v4057_v7 = vrot.slane %v4024_v4, 3  ;;  %v3844_v42 = vrot.slane %v3843_v34, 1  ;;  %v3915_v10 = vadd.f32 %v3914_v63, %v3913_v61 }
 0x5b4   :  { %v9619_v21 = vsel %vm4063_vm10, %v4056_v5, %v4057_v7  ;;  %v3845_v53 = vadd.f32 %v3844_v42, %v3843_v34  ;;  %v3916_v8 = vrot.slane %v3915_v10, 1 }
 0x5b6   :  { %v9621_v11 = vmul.f32 0.25, %v3845_v53  ;;  %v3917_v14 = vadd.f32 %v3916_v8, %v3915_v10 }
 0x5b8   :  { %v3931_v22 = vmul.f32 0.25, %v3917_v14  ;;  %v3939_v26 = vmul.f32 %v9621_v11, %v9621_v11 }
 0x5ba   :  { %v3947_v18 = vsub.f32 %v3931_v22, %v3939_v26 }
 0x5bc   :  { %v3955_v23 = vmax.f32 %v3947_v18, 0.0 }
 0x5be   :  { %v3963_v39 = vadd.f32 0.8, %v3955_v23 }
 0x5c0   :  { %7568 = vrsqrt.f32 %v3963_v39  ;;  %vm4031_vm12 = vweird.f32 %v3963_v39 }
 0x5c2   :  { %v3752_v38 = vpop.f32.mrf.mxu0 }
 0x5c4   :  { %v3765_v16 = vpop.f32.mrf.mxu1 }
 0x5c5   :  { %v3766_v17 = vadd.f32 %v3765_v16, %v3752_v38 }
 0x5c6   :  { %v7569_v59 = vpop.eup %7568 }
 0x5c7   :  { %v4026_v34 = vmul.f32 %v7569_v59, %v3963_v39  ;;  %vm4032_vm14 = vweird.f32 %v7569_v59 }
 0x5c8   :  { %vm4033_vm0 = vmor %vm4031_vm12, %vm4032_vm14 }
 0x5c9   :  { %v4027_v2 = vmul.f32 %v7569_v59, %v4026_v34 }
 0x5ca   :  { %v3754_v25 = vpop.f32.mrf.mxu0 }
 0x5cb   :  { %v4028_v4 = vmul.f32 0.5, %v4027_v2 }
 0x5cc   :  { %v3778_v19 = vpop.f32.mrf.mxu2  ;;  %v3767_v28 = vpop.f32.mrf.mxu1 }
 0x5cd   :  { %v3779_v48 = vadd.f32 %v3778_v19, %v3766_v17  ;;  %v4029_v7 = vsub.f32 1.5, %v4028_v4  ;;  %v3795_v19 = vld [vmem:[%s9756_s12] sm:$0xff] }
 0x5ce   :  { %v3791_v58 = vpop.f32.mrf.mxu3 }
 0x5cf   :  { %v9625_v36 = vadd.f32 %v3791_v58, %v3779_v48  ;;  %v4030_v53 = vmul.f32 %v7569_v59, %v4029_v7 }
 0x5d1   :  { %v3846_v29 = vsel %vm1053_vm4, %v9625_v36, 0.0  ;;  %v3868_v24 = vmul.f32 %v9625_v36, %v9625_v36  ;;  %v4034_v14 = vsel %vm4033_vm0, %v7569_v59, %v4030_v53 }
 0x5d2   :  { %v3847_v30 = vrot.slane %v3846_v29, 4  ;;  %v4058_v22 = vrot.slane %v4034_v14, 2 }
 0x5d3   :  { %v3918_v31 = vsel %vm1053_vm4, %v3868_v24, 0.0 }
 0x5d4   :  { %v3848_v56 = vadd.f32 %v3847_v30, %v3846_v29  ;;  %v3919_v9 = vrot.slane %v3918_v31, 4  ;;  %v3780_v43 = vpop.f32.mrf.mxu2 }
 0x5d6   :  { %v3793_v35 = vpop.f32.mrf.mxu3  ;;  %v3849_v40 = vrot.slane %v3848_v56, 2  ;;  %v3920_v41 = vadd.f32 %v3919_v9, %v3918_v31 }
 0x5d8   :  { %v3850_v45 = vadd.f32 %v3849_v40, %v3848_v56  ;;  %v3921_v46 = vrot.slane %v3920_v41, 2 }
 0x5da   :  { %v3851_v50 = vrot.slane %v3850_v45, 1  ;;  %v3922_v51 = vadd.f32 %v3921_v46, %v3920_v41 }
 0x5dc   :  { %v3852_v52 = vadd.f32 %v3851_v50, %v3850_v45  ;;  %v3923_v54 = vrot.slane %v3922_v51, 1 }
 0x5de   :  { %v3860_v55 = vmul.f32 0.25, %v3852_v52  ;;  %v3924_v3 = vadd.f32 %v3923_v54, %v3922_v51 }
 0x5e0   :  { %v3932_v60 = vmul.f32 0.25, %v3924_v3  ;;  %v3940_v61 = vmul.f32 %v3860_v55, %v3860_v55 }
 0x5e2   :  { %v3948_v62 = vsub.f32 %v3932_v60, %v3940_v61 }
 0x5e4   :  { %v3956_v63 = vmax.f32 %v3948_v62, 0.0 }
 0x5e6   :  { %v3964_v0 = vadd.f32 0.8, %v3956_v63 }
 0x5e8   :  { %7570 = vrsqrt.f32 %v3964_v0  ;;  %vm4041_vm1 = vweird.f32 %v3964_v0 }
 0x5ee   :  { %v7571_v5 = vpop.eup %7570 }
 0x5ef   :  { %v4036_v42 = vmul.f32 %v7571_v5, %v3964_v0  ;;  %vm4042_vm15 = vweird.f32 %v7571_v5 }
 0x5f0   :  { %vm4043_vm2 = vmor %vm4041_vm1, %vm4042_vm15 }
 0x5f1   :  { %v4037_v10 = vmul.f32 %v7571_v5, %v4036_v42 }
 0x5f3   :  { %v4038_v8 = vmul.f32 0.5, %v4037_v10 }
 0x5f5   :  { %v4039_v38 = vsub.f32 1.5, %v4038_v8 }
 0x5f7   :  { %v4040_v16 = vmul.f32 %v7571_v5, %v4039_v38 }
 0x5f9   :  { %v4044_v17 = vsel %vm4043_vm2, %v7571_v5, %v4040_v16 }
 0x5fa   :  { %v4059_v26 = vrot.slane %v4044_v17, 1 }
 0x5fc   :  { %v4066_v48 = vsel %vm4065_vm3, %v4058_v22, %v4059_v26 }
 0x5fd   :  { %v4068_v58 = vsel %vm4067_vm5, %v9619_v21, %v4066_v48 }
 0x5fe   :  { %v4069_v25 = vsel %vm1053_vm4, %v9594_v33, %v4068_v58 }
 0x5ff   :  { %v4071_v18 = vmul.f32 %v4069_v25, %v3795_v19 }
 0x601   :  { %v4073_v28 = vperm.slane %v4071_v18, 0  ;;  %v4074_v29 = vperm.slane %v4071_v18, 1  ;;  %v4075_v24 = vperm.slane %v4071_v18, 2  ;;  %v4076_v23 = vperm.slane %v4071_v18, 3 }
 0x602   :  { %v4077_v30 = vperm.slane %v4071_v18, 4  ;;  %v4078_v31 = vperm.slane %v4071_v18, 5  ;;  %v4079_v56 = vperm.slane %v4071_v18, 6  ;;  %v4080_v9 = vperm.slane %v4071_v18, 7 }
 0x603   :  { %v4089_v43 = vmul.f32 %v4073_v28, %v9504_v20  ;;  %v4090_v35 = vmul.f32 %v4074_v29, %v9518_v1  ;;  %v4091_v39 = vmul.f32 %v4075_v24, %v9569_v12  ;;  %v4092_v21 = vmul.f32 %v4076_v23, %v9580_v49 }
 0x604   :  { %v4093_v40 = vmul.f32 %v4077_v30, %v9596_v37  ;;  %v4094_v33 = vmul.f32 %v4078_v31, %v9607_v15  ;;  %v4095_v41 = vmul.f32 %v4079_v56, %v9621_v11  ;;  %v4096_v45 = vmul.f32 %v4080_v9, %v3860_v55  ;;  %v3796_v11 = vld [vmem:[%s9757_s13] sm:$0xff] }
 0x605   :  { %v4105_v46 = vrot.slane %v4090_v35, 7  ;;  %v4106_v50 = vrot.slane %v4091_v39, 6  ;;  %v4107_v51 = vrot.slane %v4092_v21, 5  ;;  %v4121_v52 = vmul.f32 %v4073_v28, %v9493_v44 }
 0x606   :  { %v4108_v54 = vrot.slane %v4093_v40, 4  ;;  %v4109_v20 = vrot.slane %v4094_v33, 3  ;;  %v4110_v3 = vrot.slane %v4095_v41, 2  ;;  %v4111_v1 = vrot.slane %v4096_v45, 1 }
 0x607   :  { %v4112_v12 = vsel %vm1119_vm8, %v4089_v43, %v4105_v46  ;;  %v4113_v49 = vsel %vm1775_vm11, %v4106_v50, %v4107_v51  ;;  %v4122_v37 = vmul.f32 %v4074_v29, %v9508_v47  ;;  %v4123_v15 = vmul.f32 %v4075_v24, %v9534_v13 }
 0x608   :  { %v4114_v55 = vsel %vm1777_vm13, %v4112_v12, %v4113_v49  ;;  %v4115_v44 = vsel %vm4063_vm10, %v4108_v54, %v4109_v20  ;;  %v4116_v59 = vsel %vm4065_vm3, %v4110_v3, %v4111_v1  ;;  %v4124_v60 = vmul.f32 %v4076_v23, %v9573_v27 }
 0x609   :  { %v4117_v61 = vsel %vm4067_vm5, %v4115_v44, %v4116_v59  ;;  %v4125_v62 = vmul.f32 %v4077_v30, %v9584_v6  ;;  %v4126_v47 = vmul.f32 %v4078_v31, %v9600_v57  ;;  %v4127_v63 = vmul.f32 %v4079_v56, %v9611_v32 }
 0x60a   :  { %v4118_v13 = vsel %vm1053_vm4, %v4114_v55, %v4117_v61  ;;  %v4128_v0 = vmul.f32 %v4080_v9, %v9625_v36 }
 0x60b   :  { %v4120_v34 = vsub.f32 %v3796_v11, %v4118_v13 }
 0x60d   :  { %v4130_v2 = vperm.slane %v4120_v34, 0  ;;  %v4131_v4 = vperm.slane %v4120_v34, 1  ;;  %v4132_v5 = vperm.slane %v4120_v34, 2  ;;  %v4133_v7 = vperm.slane %v4120_v34, 3 }
 0x60e   :  { %v4134_v42 = vperm.slane %v4120_v34, 4  ;;  %v4135_v10 = vperm.slane %v4120_v34, 5  ;;  %v4136_v27 = vperm.slane %v4120_v34, 6  ;;  %v4137_v53 = vperm.slane %v4120_v34, 7 }
 0x60f   :  { %v4146_v8 = vadd.f32 %v4130_v2, %v4121_v52  ;;  %v4147_v38 = vadd.f32 %v4131_v4, %v4122_v37  ;;  %v4148_v6 = vadd.f32 %v4132_v5, %v4123_v15  ;;  %v4149_v14 = vadd.f32 %v4133_v7, %v4124_v60 }
 0x610   :  { %v4150_v57 = vadd.f32 %v4134_v42, %v4125_v62  ;;  %v4151_v16 = vadd.f32 %v4135_v10, %v4126_v47  ;;  %v4152_v17 = vadd.f32 %v4136_v27, %v4127_v63  ;;  %v4153_v22 = vadd.f32 %v4137_v53, %v4128_v0 }
 0x611   :  { %vm4154_vm8 = vcmp.gt.f32.partialorder %v4146_v8, 0.0  ;;  %vm4155_vm11 = vcmp.gt.f32.partialorder %v4147_v38, 0.0  ;;  %vm4156_vm13 = vcmp.gt.f32.partialorder %v4148_v6, 0.0  ;;  %vm4157_vm6 = vcmp.gt.f32.partialorder %v4149_v14, 0.0 }
 0x612   :  { %vm4158_vm7 = vcmp.gt.f32.partialorder %v4150_v57, 0.0  ;;  %vm4159_vm9 = vcmp.gt.f32.partialorder %v4151_v16, 0.0  ;;  %vm4160_vm10 = vcmp.gt.f32.partialorder %v4152_v17, 0.0  ;;  %vm4161_vm12 = vcmp.gt.f32.partialorder %v4153_v22, 0.0 }
 0x613   :  { %v4162_v32 = vmul.f32 0.2, %v4146_v8  ;;  %v4163_v36 = vmul.f32 0.2, %v4147_v38  ;;  %v4164_v26 = vmul.f32 0.2, %v4148_v6 }
 0x614   :  { %v4165_v19 = vmul.f32 0.2, %v4149_v14  ;;  %v4166_v48 = vmul.f32 0.2, %v4150_v57  ;;  %v4167_v58 = vmul.f32 0.2, %v4151_v16 }
 0x615   :  { %v4168_v25 = vmul.f32 0.2, %v4152_v17  ;;  %v4169_v18 = vmul.f32 0.2, %v4153_v22  ;;  %v9666_v28 = vsel %vm4154_vm8, %v4146_v8, %v4162_v32  ;;  %v9669_v29 = vsel %vm4155_vm11, %v4147_v38, %v4163_v36 }
 0x616   :  { %v9672_v24 = vsel %vm4156_vm13, %v4148_v6, %v4164_v26  ;;  %v9675_v23 = vsel %vm4157_vm6, %v4149_v14, %v4165_v19  ;;  %v9678_v30 = vsel %vm4158_vm7, %v4150_v57, %v4166_v48  ;;  %v9681_v31 = vsel %vm4159_vm9, %v4151_v16, %v4167_v58 }
 0x617   :  { %v9684_v56 = vsel %vm4160_vm10, %v4152_v17, %v4168_v25  ;;  %v9687_v9 = vsel %vm4161_vm12, %v4153_v22, %v4169_v18 }
 0x618   :  { %7578 = dma.done.wait [#allocation4 + $0x1], 16384 }
 0x619   :  { %7579 = vsyncadd [#allocation4 + $0x1], 4294950912  ;;  %v6618_v43 = vld [vmem:[#allocation3 + $0x70] sm:$0xf]  ;;  %v7427_v35 = vld [vmem:[#allocation3 + $0x74] sm:$0xf0] }
 0x61a   :  { %v6682_v39 = vld [vmem:[#allocation3 + $0xf0] sm:$0xf]  ;;  %v6619_v21 = vor.u32 %v7427_v35, %v6618_v43  ;;  %v7443_v40 = vld [vmem:[#allocation3 + $0xf4] sm:$0xf0]  ;;  %v6610_v52 = vld [vmem:[#allocation3 + $0x60] sm:$0xf] }
 0x61b   :  { %v6746_v33 = vld [vmem:[#allocation3 + $0x170] sm:$0xf]  ;;  %v7459_v41 = vld [vmem:[#allocation3 + $0x174] sm:$0xf0]  ;;  %v6683_v45 = vor.u32 %v7443_v40, %v6682_v39  ;;  %v7425_v20 = vld [vmem:[#allocation3 + $0x64] sm:$0xf0] }
 0x61c   :  { %v6747_v46 = vor.u32 %v7459_v41, %v6746_v33  ;;  %v6810_v50 = vld [vmem:[#allocation3 + $0x1f0] sm:$0xf]  ;;  %v7475_v51 = vld [vmem:[#allocation3 + $0x1f4] sm:$0xf0]  ;;  %4964 = vmatpush.bf16.msrb.mxu0 %v6619_v21  ;;  %v6674_v3 = vld [vmem:[#allocation3 + $0xe0] sm:$0xf]  ;;  %v6611_v12 = vor.u32 %v7425_v20, %v6610_v52 }
 0x61d   :  { %v6811_v54 = vor.u32 %v7475_v51, %v6810_v50  ;;  %v7441_v1 = vld [vmem:[#allocation3 + $0xe4] sm:$0xf0]  ;;  %4977 = vmatpush.bf16.msrb.mxu1 %v6683_v45  ;;  %v6738_v37 = vld [vmem:[#allocation3 + $0x160] sm:$0xf]  ;;  %v6602_v59 = vld [vmem:[#allocation3 + $0x50] sm:$0xf] }
 0x61e   :  { %4990 = vmatpush.bf16.msrb.mxu2 %v6747_v46  ;;  %v6675_v49 = vor.u32 %v7441_v1, %v6674_v3  ;;  %v7457_v15 = vld [vmem:[#allocation3 + $0x164] sm:$0xf0]  ;;  %v6802_v11 = vld [vmem:[#allocation3 + $0x1e0] sm:$0xf]  ;;  %v7423_v60 = vld [vmem:[#allocation3 + $0x54] sm:$0xf0] }
 0x61f   :  { %5003 = vmatpush.bf16.msrb.mxu3 %v6811_v54  ;;  %v6739_v55 = vor.u32 %v7457_v15, %v6738_v37  ;;  %v7473_v44 = vld [vmem:[#allocation3 + $0x1e4] sm:$0xf0]  ;;  %v6666_v62 = vld [vmem:[#allocation3 + $0xd0] sm:$0xf]  ;;  %v7439_v47 = vld [vmem:[#allocation3 + $0xd4] sm:$0xf0]  ;;  %v6603_v34 = vor.u32 %v7423_v60, %v6602_v59 }
 0x620   :  { %v6803_v61 = vor.u32 %v7473_v44, %v6802_v11  ;;  %v6730_v13 = vld [vmem:[#allocation3 + $0x150] sm:$0xf]  ;;  %4965 = vmatpush.bf16.msrb.mxu0 %v6611_v12  ;;  %v7455_v63 = vld [vmem:[#allocation3 + $0x154] sm:$0xf0]  ;;  %v6667_v4 = vor.u32 %v7439_v47, %v6666_v62  ;;  %v6594_v7 = vld [vmem:[#allocation3 + $0x40] sm:$0xf] }
 0x621   :  { %v6794_v0 = vld [vmem:[#allocation3 + $0x1d0] sm:$0xf]  ;;  %v7471_v2 = vld [vmem:[#allocation3 + $0x1d4] sm:$0xf0]  ;;  %4978 = vmatpush.bf16.msrb.mxu1 %v6675_v49  ;;  %v6731_v5 = vor.u32 %v7455_v63, %v6730_v13  ;;  %v7421_v42 = vld [vmem:[#allocation3 + $0x44] sm:$0xf0] }
 0x622   :  { %4991 = vmatpush.bf16.msrb.mxu2 %v6739_v55  ;;  %v6658_v10 = vld [vmem:[#allocation3 + $0xc0] sm:$0xf]  ;;  %v6795_v27 = vor.u32 %v7471_v2, %v6794_v0  ;;  %v7437_v53 = vld [vmem:[#allocation3 + $0xc4] sm:$0xf0]  ;;  %v6595_v57 = vor.u32 %v7421_v42, %v6594_v7  ;;  %v6586_v22 = vld [vmem:[#allocation3 + $0x30] sm:$0xf] }
 0x623   :  { %5004 = vmatpush.bf16.msrb.mxu3 %v6803_v61  ;;  %v6722_v8 = vld [vmem:[#allocation3 + $0x140] sm:$0xf]  ;;  %v7453_v38 = vld [vmem:[#allocation3 + $0x144] sm:$0xf0]  ;;  %v6659_v16 = vor.u32 %v7437_v53, %v6658_v10  ;;  %v7419_v32 = vld [vmem:[#allocation3 + $0x34] sm:$0xf0] }
 0x624   :  { %v6786_v6 = vld [vmem:[#allocation3 + $0x1c0] sm:$0xf]  ;;  %v7469_v14 = vld [vmem:[#allocation3 + $0x1c4] sm:$0xf0]  ;;  %4966 = vmatpush.bf16.msrb.mxu0 %v6603_v34  ;;  %v6723_v17 = vor.u32 %v7453_v38, %v6722_v8  ;;  %v6650_v36 = vld [vmem:[#allocation3 + $0xb0] sm:$0xf]  ;;  %v6587_v43 = vor.u32 %v7419_v32, %v6586_v22 }
 0x625   :  { %4979 = vmatpush.bf16.msrb.mxu1 %v6667_v4  ;;  %v6787_v26 = vor.u32 %v7469_v14, %v6786_v6  ;;  %v7435_v19 = vld [vmem:[#allocation3 + $0xb4] sm:$0xf0]  ;;  %v6714_v48 = vld [vmem:[#allocation3 + $0x130] sm:$0xf]  ;;  %v6578_v21 = vld [vmem:[#allocation3 + $0x20] sm:$0xf] }
 0x626   :  { %4992 = vmatpush.bf16.msrb.mxu2 %v6731_v5  ;;  %v7451_v58 = vld [vmem:[#allocation3 + $0x134] sm:$0xf0]  ;;  %v6778_v25 = vld [vmem:[#allocation3 + $0x1b0] sm:$0xf]  ;;  %v6651_v35 = vor.u32 %v7435_v19, %v6650_v36  ;;  %v7417_v40 = vld [vmem:[#allocation3 + $0x24] sm:$0xf0] }
 0x627   :  { %5005 = vmatpush.bf16.msrb.mxu3 %v6795_v27  ;;  %v7467_v18 = vld [vmem:[#allocation3 + $0x1b4] sm:$0xf0]  ;;  %v6715_v39 = vor.u32 %v7451_v58, %v6714_v48  ;;  %v6642_v33 = vld [vmem:[#allocation3 + $0xa0] sm:$0xf]  ;;  %v7433_v45 = vld [vmem:[#allocation3 + $0xa4] sm:$0xf0]  ;;  %v6579_v54 = vor.u32 %v7417_v40, %v6578_v21 }
 0x628   :  { %4967 = vmatpush.bf16.msrb.mxu0 %v6595_v57  ;;  %v6779_v41 = vor.u32 %v7467_v18, %v6778_v25  ;;  %v6706_v46 = vld [vmem:[#allocation3 + $0x120] sm:$0xf]  ;;  %v7449_v50 = vld [vmem:[#allocation3 + $0x124] sm:$0xf0]  ;;  %v6643_v20 = vor.u32 %v7433_v45, %v6642_v33  ;;  %v6570_v1 = vld [vmem:[#allocation3 + $0x10] sm:$0xf]  ;;  %v9695_v33 = vpack.c.bf16 %v9666_v28, %v9666_v28 }
 0x629   :  { %4980 = vmatpush.bf16.msrb.mxu1 %v6659_v16  ;;  %v6770_v51 = vld [vmem:[#allocation3 + $0x1a0] sm:$0xf]  ;;  %v7465_v52 = vld [vmem:[#allocation3 + $0x1a4] sm:$0xf0]  ;;  %v6707_v3 = vor.u32 %v7449_v50, %v6706_v46  ;;  %v7415_v12 = vld [vmem:[#allocation3 + $0x14] sm:$0xf0]  ;;  %v9703_v46 = vpack.c.bf16 %v9669_v29, %v9669_v29 }
 0x62a   :  { %4993 = vmatpush.bf16.msrb.mxu2 %v6723_v17  ;;  %v6634_v49 = vld [vmem:[#allocation3 + $0x90] sm:$0xf]  ;;  %v6771_v37 = vor.u32 %v7465_v52, %v6770_v51  ;;  %v7431_v15 = vld [vmem:[#allocation3 + $0x94] sm:$0xf0]  ;;  %v6571_v60 = vor.u32 %v7415_v12, %v6570_v1  ;;  %v6562_v61 = vld [vmem:[#allocation3] sm:$0xf] }
 0x62b   :  { %5006 = vmatpush.bf16.msrb.mxu3 %v6787_v26  ;;  %v6698_v11 = vld [vmem:[#allocation3 + $0x110] sm:$0xf]  ;;  %v7447_v55 = vld [vmem:[#allocation3 + $0x114] sm:$0xf0]  ;;  %v7413_v62 = vld [vmem:[#allocation3 + $0x4] sm:$0xf0]  ;;  %v6635_v47 = vor.u32 %v7431_v15, %v6634_v49 }
 0x62c   :  { %4968 = vmatpush.bf16.msrb.mxu0 %v6587_v43  ;;  %v6762_v44 = vld [vmem:[#allocation3 + $0x190] sm:$0xf]  ;;  %v7463_v59 = vld [vmem:[#allocation3 + $0x194] sm:$0xf0]  ;;  %v6699_v13 = vor.u32 %v7447_v55, %v6698_v11  ;;  %v6626_v34 = vld [vmem:[#allocation3 + $0x80] sm:$0xf]  ;;  %v6563_v53 = vor.u32 %v7413_v62, %v6562_v61 }
 0x62d   :  { %4981 = vmatpush.bf16.msrb.mxu1 %v6651_v35  ;;  %v7429_v63 = vld [vmem:[#allocation3 + $0x84] sm:$0xf0]  ;;  %v6690_v0 = vld [vmem:[#allocation3 + $0x100] sm:$0xf]  ;;  %v6763_v2 = vor.u32 %v7463_v59, %v6762_v44  ;;  %v6874_v42 = vld [vmem:[#allocation3 + $0x270] sm:$0xf] }
 0x62e   :  { %4994 = vmatpush.bf16.msrb.mxu2 %v6715_v39  ;;  %v7445_v4 = vld [vmem:[#allocation3 + $0x104] sm:$0xf0]  ;;  %v6754_v5 = vld [vmem:[#allocation3 + $0x180] sm:$0xf]  ;;  %v7491_v10 = vld [vmem:[#allocation3 + $0x274] sm:$0xf0]  ;;  %v6627_v14 = vor.u32 %v7429_v63, %v6626_v34  ;;  %v9691_v39 = vpack.c.bf16 %v9672_v24, %v9672_v24 }
 0x62f   :  { %5007 = vmatpush.bf16.msrb.mxu3 %v6779_v41  ;;  %v7461_v7 = vld [vmem:[#allocation3 + $0x184] sm:$0xf0]  ;;  %v6938_v27 = vld [vmem:[#allocation3 + $0x2f0] sm:$0xf]  ;;  %v7507_v8 = vld [vmem:[#allocation3 + $0x2f4] sm:$0xf0]  ;;  %v6691_v57 = vor.u32 %v7445_v4, %v6690_v0  ;;  %v6875_v32 = vor.u32 %v7491_v10, %v6874_v42  ;;  %v9699_v41 = vpack.c.bf16 %v9675_v23, %v9675_v23 }
 0x630   :  { %4969 = vmatpush.bf16.msrb.mxu0 %v6579_v54  ;;  %v7002_v38 = vld [vmem:[#allocation3 + $0x370] sm:$0xf]  ;;  %v7523_v6 = vld [vmem:[#allocation3 + $0x374] sm:$0xf0]  ;;  %v6755_v22 = vor.u32 %v7461_v7, %v6754_v5  ;;  %v6939_v36 = vor.u32 %v7507_v8, %v6938_v27  ;;  %v6866_v19 = vld [vmem:[#allocation3 + $0x260] sm:$0xf] }
 0x631   :  { %4982 = vmatpush.bf16.msrb.mxu1 %v6643_v20  ;;  %v7066_v16 = vld [vmem:[#allocation3 + $0x3f0] sm:$0xf]  ;;  %v7539_v17 = vld [vmem:[#allocation3 + $0x3f4] sm:$0xf0]  ;;  %v7003_v26 = vor.u32 %v7523_v6, %v7002_v38  ;;  %v7489_v48 = vld [vmem:[#allocation3 + $0x264] sm:$0xf0] }
 0x632   :  { %4995 = vmatpush.bf16.msrb.mxu2 %v6707_v3  ;;  %v6930_v58 = vld [vmem:[#allocation3 + $0x2e0] sm:$0xf]  ;;  %v7067_v25 = vor.u32 %v7539_v17, %v7066_v16  ;;  %v7505_v18 = vld [vmem:[#allocation3 + $0x2e4] sm:$0xf0]  ;;  %v6867_v45 = vor.u32 %v7489_v48, %v6866_v19  ;;  %v6858_v51 = vld [vmem:[#allocation3 + $0x250] sm:$0xf] }
 0x633   :  { %5008 = vmatpush.bf16.msrb.mxu3 %v6771_v37  ;;  %v6994_v43 = vld [vmem:[#allocation3 + $0x360] sm:$0xf]  ;;  %v7521_v35 = vld [vmem:[#allocation3 + $0x364] sm:$0xf0]  ;;  %v6931_v24 = vor.u32 %v7505_v18, %v6930_v58  ;;  %v7487_v52 = vld [vmem:[#allocation3 + $0x254] sm:$0xf0] }
 0x634   :  { %4970 = vmatpush.bf16.msrb.mxu0 %v6571_v60  ;;  %v7058_v21 = vld [vmem:[#allocation3 + $0x3e0] sm:$0xf]  ;;  %v7537_v40 = vld [vmem:[#allocation3 + $0x3e4] sm:$0xf0]  ;;  %v6995_v50 = vor.u32 %v7521_v35, %v6994_v43  ;;  %v6922_v54 = vld [vmem:[#allocation3 + $0x2d0] sm:$0xf]  ;;  %v6859_v29 = vor.u32 %v7487_v52, %v6858_v51 }
 0x635   :  { %4983 = vmatpush.bf16.msrb.mxu1 %v6635_v47  ;;  %v7059_v28 = vor.u32 %v7537_v40, %v7058_v21  ;;  %v7503_v20 = vld [vmem:[#allocation3 + $0x2d4] sm:$0xf0]  ;;  %v6986_v3 = vld [vmem:[#allocation3 + $0x350] sm:$0xf]  ;;  %v6850_v15 = vld [vmem:[#allocation3 + $0x240] sm:$0xf] }
 0x636   :  { %4996 = vmatpush.bf16.msrb.mxu2 %v6699_v13  ;;  %v7519_v23 = vld [vmem:[#allocation3 + $0x354] sm:$0xf0]  ;;  %v7050_v1 = vld [vmem:[#allocation3 + $0x3d0] sm:$0xf]  ;;  %v6923_v49 = vor.u32 %v7503_v20, %v6922_v54  ;;  %v7485_v11 = vld [vmem:[#allocation3 + $0x244] sm:$0xf0] }
 0x637   :  { %5009 = vmatpush.bf16.msrb.mxu3 %v6763_v2  ;;  %v7535_v12 = vld [vmem:[#allocation3 + $0x3d4] sm:$0xf0]  ;;  %v6987_v37 = vor.u32 %v7519_v23, %v6986_v3  ;;  %v6914_v55 = vld [vmem:[#allocation3 + $0x2c0] sm:$0xf]  ;;  %v7501_v59 = vld [vmem:[#allocation3 + $0x2c4] sm:$0xf0]  ;;  %v6851_v13 = vor.u32 %v7485_v11, %v6850_v15 }
 0x638   :  { %4971 = vmatpush.bf16.msrb.mxu0 %v6563_v53  ;;  %v7051_v44 = vor.u32 %v7535_v12, %v7050_v1  ;;  %v6978_v60 = vld [vmem:[#allocation3 + $0x340] sm:$0xf]  ;;  %v7517_v61 = vld [vmem:[#allocation3 + $0x344] sm:$0xf0]  ;;  %v6915_v34 = vor.u32 %v7501_v59, %v6914_v55  ;;  %v6842_v0 = vld [vmem:[#allocation3 + $0x230] sm:$0xf] }
 0x639   :  { %4984 = vmatpush.bf16.msrb.mxu1 %v6627_v14  ;;  %v7042_v62 = vld [vmem:[#allocation3 + $0x3c0] sm:$0xf]  ;;  %v7533_v47 = vld [vmem:[#allocation3 + $0x3c4] sm:$0xf0]  ;;  %v6979_v63 = vor.u32 %v7517_v61, %v6978_v60  ;;  %v7483_v2 = vld [vmem:[#allocation3 + $0x234] sm:$0xf0] }
 0x63a   :  { %4997 = vmatpush.bf16.msrb.mxu2 %v6691_v57  ;;  %v6906_v4 = vld [vmem:[#allocation3 + $0x2b0] sm:$0xf]  ;;  %v7043_v5 = vor.u32 %v7533_v47, %v7042_v62  ;;  %v7499_v7 = vld [vmem:[#allocation3 + $0x2b4] sm:$0xf0]  ;;  %v6843_v8 = vor.u32 %v7483_v2, %v6842_v0  ;;  %v6834_v14 = vld [vmem:[#allocation3 + $0x220] sm:$0xf] }
 0x63b   :  { %5010 = vmatpush.bf16.msrb.mxu3 %v6755_v22  ;;  %4972 = vmatmul.bf16.vlgmr.msrb.gmra.mxu0 %v9695_v33  ;;  %v6970_v42 = vld [vmem:[#allocation3 + $0x330] sm:$0xf]  ;;  %v7515_v10 = vld [vmem:[#allocation3 + $0x334] sm:$0xf0]  ;;  %v6907_v38 = vor.u32 %v7499_v7, %v6906_v4  ;;  %v7481_v57 = vld [vmem:[#allocation3 + $0x224] sm:$0xf0] }
 0x63c   :  { %5016 = vmatpush.bf16.msra.mxu0 %v6875_v32  ;;  %4985 = vmatmul.bf16.vlgmr.msrb.gmra.mxu1 %v9703_v46  ;;  %v7034_v27 = vld [vmem:[#allocation3 + $0x3b0] sm:$0xf]  ;;  %v7531_v53 = vld [vmem:[#allocation3 + $0x3b4] sm:$0xf0]  ;;  %v6971_v6 = vor.u32 %v7515_v10, %v6970_v42  ;;  %v6898_v16 = vld [vmem:[#allocation3 + $0x2a0] sm:$0xf]  ;;  %v6835_v48 = vor.u32 %v7481_v57, %v6834_v14 }
 0x63d   :  { %5029 = vmatpush.bf16.msra.mxu1 %v6939_v36  ;;  %4998 = vmatmul.bf16.vlgmr.msrb.gmra.mxu2 %v9691_v39  ;;  %v7035_v17 = vor.u32 %v7531_v53, %v7034_v27  ;;  %v7497_v22 = vld [vmem:[#allocation3 + $0x2a4] sm:$0xf0]  ;;  %v6962_v32 = vld [vmem:[#allocation3 + $0x320] sm:$0xf]  ;;  %v6826_v18 = vld [vmem:[#allocation3 + $0x210] sm:$0xf] }
 0x63e   :  { %5042 = vmatpush.bf16.msra.mxu2 %v7003_v26  ;;  %5011 = vmatmul.bf16.vlgmr.msrb.gmra.mxu3 %v9699_v41  ;;  %v7513_v36 = vld [vmem:[#allocation3 + $0x324] sm:$0xf0]  ;;  %v7026_v26 = vld [vmem:[#allocation3 + $0x3a0] sm:$0xf]  ;;  %v6899_v58 = vor.u32 %v7497_v22, %v6898_v16  ;;  %v7479_v43 = vld [vmem:[#allocation3 + $0x214] sm:$0xf0]  ;;  %v9715_v16 = vpack.c.bf16 %v9678_v30, %v9678_v30 }
 0x63f   :  { %5055 = vmatpush.bf16.msra.mxu3 %v7067_v25  ;;  %v7529_v19 = vld [vmem:[#allocation3 + $0x3a4] sm:$0xf0]  ;;  %v6963_v25 = vor.u32 %v7513_v36, %v6962_v32  ;;  %v6890_v35 = vld [vmem:[#allocation3 + $0x290] sm:$0xf]  ;;  %v7495_v40 = vld [vmem:[#allocation3 + $0x294] sm:$0xf0]  ;;  %v6827_v52 = vor.u32 %v7479_v43, %v6826_v18  ;;  %v9723_v32 = vpack.c.bf16 %v9681_v31, %v9681_v31 }
 0x640   :  { %5017 = vmatpush.bf16.msra.mxu0 %v6867_v45  ;;  %v7027_v21 = vor.u32 %v7529_v19, %v7026_v26  ;;  %v6954_v45 = vld [vmem:[#allocation3 + $0x310] sm:$0xf]  ;;  %v7527_v51 = vld [vmem:[#allocation3 + $0x394] sm:$0xf0]  ;;  %v6818_v54 = vld [vmem:[#allocation3 + $0x200] sm:$0xf]  ;;  %v6891_v20 = vor.u32 %v7495_v40, %v6890_v35 }
 0x641   :  { %5030 = vmatpush.bf16.msra.mxu1 %v6931_v24  ;;  %v7511_v24 = vld [vmem:[#allocation3 + $0x314] sm:$0xf0]  ;;  %v6882_v23 = vld [vmem:[#allocation3 + $0x280] sm:$0xf]  ;;  %v7493_v1 = vld [vmem:[#allocation3 + $0x284] sm:$0xf0] }
 0x642   :  { %5043 = vmatpush.bf16.msra.mxu2 %v6995_v50  ;;  %v7018_v50 = vld [vmem:[#allocation3 + $0x390] sm:$0xf]  ;;  %v6955_v3 = vor.u32 %v7511_v24, %v6954_v45  ;;  %v6946_v12 = vld [vmem:[#allocation3 + $0x300] sm:$0xf]  ;;  %v7525_v15 = vld [vmem:[#allocation3 + $0x384] sm:$0xf0]  ;;  %v6883_v47 = vor.u32 %v7493_v1, %v6882_v23 }
 0x643   :  { %5056 = vmatpush.bf16.msra.mxu3 %v7059_v28  ;;  %v7477_v28 = vld [vmem:[#allocation3 + $0x204] sm:$0xf0]  ;;  %v7426_v11 = vld [vmem:[#allocation3 + $0x74] sm:$0xf]  ;;  %v6620_v55 = vld [vmem:[#allocation3 + $0x78] sm:$0xf0] }
 0x644   :  { %5018 = vmatpush.bf16.msra.mxu0 %v6859_v29  ;;  %v7019_v29 = vor.u32 %v7527_v51, %v7018_v50  ;;  %v6819_v59 = vor.u32 %v7477_v28, %v6818_v54  ;;  %v6684_v60 = vld [vmem:[#allocation3 + $0xf8] sm:$0xf0]  ;;  %v7458_v61 = vld [vmem:[#allocation3 + $0x174] sm:$0xf]  ;;  %v6623_v2 = vor.u32 %v7426_v11, %v6620_v55  ;;  %v7424_v7 = vld [vmem:[#allocation3 + $0x64] sm:$0xf] }
 0x645   :  { %5031 = vmatpush.bf16.msra.mxu1 %v6923_v49  ;;  %v7509_v49 = vld [vmem:[#allocation3 + $0x304] sm:$0xf0]  ;;  %v6748_v62 = vld [vmem:[#allocation3 + $0x178] sm:$0xf0]  ;;  %v6612_v42 = vld [vmem:[#allocation3 + $0x68] sm:$0xf0] }
 0x646   :  { %5044 = vmatpush.bf16.msra.mxu2 %v6987_v37  ;;  %v7010_v37 = vld [vmem:[#allocation3 + $0x380] sm:$0xf]  ;;  %v7440_v10 = vld [vmem:[#allocation3 + $0xe4] sm:$0xf]  ;;  %v6676_v53 = vld [vmem:[#allocation3 + $0xe8] sm:$0xf0]  ;;  %v6615_v22 = vor.u32 %v7424_v7, %v6612_v42 }
 0x647   :  { %5057 = vmatpush.bf16.msra.mxu3 %v7051_v44  ;;  %v7442_v44 = vld [vmem:[#allocation3 + $0xf4] sm:$0xf]  ;;  %v7011_v0 = vor.u32 %v7525_v15, %v7010_v37  ;;  %v7472_v14 = vld [vmem:[#allocation3 + $0x1e4] sm:$0xf]  ;;  %v6804_v57 = vld [vmem:[#allocation3 + $0x1e8] sm:$0xf0] }
 0x648   :  { %5019 = vmatpush.bf16.msra.mxu0 %v6851_v13  ;;  %v6947_v13 = vor.u32 %v7509_v49, %v6946_v12  ;;  %v6687_v4 = vor.u32 %v7442_v44, %v6684_v60  ;;  %v7422_v26 = vld [vmem:[#allocation3 + $0x54] sm:$0xf]  ;;  %v6604_v19 = vld [vmem:[#allocation3 + $0x58] sm:$0xf0]  ;;  %v6807_v30 = vor.u32 %v7472_v14, %v6804_v57  ;;  %v7420_v40 = vld [vmem:[#allocation3 + $0x44] sm:$0xf] }
 0x649   :  { %5032 = vmatpush.bf16.msra.mxu1 %v6915_v34  ;;  %v7474_v34 = vld [vmem:[#allocation3 + $0x1f4] sm:$0xf]  ;;  %v6796_v43 = vld [vmem:[#allocation3 + $0x1d8] sm:$0xf0]  ;;  %v6607_v31 = vor.u32 %v7422_v26, %v6604_v19  ;;  %v6596_v45 = vld [vmem:[#allocation3 + $0x48] sm:$0xf0] }
 0x64a   :  { %5045 = vmatpush.bf16.msra.mxu2 %v6979_v63  ;;  %v6812_v63 = vld [vmem:[#allocation3 + $0x1f8] sm:$0xf0]  ;;  %v7470_v18 = vld [vmem:[#allocation3 + $0x1d4] sm:$0xf]  ;;  %v7436_v24 = vld [vmem:[#allocation3 + $0xc4] sm:$0xf] }
 0x64b   :  { %5058 = vmatpush.bf16.msra.mxu3 %v7043_v5  ;;  %v6751_v5 = vor.u32 %v7458_v61, %v6748_v62  ;;  %v6815_v27 = vor.u32 %v7474_v34, %v6812_v63  ;;  %v6799_v50 = vor.u32 %v7470_v18, %v6796_v43  ;;  %v6660_v51 = vld [vmem:[#allocation3 + $0xc8] sm:$0xf0]  ;;  %v7468_v28 = vld [vmem:[#allocation3 + $0x1c4] sm:$0xf]  ;;  %v7418_v12 = vld [vmem:[#allocation3 + $0x34] sm:$0xf] }
 0x64c   :  { %5020 = vmatpush.bf16.msra.mxu0 %v6843_v8  ;;  %v7456_v8 = vld [vmem:[#allocation3 + $0x164] sm:$0xf]  ;;  %v6724_v54 = vld [vmem:[#allocation3 + $0x148] sm:$0xf0]  ;;  %v6663_v23 = vor.u32 %v7436_v24, %v6660_v51  ;;  %v7434_v49 = vld [vmem:[#allocation3 + $0xb4] sm:$0xf] }
 0x64d   :  { %5033 = vmatpush.bf16.msra.mxu1 %v6907_v38  ;;  %v6740_v38 = vld [vmem:[#allocation3 + $0x168] sm:$0xf0]  ;;  %v6652_v15 = vld [vmem:[#allocation3 + $0xb8] sm:$0xf0]  ;;  %v7450_v11 = vld [vmem:[#allocation3 + $0x134] sm:$0xf] }
 0x64e   :  { %5046 = vmatpush.bf16.msra.mxu2 %v6971_v6  ;;  %v9711_v6 = vpack.c.bf16 %v9684_v56, %v9684_v56  ;;  %v6679_v56 = vor.u32 %v7440_v10, %v6676_v53  ;;  %v6743_v36 = vor.u32 %v7456_v8, %v6740_v38  ;;  %v6716_v55 = vld [vmem:[#allocation3 + $0x138] sm:$0xf0]  ;;  %v7466_v44 = vld [vmem:[#allocation3 + $0x1b4] sm:$0xf]  ;;  %v6655_v61 = vor.u32 %v7434_v49, %v6652_v15  ;;  %v7432_v34 = vld [vmem:[#allocation3 + $0xa4] sm:$0xf] }
 0x64f   :  { %5059 = vmatpush.bf16.msra.mxu3 %v7035_v17  ;;  %v9719_v17 = vpack.c.bf16 %v9687_v9, %v9687_v9  ;;  %v6668_v9 = vld [vmem:[#allocation3 + $0xd8] sm:$0xf0]  ;;  %v6719_v62 = vor.u32 %v7450_v11, %v6716_v55  ;;  %v6772_v7 = vld [vmem:[#allocation3 + $0x1a8] sm:$0xf0]  ;;  %v7414_v53 = vld [vmem:[#allocation3 + $0x14] sm:$0xf] }
 0x650   :  { %5021 = vmatpush.bf16.msra.mxu0 %v6835_v48  ;;  %v7438_v48 = vld [vmem:[#allocation3 + $0xd4] sm:$0xf]  ;;  %v6572_v8 = vld [vmem:[#allocation3 + $0x18] sm:$0xf0]  ;;  %v6628_v18 = vld [vmem:[#allocation3 + $0x88] sm:$0xf0] }
 0x651   :  { %5034 = vmatpush.bf16.msra.mxu1 %v6899_v58  ;;  %v7454_v58 = vld [vmem:[#allocation3 + $0x154] sm:$0xf]  ;;  %v6671_v35 = vor.u32 %v7438_v48, %v6668_v9  ;;  %v6636_v57 = vld [vmem:[#allocation3 + $0x98] sm:$0xf0]  ;;  %v6575_v19 = vor.u32 %v7414_v53, %v6572_v8  ;;  %v7412_v48 = vld [vmem:[#allocation3 + $0x4] sm:$0xf] }
 0x652   :  { %5047 = vmatpush.bf16.msra.mxu2 %v6963_v25  ;;  %v6732_v25 = vld [vmem:[#allocation3 + $0x158] sm:$0xf0]  ;;  %v7430_v38 = vld [vmem:[#allocation3 + $0x94] sm:$0xf]  ;;  %v7444_v43 = vld [vmem:[#allocation3 + $0x104] sm:$0xf] }
 0x653   :  { %5060 = vmatpush.bf16.msra.mxu3 %v7027_v21  ;;  %v6735_v21 = vor.u32 %v7454_v58, %v6732_v25  ;;  %v6764_v26 = vld [vmem:[#allocation3 + $0x198] sm:$0xf0]  ;;  %v6639_v9 = vor.u32 %v7430_v38, %v6636_v57  ;;  %v7428_v25 = vld [vmem:[#allocation3 + $0x84] sm:$0xf]  ;;  %v6868_v11 = vld [vmem:[#allocation3 + $0x268] sm:$0xf0] }
 0x654   :  { %5022 = vmatpush.bf16.msra.mxu0 %v6827_v52  ;;  %v7452_v52 = vld [vmem:[#allocation3 + $0x144] sm:$0xf]  ;;  %v6876_v24 = vld [vmem:[#allocation3 + $0x278] sm:$0xf0] }
 0x655   :  { %5035 = vmatpush.bf16.msra.mxu1 %v6891_v20  ;;  %v6788_v20 = vld [vmem:[#allocation3 + $0x1c8] sm:$0xf0]  ;;  %v6727_v1 = vor.u32 %v7452_v52, %v6724_v54  ;;  %v6940_v52 = vld [vmem:[#allocation3 + $0x2f8] sm:$0xf0]  ;;  %v7522_v54 = vld [vmem:[#allocation3 + $0x374] sm:$0xf] }
 0x656   :  { %5048 = vmatpush.bf16.msra.mxu2 %v6955_v3  ;;  %v6599_v3 = vor.u32 %v7420_v40, %v6596_v45  ;;  %v6791_v37 = vor.u32 %v7468_v28, %v6788_v20  ;;  %v6756_v40 = vld [vmem:[#allocation3 + $0x188] sm:$0xf0]  ;;  %v7490_v45 = vld [vmem:[#allocation3 + $0x274] sm:$0xf]  ;;  %v7004_v28 = vld [vmem:[#allocation3 + $0x378] sm:$0xf0]  ;;  %v6631_v20 = vor.u32 %v7428_v25, %v6628_v18 }
 0x657   :  { %5061 = vmatpush.bf16.msra.mxu3 %v7019_v29  ;;  %v6588_v29 = vld [vmem:[#allocation3 + $0x38] sm:$0xf0]  ;;  %v7488_v15 = vld [vmem:[#allocation3 + $0x264] sm:$0xf]  ;;  %v7498_v25 = vld [vmem:[#allocation3 + $0x2b4] sm:$0xf] }
 0x658   :  { %5023 = vmatpush.bf16.msra.mxu0 %v6819_v59  ;;  %v6780_v59 = vld [vmem:[#allocation3 + $0x1b8] sm:$0xf0]  ;;  %v6591_v60 = vor.u32 %v7418_v12, %v6588_v29  ;;  %v6879_v29 = vor.u32 %v7490_v45, %v6876_v24  ;;  %v7504_v55 = vld [vmem:[#allocation3 + $0x2e4] sm:$0xf] }
 0x659   :  { %5036 = vmatpush.bf16.msra.mxu1 %v6883_v47  ;;  %v7416_v47 = vld [vmem:[#allocation3 + $0x24] sm:$0xf]  ;;  %v6783_v63 = vor.u32 %v7466_v44, %v6780_v59  ;;  %v6932_v59 = vld [vmem:[#allocation3 + $0x2e8] sm:$0xf0]  ;;  %v7052_v53 = vld [vmem:[#allocation3 + $0x3d8] sm:$0xf0] }
 0x65a   :  { %5049 = vmatpush.bf16.msra.mxu2 %v6947_v13  ;;  %v6580_v13 = vld [vmem:[#allocation3 + $0x28] sm:$0xf0]  ;;  %v7484_v57 = vld [vmem:[#allocation3 + $0x244] sm:$0xf] }
 0x65b   :  { %5062 = vmatpush.bf16.msra.mxu3 %v7011_v0  ;;  %5024 = vmatmul.bf16.vlgmr.msra.gmra.mxu0 %v9715_v16  ;;  %v6644_v0 = vld [vmem:[#allocation3 + $0xa8] sm:$0xf0]  ;;  %v6583_v42 = vor.u32 %v7416_v47, %v6580_v13  ;;  %v6871_v13 = vor.u32 %v7488_v15, %v6868_v11  ;;  %v7478_v15 = vld [vmem:[#allocation3 + $0x214] sm:$0xf]  ;;  %v6828_v11 = vld [vmem:[#allocation3 + $0x218] sm:$0xf0] }
 0x65c   :  { %5068 = vmatpush.bf16.msrb.mxu0 %v6623_v2  ;;  %5037 = vmatmul.bf16.vlgmr.msra.gmra.mxu1 %v9723_v32  ;;  %v7448_v2 = vld [vmem:[#allocation3 + $0x124] sm:$0xf]  ;;  %v6647_v10 = vor.u32 %v7432_v34, %v6644_v0  ;;  %v7060_v47 = vld [vmem:[#allocation3 + $0x3e8] sm:$0xf0]  ;;  %v6935_v34 = vor.u32 %v7504_v55, %v6932_v59  ;;  %v7486_v0 = vld [vmem:[#allocation3 + $0x254] sm:$0xf] }
 0x65d   :  { %5081 = vmatpush.bf16.msrb.mxu1 %v6687_v4  ;;  %5050 = vmatmul.bf16.vlgmr.msra.gmra.mxu2 %v9711_v6  ;;  %v6708_v4 = vld [vmem:[#allocation3 + $0x128] sm:$0xf0]  ;;  %v7494_v55 = vld [vmem:[#allocation3 + $0x294] sm:$0xf]  ;;  %v6892_v59 = vld [vmem:[#allocation3 + $0x298] sm:$0xf0] }
 0x65e   :  { %5094 = vmatpush.bf16.msrb.mxu2 %v6751_v5  ;;  %5063 = vmatmul.bf16.vlgmr.msra.gmra.mxu3 %v9719_v17  ;;  %v7464_v5 = vld [vmem:[#allocation3 + $0x1a4] sm:$0xf] }
 0x65f   :  { %5107 = vmatpush.bf16.msrb.mxu3 %v6815_v27  ;;  %v6711_v27 = vor.u32 %v7448_v2, %v6708_v4  ;;  %v6775_v14 = vor.u32 %v7464_v5, %v6772_v7  ;;  %v6860_v2 = vld [vmem:[#allocation3 + $0x258] sm:$0xf0]  ;;  %v7502_v4 = vld [vmem:[#allocation3 + $0x2d4] sm:$0xf] }
 0x660   :  { %5069 = vmatpush.bf16.msrb.mxu0 %v6615_v22  ;;  %v7446_v22 = vld [vmem:[#allocation3 + $0x114] sm:$0xf]  ;;  %v6924_v7 = vld [vmem:[#allocation3 + $0x2d8] sm:$0xf0]  ;;  %v6863_v8 = vor.u32 %v7486_v0, %v6860_v2  ;;  %v7476_v0 = vld [vmem:[#allocation3 + $0x204] sm:$0xf] }
 0x661   :  { %5082 = vmatpush.bf16.msrb.mxu1 %v6679_v56  ;;  %v6700_v56 = vld [vmem:[#allocation3 + $0x118] sm:$0xf0]  ;;  %v6927_v38 = vor.u32 %v7502_v4, %v6924_v7  ;;  %v6820_v2 = vld [vmem:[#allocation3 + $0x208] sm:$0xf0]  ;;  %v7492_v4 = vld [vmem:[#allocation3 + $0x284] sm:$0xf] }
 0x662   :  { %5095 = vmatpush.bf16.msrb.mxu2 %v6743_v36  ;;  %v7462_v36 = vld [vmem:[#allocation3 + $0x194] sm:$0xf]  ;;  %v6703_v58 = vor.u32 %v7446_v22, %v6700_v56  ;;  %v6852_v22 = vld [vmem:[#allocation3 + $0x248] sm:$0xf0] }
 0x663   :  { %5108 = vmatpush.bf16.msrb.mxu3 %v6807_v30  ;;  %v6564_v30 = vld [vmem:[#allocation3 + $0x8] sm:$0xf0] }
 0x664   :  { %5070 = vmatpush.bf16.msrb.mxu0 %v6607_v31  ;;  %v6767_v31 = vor.u32 %v7462_v36, %v6764_v26  ;;  %v6567_v51 = vor.u32 %v7412_v48, %v6564_v30  ;;  %v6916_v36 = vld [vmem:[#allocation3 + $0x2c8] sm:$0xf0]  ;;  %v7516_v26 = vld [vmem:[#allocation3 + $0x344] sm:$0xf] }
 0x665   :  { %5083 = vmatpush.bf16.msrb.mxu1 %v6671_v35  ;;  %v6692_v35 = vld [vmem:[#allocation3 + $0x108] sm:$0xf0]  ;;  %v7532_v48 = vld [vmem:[#allocation3 + $0x3c4] sm:$0xf] }
 0x666   :  { %5096 = vmatpush.bf16.msrb.mxu2 %v6735_v21  ;;  %v7460_v21 = vld [vmem:[#allocation3 + $0x184] sm:$0xf]  ;;  %v6884_v7 = vld [vmem:[#allocation3 + $0x288] sm:$0xf0] }
 0x667   :  { %5109 = vmatpush.bf16.msrb.mxu3 %v6799_v50  ;;  %v7506_v50 = vld [vmem:[#allocation3 + $0x2f4] sm:$0xf]  ;;  %v6759_v12 = vor.u32 %v7460_v21, %v6756_v40  ;;  %v7036_v40 = vld [vmem:[#allocation3 + $0x3b8] sm:$0xf0] }
 0x668   :  { %5071 = vmatpush.bf16.msrb.mxu0 %v6599_v3  ;;  %v6695_v3 = vor.u32 %v7444_v43, %v6692_v35  ;;  %v6943_v49 = vor.u32 %v7506_v50, %v6940_v52  ;;  %v6908_v43 = vld [vmem:[#allocation3 + $0x2b8] sm:$0xf0]  ;;  %v7530_v21 = vld [vmem:[#allocation3 + $0x3b4] sm:$0xf]  ;;  %v6836_v52 = vld [vmem:[#allocation3 + $0x228] sm:$0xf0] }
 0x669   :  { %5084 = vmatpush.bf16.msrb.mxu1 %v6663_v23  ;;  %v7538_v23 = vld [vmem:[#allocation3 + $0x3f4] sm:$0xf]  ;;  %v6972_v35 = vld [vmem:[#allocation3 + $0x338] sm:$0xf0]  ;;  %v6911_v24 = vor.u32 %v7498_v25, %v6908_v43 }
 0x66a   :  { %5097 = vmatpush.bf16.msrb.mxu2 %v6727_v1  ;;  %v7068_v1 = vld [vmem:[#allocation3 + $0x3f8] sm:$0xf0] }
 0x66b   :  { %5110 = vmatpush.bf16.msrb.mxu3 %v6791_v37  ;;  %v7007_v37 = vor.u32 %v7522_v54, %v7004_v28  ;;  %v7071_v44 = vor.u32 %v7538_v23, %v7068_v1  ;;  %v7496_v54 = vld [vmem:[#allocation3 + $0x2a4] sm:$0xf]  ;;  %v7039_v28 = vor.u32 %v7530_v21, %v7036_v40  ;;  %v6964_v23 = vld [vmem:[#allocation3 + $0x328] sm:$0xf0] }
 0x66c   :  { %5072 = vmatpush.bf16.msrb.mxu0 %v6591_v60  ;;  %v7520_v60 = vld [vmem:[#allocation3 + $0x364] sm:$0xf] }
 0x66d   :  { %5085 = vmatpush.bf16.msrb.mxu1 %v6655_v61  ;;  %v6996_v61 = vld [vmem:[#allocation3 + $0x368] sm:$0xf0]  ;;  %v7528_v1 = vld [vmem:[#allocation3 + $0x3a4] sm:$0xf] }
 0x66e   :  { %5098 = vmatpush.bf16.msrb.mxu2 %v6719_v62  ;;  %v7536_v62 = vld [vmem:[#allocation3 + $0x3e4] sm:$0xf] }
 0x66f   :  { %5111 = vmatpush.bf16.msrb.mxu3 %v6783_v63  ;;  %v6999_v63 = vor.u32 %v7520_v60, %v6996_v61  ;;  %v7063_v5 = vor.u32 %v7536_v62, %v7060_v47  ;;  %v7510_v60 = vld [vmem:[#allocation3 + $0x314] sm:$0xf]  ;;  %v6956_v61 = vld [vmem:[#allocation3 + $0x318] sm:$0xf0] }
 0x670   :  { %5073 = vmatpush.bf16.msrb.mxu0 %v6583_v42  ;;  %v7518_v42 = vld [vmem:[#allocation3 + $0x354] sm:$0xf]  ;;  %v7020_v47 = vld [vmem:[#allocation3 + $0x398] sm:$0xf0] }
 0x671   :  { %5086 = vmatpush.bf16.msrb.mxu1 %v6647_v10  ;;  %v6988_v10 = vld [vmem:[#allocation3 + $0x358] sm:$0xf0]  ;;  %v7526_v62 = vld [vmem:[#allocation3 + $0x394] sm:$0xf] }
 0x672   :  { %5099 = vmatpush.bf16.msrb.mxu2 %v6711_v27  ;;  %v7534_v27 = vld [vmem:[#allocation3 + $0x3d4] sm:$0xf] }
 0x673   :  { %5112 = vmatpush.bf16.msrb.mxu3 %v6775_v14  ;;  %v6991_v14 = vor.u32 %v7518_v42, %v6988_v10  ;;  %v7055_v56 = vor.u32 %v7534_v27, %v7052_v53  ;;  %v7508_v42 = vld [vmem:[#allocation3 + $0x304] sm:$0xf]  ;;  %v6948_v10 = vld [vmem:[#allocation3 + $0x308] sm:$0xf0] }
 0x674   :  { %5074 = vmatpush.bf16.msrb.mxu0 %v6575_v19  ;;  %v6980_v19 = vld [vmem:[#allocation3 + $0x348] sm:$0xf0]  ;;  %v7524_v27 = vld [vmem:[#allocation3 + $0x384] sm:$0xf] }
 0x675   :  { %5087 = vmatpush.bf16.msrb.mxu1 %v6639_v9  ;;  %v7482_v9 = vld [vmem:[#allocation3 + $0x234] sm:$0xf]  ;;  %v7012_v53 = vld [vmem:[#allocation3 + $0x388] sm:$0xf0] }
 0x676   :  { %5100 = vmatpush.bf16.msrb.mxu2 %v6703_v58  ;;  %v6844_v58 = vld [vmem:[#allocation3 + $0x238] sm:$0xf0] }
 0x677   :  { %5113 = vmatpush.bf16.msrb.mxu3 %v6767_v31  ;;  %v7514_v31 = vld [vmem:[#allocation3 + $0x334] sm:$0xf]  ;;  %v6847_v45 = vor.u32 %v7482_v9, %v6844_v58 }
 0x678   :  { %5075 = vmatpush.bf16.msrb.mxu0 %v6567_v51  ;;  %v6975_v50 = vor.u32 %v7514_v31, %v6972_v35  ;;  %v7480_v51 = vld [vmem:[#allocation3 + $0x224] sm:$0xf] }
 0x679   :  { %5088 = vmatpush.bf16.msrb.mxu1 %v6631_v20  ;;  %v6900_v20 = vld [vmem:[#allocation3 + $0x2a8] sm:$0xf0] }
 0x67a   :  { %5101 = vmatpush.bf16.msrb.mxu2 %v6695_v3  ;;  %v7512_v3 = vld [vmem:[#allocation3 + $0x324] sm:$0xf] }
 0x67b   :  { %5114 = vmatpush.bf16.msrb.mxu3 %v6759_v12  ;;  %5076 = vmatmul.bf16.vlgmr.msrb.gmra.mxu0 %v9695_v33  ;;  %v7044_v33 = vld [vmem:[#allocation3 + $0x3c8] sm:$0xf0] }
 0x67c   :  { %5120 = vmatpush.bf16.msra.mxu0 %v6879_v29  ;;  %5089 = vmatmul.bf16.vlgmr.msrb.gmra.mxu1 %v9703_v46  ;;  %v6983_v46 = vor.u32 %v7516_v26, %v6980_v19  ;;  %v7047_v18 = vor.u32 %v7532_v48, %v7044_v33  ;;  %v7028_v12 = vld [vmem:[#allocation3 + $0x3a8] sm:$0xf0]  ;;  %v6839_v29 = vor.u32 %v7480_v51, %v6836_v52 }
 0x67d   :  { %5133 = vmatpush.bf16.msra.mxu1 %v6943_v49  ;;  %5102 = vmatmul.bf16.vlgmr.msrb.gmra.mxu2 %v9691_v39  ;;  %v7500_v39 = vld [vmem:[#allocation3 + $0x2c4] sm:$0xf]  ;;  %v6903_v49 = vor.u32 %v7496_v54, %v6900_v20 }
 0x67e   :  { %5146 = vmatpush.bf16.msra.mxu2 %v7007_v37  ;;  %5115 = vmatmul.bf16.vlgmr.msrb.gmra.mxu3 %v9699_v41  ;;  %v6855_v41 = vor.u32 %v7484_v57, %v6852_v22  ;;  %v6919_v30 = vor.u32 %v7500_v39, %v6916_v36  ;;  %v6967_v37 = vor.u32 %v7512_v3, %v6964_v23  ;;  %v4318_v22 = vld [vmem:[%s9759_s15] sm:$0x3] }
 0x67f   :  { %5159 = vmatpush.bf16.msra.mxu3 %v7071_v44  ;;  %v7031_v44 = vor.u32 %v7528_v1, %v7028_v12  ;;  %v7015_v57 = vor.u32 %v7524_v27, %v7012_v53  ;;  %v4320_v39 = vperm.slane %v4318_v22, 0 }
 0x680   :  { %5121 = vmatpush.bf16.msra.mxu0 %v6871_v13  ;;  %v6831_v13 = vor.u32 %v7478_v15, %v6828_v11 }
 0x681   :  { %5134 = vmatpush.bf16.msra.mxu1 %v6935_v34  ;;  %v6895_v34 = vor.u32 %v7494_v55, %v6892_v59 }
 0x682   :  { %5147 = vmatpush.bf16.msra.mxu2 %v6999_v63  ;;  %v6959_v63 = vor.u32 %v7510_v60, %v6956_v61 }
 0x683   :  { %5160 = vmatpush.bf16.msra.mxu3 %v7063_v5  ;;  %v7023_v5 = vor.u32 %v7526_v62, %v7020_v47 }
 0x684   :  { %5122 = vmatpush.bf16.msra.mxu0 %v6863_v8  ;;  %v6823_v8 = vor.u32 %v7476_v0, %v6820_v2 }
 0x685   :  { %5135 = vmatpush.bf16.msra.mxu1 %v6927_v38  ;;  %v6887_v38 = vor.u32 %v7492_v4, %v6884_v7 }
 0x686   :  { %5148 = vmatpush.bf16.msra.mxu2 %v6991_v14  ;;  %v6951_v14 = vor.u32 %v7508_v42, %v6948_v10 }
 0x687   :  { %5161 = vmatpush.bf16.msra.mxu3 %v7055_v56 }
 0x688   :  { %5123 = vmatpush.bf16.msra.mxu0 %v6855_v41 }
 0x689   :  { %5136 = vmatpush.bf16.msra.mxu1 %v6919_v30 }
 0x68a   :  { %5149 = vmatpush.bf16.msra.mxu2 %v6983_v46 }
 0x68b   :  { %5162 = vmatpush.bf16.msra.mxu3 %v7047_v18 }
 0x68c   :  { %5124 = vmatpush.bf16.msra.mxu0 %v6847_v45 }
 0x68d   :  { %5137 = vmatpush.bf16.msra.mxu1 %v6911_v24 }
 0x68e   :  { %5150 = vmatpush.bf16.msra.mxu2 %v6975_v50 }
 0x68f   :  { %5163 = vmatpush.bf16.msra.mxu3 %v7039_v28  ;;  %v4321_v28 = vperm.slane %v4318_v22, 1 }
 0x690   :  { %5125 = vmatpush.bf16.msra.mxu0 %v6839_v29 }
 0x691   :  { %5138 = vmatpush.bf16.msra.mxu1 %v6903_v49 }
 0x692   :  { %5151 = vmatpush.bf16.msra.mxu2 %v6967_v37 }
 0x693   :  { %5164 = vmatpush.bf16.msra.mxu3 %v7031_v44 }
 0x694   :  { %5126 = vmatpush.bf16.msra.mxu0 %v6831_v13 }
 0x695   :  { %5139 = vmatpush.bf16.msra.mxu1 %v6895_v34 }
 0x696   :  { %5152 = vmatpush.bf16.msra.mxu2 %v6959_v63 }
 0x697   :  { %5165 = vmatpush.bf16.msra.mxu3 %v7023_v5 }
 0x698   :  { %5127 = vmatpush.bf16.msra.mxu0 %v6823_v8 }
 0x699   :  { %5140 = vmatpush.bf16.msra.mxu1 %v6887_v38 }
 0x69a   :  { %5153 = vmatpush.bf16.msra.mxu2 %v6951_v14 }
 0x69b   :  { %5166 = vmatpush.bf16.msra.mxu3 %v7015_v57  ;;  %5128 = vmatmul.bf16.vlgmr.msra.gmra.mxu0 %v9715_v16 }
 0x69c   :  { %5141 = vmatmul.bf16.vlgmr.msra.gmra.mxu1 %v9723_v32 }
 0x69d   :  { %5154 = vmatmul.bf16.vlgmr.msra.gmra.mxu2 %v9711_v6 }
 0x69e   :  { %5167 = vmatmul.bf16.vlgmr.msra.gmra.mxu3 %v9719_v17 }
 0x6b8   :  { %v4973_v56 = vpop.f32.mrf.mxu0 }
 0x6b9   :  { %v4974_v36 = vadd.f32 %v4973_v56, %v4320_v39  ;;  %v4986_v26 = vpop.f32.mrf.mxu1 }
 0x6bb   :  { %v4987_v19 = vadd.f32 %v4986_v26, %v4974_v36 }
 0x6c0   :  { %v4999_v48 = vpop.f32.mrf.mxu2  ;;  %v4975_v16 = vpop.f32.mrf.mxu0 }
 0x6c1   :  { %v5000_v33 = vadd.f32 %v4999_v48, %v4987_v19  ;;  %v5012_v41 = vpop.f32.mrf.mxu3  ;;  %v4988_v46 = vpop.f32.mrf.mxu1 }
 0x6c3   :  { %v5013_v30 = vadd.f32 %v5012_v41, %v5000_v33 }
 0x6c8   :  { %v5001_v32 = vpop.f32.mrf.mxu2 }
 0x6c9   :  { %v5014_v9 = vpop.f32.mrf.mxu3 }
 0x6d8   :  { %v5025_v6 = vpop.f32.mrf.mxu0 }
 0x6d9   :  { %v5026_v58 = vadd.f32 %v5025_v6, %v5013_v30  ;;  %v5038_v17 = vpop.f32.mrf.mxu1 }
 0x6db   :  { %v5039_v25 = vadd.f32 %v5038_v17, %v5026_v58 }
 0x6e0   :  { %v5051_v18 = vpop.f32.mrf.mxu2  ;;  %v5027_v31 = vpop.f32.mrf.mxu0 }
 0x6e1   :  { %v5064_v43 = vpop.f32.mrf.mxu3  ;;  %v5040_v35 = vpop.f32.mrf.mxu1  ;;  %v5052_v11 = vadd.f32 %v5051_v18, %v5039_v25 }
 0x6e3   :  { %v5065_v47 = vadd.f32 %v5064_v43, %v5052_v11 }
 0x6e8   :  { %v5053_v21 = vpop.f32.mrf.mxu2 }
 0x6e9   :  { %v5066_v40 = vpop.f32.mrf.mxu3 }
 0x6f8   :  { %v5077_v45 = vpop.f32.mrf.mxu0 }
 0x6f9   :  { %v5090_v24 = vpop.f32.mrf.mxu1  ;;  %v5078_v23 = vadd.f32 %v5077_v45, %v4321_v28 }
 0x6fb   :  { %v5091_v1 = vadd.f32 %v5090_v24, %v5078_v23 }
 0x700   :  { %v5103_v50 = vpop.f32.mrf.mxu2  ;;  %v5079_v52 = vpop.f32.mrf.mxu0 }
 0x701   :  { %v5116_v51 = vpop.f32.mrf.mxu3  ;;  %v5092_v54 = vpop.f32.mrf.mxu1  ;;  %v5104_v12 = vadd.f32 %v5103_v50, %v5091_v1 }
 0x703   :  { %v5117_v29 = vadd.f32 %v5116_v51, %v5104_v12 }
 0x708   :  { %v5105_v20 = vpop.f32.mrf.mxu2 }
 0x709   :  { %v5118_v3 = vpop.f32.mrf.mxu3 }
 0x718   :  { %v5129_v49 = vpop.f32.mrf.mxu0 }
 0x719   :  { %v5142_v37 = vpop.f32.mrf.mxu1  ;;  %v5130_v15 = vadd.f32 %v5129_v49, %v5117_v29 }
 0x71b   :  { %v5143_v55 = vadd.f32 %v5142_v37, %v5130_v15 }
 0x720   :  { %v5155_v44 = vpop.f32.mrf.mxu2  ;;  %v5131_v61 = vpop.f32.mrf.mxu0 }
 0x721   :  { %v5156_v59 = vadd.f32 %v5155_v44, %v5143_v55  ;;  %v5168_v60 = vpop.f32.mrf.mxu3  ;;  %v5144_v62 = vpop.f32.mrf.mxu1 }
 0x723   :  { %v5169_v13 = vadd.f32 %v5168_v60, %v5156_v59 }
 0x725   :  { %7572 = vtanh.f32 %v5169_v13 }
 0x726   :  { %7574 = vtanh.f32 %v5065_v47 }
 0x728   :  { %v5157_v34 = vpop.f32.mrf.mxu2 }
 0x729   :  { %v5170_v63 = vpop.f32.mrf.mxu3 }
 0x72b   :  { %v7573_v0 = vpop.eup %7572 }
 0x72c   :  { %v5176_v2 = vrot.slane %v7573_v0, 4  ;;  %v7575_v4 = vpop.eup %7574 }
 0x72e   :  { %v5177_v5 = vsel %vm1053_vm4, %v7575_v4, %v5176_v2 }
 0x72f   :  { %5179 = vst [vmem:[%s9760_s16] sm:$0xff] %v5177_v5 }
 0x730   :  { %5184 = vsyncmov [#allocation4] }
 0x733   :  { %s5185_s21 = vpop.sfrf %5184 }
 0x734   :  { %p7072_p0 = scmp.ne.s32.totalorder %s5185_s21, 0 }
 0x736   :  { %5189 = shalt.err (%p7072_p0)  }
 0x737   :  { %5191 = vsyncmov [#allocation4 + $0x1] }
 0x73a   :  { %s5192_s1 = vpop.sfrf %5191 }
 0x73b   :  { %p7073_p1 = scmp.ne.s32.totalorder %s5192_s1, 0 }
 0x73d   :  { %5196 = shalt.err (%p7073_p1)  }

</bundles_post_ra>
